<compile_context>
chip_gen: v7x
topology: tpu7x:2x2x1
jax: 0.10.0
libtpu: 0.0.40
codegen_flags: <defaults>
</compile_context>

<pallas_src>
import functools

import jax
import jax.numpy as jnp
from jax.experimental import pallas as pl
from jax.experimental.pallas import tpu as pltpu


# ---------------------------------------------------------------------------
# Pallas kernel: one (n, do) output slab per grid step.
#   slab_refs[a] : (R, Cin)   bf16, R = H*W + kw - 1, depth do + a
#   w_ref        : (kd*kh*kw, Cin, Cout) bf16 (BN scale pre-folded)
#   bias_ref     : (1, Cout)  f32 (folded BN shift)           [optional]
#   o_ref        : (M, Cout), M = Ho * W (full-width rows; cols >= Wo dropped
#                  by the wrapper)
# The tap (a, b, c) contribution is a single MXU dot of the contiguous row
# window slab_a[b*W + c : b*W + c + M, :] against w[a, b, c].
# ---------------------------------------------------------------------------
def _conv_slab_kernel(*refs, kd, kh, kw, W, apply_relu, has_bias):
    slab_refs = refs[:kd]
    w_ref = refs[kd]
    bias_ref = refs[kd + 1] if has_bias else None
    o_ref = refs[-1]

    M, Cout = o_ref.shape
    acc = jnp.zeros((M, Cout), jnp.float32)
    t = 0
    for a in range(kd):
        for b in range(kh):
            for c in range(kw):
                lhs = slab_refs[a][pl.ds(b * W + c, M), :]        # (M, Cin) bf16
                acc = acc + jnp.dot(lhs, w_ref[t],
                                    preferred_element_type=jnp.float32)
                t += 1
    if has_bias:
        acc = acc + bias_ref[...]                                 # (1, Cout) bcast
    if apply_relu:
        acc = jnp.maximum(acc, 0.0)
    o_ref[...] = acc.astype(o_ref.dtype)


# ---------------------------------------------------------------------------
# One conv3d (+ folded BN affine + optional ReLU) layer, channels-last.
# ---------------------------------------------------------------------------
def conv3d_bn_relu(x_cl, weight, scale, shift, *, apply_relu, out_dtype):
    """x_cl: (N, D, H, W, Cin) bf16. weight: (Cout, Cin, kd, kh, kw) f32 (PyTorch).
    scale/shift: folded BN per-channel affine (None, None for a bare conv)."""
    N, D, H, W, Cin = x_cl.shape
    Cout, Cin_w, kd, kh, kw = weight.shape
    assert Cin_w == Cin
    Do, Ho, Wo = D - kd + 1, H - kh + 1, W - kw + 1

    # (kd, kh, kw, Cin, Cout); fold BN scale in f32, then cast to bf16 for the MXU.
    wt = jnp.transpose(weight, (2, 3, 4, 1, 0)).astype(jnp.float32)
    if scale is not None:
        wt = wt * scale.astype(jnp.float32)
    wt = wt.reshape(kd * kh * kw, Cin, Cout).astype(jnp.bfloat16)
    has_bias = shift is not None

    # Flatten (H, W) -> rows (bitcast in HBM); pad kw-1 zero rows so the
    # deepest tap window stays in bounds.  Taps are formed in-kernel from this
    # slab -- no kd*kh*kw im2col replication through HBM.
    R = H * W + (kw - 1)
    xf = x_cl.reshape(N, D, H * W, Cin)
    if kw > 1:
        xf = jnp.pad(xf, ((0, 0), (0, 0), (0, kw - 1), (0, 0)))

    M = Ho * W                       # full-width output rows per (n, do)

    def slab_spec(a):
        return pl.BlockSpec((None, None, R, Cin),
                            lambda n, d, a=a: (n, d + a, 0, 0))

    in_specs = [slab_spec(a) for a in range(kd)]
    in_specs.append(pl.BlockSpec((kd * kh * kw, Cin, Cout),
                                 lambda n, d: (0, 0, 0)))          # resident weight
    args = [xf] * kd + [wt]
    if has_bias:
        in_specs.append(pl.BlockSpec((1, Cout), lambda n, d: (0, 0)))
        args.append(shift.reshape(1, Cout).astype(jnp.float32))

    kern = functools.partial(_conv_slab_kernel, kd=kd, kh=kh, kw=kw, W=W,
                             apply_relu=apply_relu, has_bias=has_bias)

    out_full = pl.pallas_call(
        kern,
        out_shape=jax.ShapeDtypeStruct((N, Do, M, Cout), out_dtype),
        grid_spec=pltpu.PrefetchScalarGridSpec(
            num_scalar_prefetch=0,
            grid=(N, Do),
            in_specs=in_specs,
            out_specs=pl.BlockSpec((None, None, M, Cout),
                                   lambda n, d: (n, d, 0, 0)),
        ),
        compiler_params=pltpu.CompilerParams(
            dimension_semantics=("parallel", "parallel"),
            vmem_limit_bytes=48 * 1024 * 1024,
        ),
    )(*args)

    # Drop the kw-1 garbage columns of the full-width rows.
    y = out_full.reshape(N, Do, Ho, W, Cout)
    if Wo != W:
        y = y[:, :, :, :Wo, :]
    return y


def _bn_fold(gamma, beta, mean, var, eps=1e-5):
    scale = gamma / jnp.sqrt(var + eps)
    shift = beta - mean * scale
    return scale, shift


# ---------------------------------------------------------------------------
# Full C4_head forward
# ---------------------------------------------------------------------------
def c4_head_forward(x, params, bs):
    """x: (bs_num, Cin, D, H, W) NCDHW; returns (bs, bs_num//bs, C*D*H*W)."""
    x_cl = jnp.transpose(x, (0, 2, 3, 4, 1)).astype(jnp.bfloat16)   # channels-last

    s1, b1 = _bn_fold(params["bn1_gamma"], params["bn1_beta"],
                      params["bn1_mean"], params["bn1_var"])
    s2, b2 = _bn_fold(params["bn2_gamma"], params["bn2_beta"],
                      params["bn2_mean"], params["bn2_var"])

    y = conv3d_bn_relu(x_cl, params["w1"], s1, b1,
                       apply_relu=True, out_dtype=jnp.bfloat16)
    y = conv3d_bn_relu(y, params["w2"], s2, b2,
                       apply_relu=True, out_dtype=jnp.bfloat16)
    y = conv3d_bn_relu(y, params["w3"], None, None,
                       apply_relu=False, out_dtype=jnp.float32)

    # Final permute + reshape over the (small) head output only.
    y = jnp.transpose(y, (0, 4, 1, 2, 3))                           # back to NCDHW
    bs_num, c, d, h, w = y.shape
    return y.reshape(bs, bs_num // bs, c * d * h * w)


# ---------------------------------------------------------------------------
# Pure-JAX reference (same bf16 operand precision, f32 accumulation)
# ---------------------------------------------------------------------------
def _conv3d_ref(x_cl, w):
    w_dhwio = jnp.transpose(w, (2, 3, 4, 1, 0)).astype(jnp.bfloat16)
    return jax.lax.conv_general_dilated(
        x_cl, w_dhwio, window_strides=(1, 1, 1), padding="VALID",
        dimension_numbers=("NDHWC", "DHWIO", "NDHWC"),
        preferred_element_type=jnp.float32)


def c4_head_reference(x, params, bs):
    x_cl = jnp.transpose(x, (0, 2, 3, 4, 1)).astype(jnp.bfloat16)
    s1, b1 = _bn_fold(params["bn1_gamma"], params["bn1_beta"],
                      params["bn1_mean"], params["bn1_var"])
    s2, b2 = _bn_fold(params["bn2_gamma"], params["bn2_beta"],
                      params["bn2_mean"], params["bn2_var"])
    y = _conv3d_ref(x_cl, params["w1"])
    y = jnp.maximum(y * s1 + b1, 0.0).astype(jnp.bfloat16)
    y = _conv3d_ref(y, params["w2"])
    y = jnp.maximum(y * s2 + b2, 0.0).astype(jnp.bfloat16)
    y = _conv3d_ref(y, params["w3"])
    y = jnp.transpose(y, (0, 4, 1, 2, 3))
    bs_num, c, d, h, w = y.shape
    return y.reshape(bs, bs_num // bs, c * d * h * w)


if __name__ == "__main__":
    key = jax.random.PRNGKey(0)
    ks = jax.random.split(key, 14)

    # SMALL stand-ins for the module defaults (in_channel=256, out_channel=512)
    bs = 2
    bs_num = 4
    Cin, Cmid = 128, 128
    D = H = W = 8

    x = jax.random.normal(ks[0], (bs_num, Cin, D, H, W), dtype=jnp.float32)

    def conv_w(k, cout, cin, kd, kh, kw):
        bound = 1.0 / (cin * kd * kh * kw) ** 0.5
        return jax.random.uniform(k, (cout, cin, kd, kh, kw),
                                  minval=-bound, maxval=bound, dtype=jnp.float32)

    params = {
        "w1": conv_w(ks[1], Cmid, Cin, 3, 3, 3),
        "w2": conv_w(ks[2], Cmid, Cmid, 3, 3, 2),
        "w3": conv_w(ks[3], 2 * Cmid, Cmid, 2, 2, 1),
        "bn1_gamma": jax.random.uniform(ks[4], (Cmid,), minval=0.5, maxval=1.5),
        "bn1_beta": 0.1 * jax.random.normal(ks[5], (Cmid,)),
        "bn1_mean": 0.1 * jax.random.normal(ks[6], (Cmid,)),
        "bn1_var": jax.random.uniform(ks[7], (Cmid,), minval=0.5, maxval=1.5),
        "bn2_gamma": jax.random.uniform(ks[8], (Cmid,), minval=0.5, maxval=1.5),
        "bn2_beta": 0.1 * jax.random.normal(ks[9], (Cmid,)),
        "bn2_mean": 0.1 * jax.random.normal(ks[10], (Cmid,)),
        "bn2_var": jax.random.uniform(ks[11], (Cmid,), minval=0.5, maxval=1.5),
    }

    out = jax.block_until_ready(c4_head_forward(x, params, bs))
    # spatial trace: 8,8,8 -(3,3,3)-> 6,6,6 -(3,3,2)-> 4,4,5 -(2,2,1)-> 3,3,5
    assert out.shape == (bs, bs_num // bs, 2 * Cmid * 3 * 3 * 5), out.shape
    assert bool(jnp.all(jnp.isfinite(out)))

    ref = jax.block_until_ready(c4_head_reference(x, params, bs))
    max_err = float(jnp.max(jnp.abs(out - ref)))
    # Tolerance covers bf16 operand rounding + BN-scale-folded-into-weights
    # (different but equally valid rounding order vs. the reference).
    assert bool(jnp.allclose(out, ref, atol=1e-2, rtol=1e-2)), max_err

    print("KERNEL_OK")
</pallas_src>

<mosaic_0001>
module attributes {stable_mosaic.version = 11 : i64} {
  func.func @_conv_slab_kernel(%arg0: i32, %arg1: i32, %arg2: memref<1x1x66x128xbf16, #tpu.memory_space<vmem>>, %arg3: memref<1x1x66x128xbf16, #tpu.memory_space<vmem>>, %arg4: memref<1x1x66x128xbf16, #tpu.memory_space<vmem>>, %arg5: memref<27x128x128xbf16, #tpu.memory_space<vmem>>, %arg6: memref<1x128xf32, #tpu.memory_space<vmem>>, %arg7: memref<1x1x48x128xbf16, #tpu.memory_space<vmem>>) attributes {dimension_semantics = [#tpu.dimension_semantics<parallel>, #tpu.dimension_semantics<parallel>], iteration_bounds = array<i64: 4, 6>, scalar_prefetch = 0 : i64, scratch_operands = 0 : i64, tpu.core_type = #tpu.core_type<tc>, window_params = [{transform_indices = @transform_0, window_bounds = array<i64: 1, 1, 66, 128>}, {transform_indices = @transform_1, window_bounds = array<i64: 1, 1, 66, 128>}, {transform_indices = @transform_2, window_bounds = array<i64: 1, 1, 66, 128>}, {pipeline_mode = #tpu.pipeline_mode<synchronous>, transform_indices = @transform_3, window_bounds = array<i64: 27, 128, 128>}, {pipeline_mode = #tpu.pipeline_mode<synchronous>, transform_indices = @transform_4, window_bounds = array<i64: 1, 128>}, {transform_indices = @transform_5, window_bounds = array<i64: 1, 1, 48, 128>}]} {
    %cst = arith.constant 0.000000e+00 : f32
    %0 = vector.broadcast %cst : f32 to vector<48x128xf32>
    %c0 = arith.constant 0 : index
    %c0_0 = arith.constant 0 : index
    %c0_1 = arith.constant 0 : index
    %c0_2 = arith.constant 0 : index
    %1 = vector.load %arg2[%c0, %c0_0, %c0_1, %c0_2] : memref<1x1x66x128xbf16, #tpu.memory_space<vmem>>, vector<1x1x48x128xbf16>
    %2 = vector.shape_cast %1 : vector<1x1x48x128xbf16> to vector<48x128xbf16>
    %c0_3 = arith.constant 0 : index
    %c0_4 = arith.constant 0 : index
    %c0_5 = arith.constant 0 : index
    %3 = vector.load %arg5[%c0_3, %c0_4, %c0_5] : memref<27x128x128xbf16, #tpu.memory_space<vmem>>, vector<1x128x128xbf16>
    %4 = vector.shape_cast %3 : vector<1x128x128xbf16> to vector<128x128xbf16>
    %cst_6 = arith.constant dense<0.000000e+00> : vector<48x128xf32>
    %5 = tpu.matmul %2, %4, %cst_6 {dimension_numbers = #tpu.dot_dimension_numbers<[1], [0], [0], [1], [0, 0, 1, 1], [], []>} : vector<48x128xbf16>, vector<128x128xbf16>, vector<48x128xf32> -> vector<48x128xf32>
    %6 = arith.addf %0, %5 : vector<48x128xf32>
    %c0_7 = arith.constant 0 : index
    %c0_8 = arith.constant 0 : index
    %c1 = arith.constant 1 : index
    %c0_9 = arith.constant 0 : index
    %7 = vector.load %arg2[%c0_7, %c0_8, %c1, %c0_9] : memref<1x1x66x128xbf16, #tpu.memory_space<vmem>>, vector<1x1x48x128xbf16>
    %8 = vector.shape_cast %7 : vector<1x1x48x128xbf16> to vector<48x128xbf16>
    %c1_10 = arith.constant 1 : index
    %c0_11 = arith.constant 0 : index
    %c0_12 = arith.constant 0 : index
    %9 = vector.load %arg5[%c1_10, %c0_11, %c0_12] : memref<27x128x128xbf16, #tpu.memory_space<vmem>>, vector<1x128x128xbf16>
    %10 = vector.shape_cast %9 : vector<1x128x128xbf16> to vector<128x128xbf16>
    %cst_13 = arith.constant dense<0.000000e+00> : vector<48x128xf32>
    %11 = tpu.matmul %8, %10, %cst_13 {dimension_numbers = #tpu.dot_dimension_numbers<[1], [0], [0], [1], [0, 0, 1, 1], [], []>} : vector<48x128xbf16>, vector<128x128xbf16>, vector<48x128xf32> -> vector<48x128xf32>
    %12 = arith.addf %6, %11 : vector<48x128xf32>
    %c0_14 = arith.constant 0 : index
    %c0_15 = arith.constant 0 : index
    %c2 = arith.constant 2 : index
    %c0_16 = arith.constant 0 : index
    %13 = vector.load %arg2[%c0_14, %c0_15, %c2, %c0_16] : memref<1x1x66x128xbf16, #tpu.memory_space<vmem>>, vector<1x1x48x128xbf16>
    %14 = vector.shape_cast %13 : vector<1x1x48x128xbf16> to vector<48x128xbf16>
    %c2_17 = arith.constant 2 : index
    %c0_18 = arith.constant 0 : index
    %c0_19 = arith.constant 0 : index
    %15 = vector.load %arg5[%c2_17, %c0_18, %c0_19] : memref<27x128x128xbf16, #tpu.memory_space<vmem>>, vector<1x128x128xbf16>
    %16 = vector.shape_cast %15 : vector<1x128x128xbf16> to vector<128x128xbf16>
    %cst_20 = arith.constant dense<0.000000e+00> : vector<48x128xf32>
    %17 = tpu.matmul %14, %16, %cst_20 {dimension_numbers = #tpu.dot_dimension_numbers<[1], [0], [0], [1], [0, 0, 1, 1], [], []>} : vector<48x128xbf16>, vector<128x128xbf16>, vector<48x128xf32> -> vector<48x128xf32>
    %18 = arith.addf %12, %17 : vector<48x128xf32>
    %c0_21 = arith.constant 0 : index
    %c0_22 = arith.constant 0 : index
    %c8 = arith.constant 8 : index
    %c0_23 = arith.constant 0 : index
    %19 = vector.load %arg2[%c0_21, %c0_22, %c8, %c0_23] : memref<1x1x66x128xbf16, #tpu.memory_space<vmem>>, vector<1x1x48x128xbf16>
    %20 = vector.shape_cast %19 : vector<1x1x48x128xbf16> to vector<48x128xbf16>
    %c3 = arith.constant 3 : index
    %c0_24 = arith.constant 0 : index
    %c0_25 = arith.constant 0 : index
    %21 = vector.load %arg5[%c3, %c0_24, %c0_25] : memref<27x128x128xbf16, #tpu.memory_space<vmem>>, vector<1x128x128xbf16>
    %22 = vector.shape_cast %21 : vector<1x128x128xbf16> to vector<128x128xbf16>
    %cst_26 = arith.constant dense<0.000000e+00> : vector<48x128xf32>
    %23 = tpu.matmul %20, %22, %cst_26 {dimension_numbers = #tpu.dot_dimension_numbers<[1], [0], [0], [1], [0, 0, 1, 1], [], []>} : vector<48x128xbf16>, vector<128x128xbf16>, vector<48x128xf32> -> vector<48x128xf32>
    %24 = arith.addf %18, %23 : vector<48x128xf32>
    %c0_27 = arith.constant 0 : index
    %c0_28 = arith.constant 0 : index
    %c9 = arith.constant 9 : index
    %c0_29 = arith.constant 0 : index
    %25 = vector.load %arg2[%c0_27, %c0_28, %c9, %c0_29] : memref<1x1x66x128xbf16, #tpu.memory_space<vmem>>, vector<1x1x48x128xbf16>
    %26 = vector.shape_cast %25 : vector<1x1x48x128xbf16> to vector<48x128xbf16>
    %c4 = arith.constant 4 : index
    %c0_30 = arith.constant 0 : index
    %c0_31 = arith.constant 0 : index
    %27 = vector.load %arg5[%c4, %c0_30, %c0_31] : memref<27x128x128xbf16, #tpu.memory_space<vmem>>, vector<1x128x128xbf16>
    %28 = vector.shape_cast %27 : vector<1x128x128xbf16> to vector<128x128xbf16>
    %cst_32 = arith.constant dense<0.000000e+00> : vector<48x128xf32>
    %29 = tpu.matmul %26, %28, %cst_32 {dimension_numbers = #tpu.dot_dimension_numbers<[1], [0], [0], [1], [0, 0, 1, 1], [], []>} : vector<48x128xbf16>, vector<128x128xbf16>, vector<48x128xf32> -> vector<48x128xf32>
    %30 = arith.addf %24, %29 : vector<48x128xf32>
    %c0_33 = arith.constant 0 : index
    %c0_34 = arith.constant 0 : index
    %c10 = arith.constant 10 : index
    %c0_35 = arith.constant 0 : index
    %31 = vector.load %arg2[%c0_33, %c0_34, %c10, %c0_35] : memref<1x1x66x128xbf16, #tpu.memory_space<vmem>>, vector<1x1x48x128xbf16>
    %32 = vector.shape_cast %31 : vector<1x1x48x128xbf16> to vector<48x128xbf16>
    %c5 = arith.constant 5 : index
    %c0_36 = arith.constant 0 : index
    %c0_37 = arith.constant 0 : index
    %33 = vector.load %arg5[%c5, %c0_36, %c0_37] : memref<27x128x128xbf16, #tpu.memory_space<vmem>>, vector<1x128x128xbf16>
    %34 = vector.shape_cast %33 : vector<1x128x128xbf16> to vector<128x128xbf16>
    %cst_38 = arith.constant dense<0.000000e+00> : vector<48x128xf32>
    %35 = tpu.matmul %32, %34, %cst_38 {dimension_numbers = #tpu.dot_dimension_numbers<[1], [0], [0], [1], [0, 0, 1, 1], [], []>} : vector<48x128xbf16>, vector<128x128xbf16>, vector<48x128xf32> -> vector<48x128xf32>
    %36 = arith.addf %30, %35 : vector<48x128xf32>
    %c0_39 = arith.constant 0 : index
    %c0_40 = arith.constant 0 : index
    %c16 = arith.constant 16 : index
    %c0_41 = arith.constant 0 : index
    %37 = vector.load %arg2[%c0_39, %c0_40, %c16, %c0_41] : memref<1x1x66x128xbf16, #tpu.memory_space<vmem>>, vector<1x1x48x128xbf16>
    %38 = vector.shape_cast %37 : vector<1x1x48x128xbf16> to vector<48x128xbf16>
    %c6 = arith.constant 6 : index
    %c0_42 = arith.constant 0 : index
    %c0_43 = arith.constant 0 : index
    %39 = vector.load %arg5[%c6, %c0_42, %c0_43] : memref<27x128x128xbf16, #tpu.memory_space<vmem>>, vector<1x128x128xbf16>
    %40 = vector.shape_cast %39 : vector<1x128x128xbf16> to vector<128x128xbf16>
    %cst_44 = arith.constant dense<0.000000e+00> : vector<48x128xf32>
    %41 = tpu.matmul %38, %40, %cst_44 {dimension_numbers = #tpu.dot_dimension_numbers<[1], [0], [0], [1], [0, 0, 1, 1], [], []>} : vector<48x128xbf16>, vector<128x128xbf16>, vector<48x128xf32> -> vector<48x128xf32>
    %42 = arith.addf %36, %41 : vector<48x128xf32>
    %c0_45 = arith.constant 0 : index
    %c0_46 = arith.constant 0 : index
    %c17 = arith.constant 17 : index
    %c0_47 = arith.constant 0 : index
    %43 = vector.load %arg2[%c0_45, %c0_46, %c17, %c0_47] : memref<1x1x66x128xbf16, #tpu.memory_space<vmem>>, vector<1x1x48x128xbf16>
    %44 = vector.shape_cast %43 : vector<1x1x48x128xbf16> to vector<48x128xbf16>
    %c7 = arith.constant 7 : index
    %c0_48 = arith.constant 0 : index
    %c0_49 = arith.constant 0 : index
    %45 = vector.load %arg5[%c7, %c0_48, %c0_49] : memref<27x128x128xbf16, #tpu.memory_space<vmem>>, vector<1x128x128xbf16>
    %46 = vector.shape_cast %45 : vector<1x128x128xbf16> to vector<128x128xbf16>
    %cst_50 = arith.constant dense<0.000000e+00> : vector<48x128xf32>
    %47 = tpu.matmul %44, %46, %cst_50 {dimension_numbers = #tpu.dot_dimension_numbers<[1], [0], [0], [1], [0, 0, 1, 1], [], []>} : vector<48x128xbf16>, vector<128x128xbf16>, vector<48x128xf32> -> vector<48x128xf32>
    %48 = arith.addf %42, %47 : vector<48x128xf32>
    %c0_51 = arith.constant 0 : index
    %c0_52 = arith.constant 0 : index
    %c18 = arith.constant 18 : index
    %c0_53 = arith.constant 0 : index
    %49 = vector.load %arg2[%c0_51, %c0_52, %c18, %c0_53] : memref<1x1x66x128xbf16, #tpu.memory_space<vmem>>, vector<1x1x48x128xbf16>
    %50 = vector.shape_cast %49 : vector<1x1x48x128xbf16> to vector<48x128xbf16>
    %c8_54 = arith.constant 8 : index
    %c0_55 = arith.constant 0 : index
    %c0_56 = arith.constant 0 : index
    %51 = vector.load %arg5[%c8_54, %c0_55, %c0_56] : memref<27x128x128xbf16, #tpu.memory_space<vmem>>, vector<1x128x128xbf16>
    %52 = vector.shape_cast %51 : vector<1x128x128xbf16> to vector<128x128xbf16>
    %cst_57 = arith.constant dense<0.000000e+00> : vector<48x128xf32>
    %53 = tpu.matmul %50, %52, %cst_57 {dimension_numbers = #tpu.dot_dimension_numbers<[1], [0], [0], [1], [0, 0, 1, 1], [], []>} : vector<48x128xbf16>, vector<128x128xbf16>, vector<48x128xf32> -> vector<48x128xf32>
    %54 = arith.addf %48, %53 : vector<48x128xf32>
    %c0_58 = arith.constant 0 : index
    %c0_59 = arith.constant 0 : index
    %c0_60 = arith.constant 0 : index
    %c0_61 = arith.constant 0 : index
    %55 = vector.load %arg3[%c0_58, %c0_59, %c0_60, %c0_61] : memref<1x1x66x128xbf16, #tpu.memory_space<vmem>>, vector<1x1x48x128xbf16>
    %56 = vector.shape_cast %55 : vector<1x1x48x128xbf16> to vector<48x128xbf16>
    %c9_62 = arith.constant 9 : index
    %c0_63 = arith.constant 0 : index
    %c0_64 = arith.constant 0 : index
    %57 = vector.load %arg5[%c9_62, %c0_63, %c0_64] : memref<27x128x128xbf16, #tpu.memory_space<vmem>>, vector<1x128x128xbf16>
    %58 = vector.shape_cast %57 : vector<1x128x128xbf16> to vector<128x128xbf16>
    %cst_65 = arith.constant dense<0.000000e+00> : vector<48x128xf32>
    %59 = tpu.matmul %56, %58, %cst_65 {dimension_numbers = #tpu.dot_dimension_numbers<[1], [0], [0], [1], [0, 0, 1, 1], [], []>} : vector<48x128xbf16>, vector<128x128xbf16>, vector<48x128xf32> -> vector<48x128xf32>
    %60 = arith.addf %54, %59 : vector<48x128xf32>
    %c0_66 = arith.constant 0 : index
    %c0_67 = arith.constant 0 : index
    %c1_68 = arith.constant 1 : index
    %c0_69 = arith.constant 0 : index
    %61 = vector.load %arg3[%c0_66, %c0_67, %c1_68, %c0_69] : memref<1x1x66x128xbf16, #tpu.memory_space<vmem>>, vector<1x1x48x128xbf16>
    %62 = vector.shape_cast %61 : vector<1x1x48x128xbf16> to vector<48x128xbf16>
    %c10_70 = arith.constant 10 : index
    %c0_71 = arith.constant 0 : index
    %c0_72 = arith.constant 0 : index
    %63 = vector.load %arg5[%c10_70, %c0_71, %c0_72] : memref<27x128x128xbf16, #tpu.memory_space<vmem>>, vector<1x128x128xbf16>
    %64 = vector.shape_cast %63 : vector<1x128x128xbf16> to vector<128x128xbf16>
    %cst_73 = arith.constant dense<0.000000e+00> : vector<48x128xf32>
    %65 = tpu.matmul %62, %64, %cst_73 {dimension_numbers = #tpu.dot_dimension_numbers<[1], [0], [0], [1], [0, 0, 1, 1], [], []>} : vector<48x128xbf16>, vector<128x128xbf16>, vector<48x128xf32> -> vector<48x128xf32>
    %66 = arith.addf %60, %65 : vector<48x128xf32>
    %c0_74 = arith.constant 0 : index
    %c0_75 = arith.constant 0 : index
    %c2_76 = arith.constant 2 : index
    %c0_77 = arith.constant 0 : index
    %67 = vector.load %arg3[%c0_74, %c0_75, %c2_76, %c0_77] : memref<1x1x66x128xbf16, #tpu.memory_space<vmem>>, vector<1x1x48x128xbf16>
    %68 = vector.shape_cast %67 : vector<1x1x48x128xbf16> to vector<48x128xbf16>
    %c11 = arith.constant 11 : index
    %c0_78 = arith.constant 0 : index
    %c0_79 = arith.constant 0 : index
    %69 = vector.load %arg5[%c11, %c0_78, %c0_79] : memref<27x128x128xbf16, #tpu.memory_space<vmem>>, vector<1x128x128xbf16>
    %70 = vector.shape_cast %69 : vector<1x128x128xbf16> to vector<128x128xbf16>
    %cst_80 = arith.constant dense<0.000000e+00> : vector<48x128xf32>
    %71 = tpu.matmul %68, %70, %cst_80 {dimension_numbers = #tpu.dot_dimension_numbers<[1], [0], [0], [1], [0, 0, 1, 1], [], []>} : vector<48x128xbf16>, vector<128x128xbf16>, vector<48x128xf32> -> vector<48x128xf32>
    %72 = arith.addf %66, %71 : vector<48x128xf32>
    %c0_81 = arith.constant 0 : index
    %c0_82 = arith.constant 0 : index
    %c8_83 = arith.constant 8 : index
    %c0_84 = arith.constant 0 : index
    %73 = vector.load %arg3[%c0_81, %c0_82, %c8_83, %c0_84] : memref<1x1x66x128xbf16, #tpu.memory_space<vmem>>, vector<1x1x48x128xbf16>
    %74 = vector.shape_cast %73 : vector<1x1x48x128xbf16> to vector<48x128xbf16>
    %c12 = arith.constant 12 : index
    %c0_85 = arith.constant 0 : index
    %c0_86 = arith.constant 0 : index
    %75 = vector.load %arg5[%c12, %c0_85, %c0_86] : memref<27x128x128xbf16, #tpu.memory_space<vmem>>, vector<1x128x128xbf16>
    %76 = vector.shape_cast %75 : vector<1x128x128xbf16> to vector<128x128xbf16>
    %cst_87 = arith.constant dense<0.000000e+00> : vector<48x128xf32>
    %77 = tpu.matmul %74, %76, %cst_87 {dimension_numbers = #tpu.dot_dimension_numbers<[1], [0], [0], [1], [0, 0, 1, 1], [], []>} : vector<48x128xbf16>, vector<128x128xbf16>, vector<48x128xf32> -> vector<48x128xf32>
    %78 = arith.addf %72, %77 : vector<48x128xf32>
    %c0_88 = arith.constant 0 : index
    %c0_89 = arith.constant 0 : index
    %c9_90 = arith.constant 9 : index
    %c0_91 = arith.constant 0 : index
    %79 = vector.load %arg3[%c0_88, %c0_89, %c9_90, %c0_91] : memref<1x1x66x128xbf16, #tpu.memory_space<vmem>>, vector<1x1x48x128xbf16>
    %80 = vector.shape_cast %79 : vector<1x1x48x128xbf16> to vector<48x128xbf16>
    %c13 = arith.constant 13 : index
    %c0_92 = arith.constant 0 : index
    %c0_93 = arith.constant 0 : index
    %81 = vector.load %arg5[%c13, %c0_92, %c0_93] : memref<27x128x128xbf16, #tpu.memory_space<vmem>>, vector<1x128x128xbf16>
    %82 = vector.shape_cast %81 : vector<1x128x128xbf16> to vector<128x128xbf16>
    %cst_94 = arith.constant dense<0.000000e+00> : vector<48x128xf32>
    %83 = tpu.matmul %80, %82, %cst_94 {dimension_numbers = #tpu.dot_dimension_numbers<[1], [0], [0], [1], [0, 0, 1, 1], [], []>} : vector<48x128xbf16>, vector<128x128xbf16>, vector<48x128xf32> -> vector<48x128xf32>
    %84 = arith.addf %78, %83 : vector<48x128xf32>
    %c0_95 = arith.constant 0 : index
    %c0_96 = arith.constant 0 : index
    %c10_97 = arith.constant 10 : index
    %c0_98 = arith.constant 0 : index
    %85 = vector.load %arg3[%c0_95, %c0_96, %c10_97, %c0_98] : memref<1x1x66x128xbf16, #tpu.memory_space<vmem>>, vector<1x1x48x128xbf16>
    %86 = vector.shape_cast %85 : vector<1x1x48x128xbf16> to vector<48x128xbf16>
    %c14 = arith.constant 14 : index
    %c0_99 = arith.constant 0 : index
    %c0_100 = arith.constant 0 : index
    %87 = vector.load %arg5[%c14, %c0_99, %c0_100] : memref<27x128x128xbf16, #tpu.memory_space<vmem>>, vector<1x128x128xbf16>
    %88 = vector.shape_cast %87 : vector<1x128x128xbf16> to vector<128x128xbf16>
    %cst_101 = arith.constant dense<0.000000e+00> : vector<48x128xf32>
    %89 = tpu.matmul %86, %88, %cst_101 {dimension_numbers = #tpu.dot_dimension_numbers<[1], [0], [0], [1], [0, 0, 1, 1], [], []>} : vector<48x128xbf16>, vector<128x128xbf16>, vector<48x128xf32> -> vector<48x128xf32>
    %90 = arith.addf %84, %89 : vector<48x128xf32>
    %c0_102 = arith.constant 0 : index
    %c0_103 = arith.constant 0 : index
    %c16_104 = arith.constant 16 : index
    %c0_105 = arith.constant 0 : index
    %91 = vector.load %arg3[%c0_102, %c0_103, %c16_104, %c0_105] : memref<1x1x66x128xbf16, #tpu.memory_space<vmem>>, vector<1x1x48x128xbf16>
    %92 = vector.shape_cast %91 : vector<1x1x48x128xbf16> to vector<48x128xbf16>
    %c15 = arith.constant 15 : index
    %c0_106 = arith.constant 0 : index
    %c0_107 = arith.constant 0 : index
    %93 = vector.load %arg5[%c15, %c0_106, %c0_107] : memref<27x128x128xbf16, #tpu.memory_space<vmem>>, vector<1x128x128xbf16>
    %94 = vector.shape_cast %93 : vector<1x128x128xbf16> to vector<128x128xbf16>
    %cst_108 = arith.constant dense<0.000000e+00> : vector<48x128xf32>
    %95 = tpu.matmul %92, %94, %cst_108 {dimension_numbers = #tpu.dot_dimension_numbers<[1], [0], [0], [1], [0, 0, 1, 1], [], []>} : vector<48x128xbf16>, vector<128x128xbf16>, vector<48x128xf32> -> vector<48x128xf32>
    %96 = arith.addf %90, %95 : vector<48x128xf32>
    %c0_109 = arith.constant 0 : index
    %c0_110 = arith.constant 0 : index
    %c17_111 = arith.constant 17 : index
    %c0_112 = arith.constant 0 : index
    %97 = vector.load %arg3[%c0_109, %c0_110, %c17_111, %c0_112] : memref<1x1x66x128xbf16, #tpu.memory_space<vmem>>, vector<1x1x48x128xbf16>
    %98 = vector.shape_cast %97 : vector<1x1x48x128xbf16> to vector<48x128xbf16>
    %c16_113 = arith.constant 16 : index
    %c0_114 = arith.constant 0 : index
    %c0_115 = arith.constant 0 : index
    %99 = vector.load %arg5[%c16_113, %c0_114, %c0_115] : memref<27x128x128xbf16, #tpu.memory_space<vmem>>, vector<1x128x128xbf16>
    %100 = vector.shape_cast %99 : vector<1x128x128xbf16> to vector<128x128xbf16>
    %cst_116 = arith.constant dense<0.000000e+00> : vector<48x128xf32>
    %101 = tpu.matmul %98, %100, %cst_116 {dimension_numbers = #tpu.dot_dimension_numbers<[1], [0], [0], [1], [0, 0, 1, 1], [], []>} : vector<48x128xbf16>, vector<128x128xbf16>, vector<48x128xf32> -> vector<48x128xf32>
    %102 = arith.addf %96, %101 : vector<48x128xf32>
    %c0_117 = arith.constant 0 : index
    %c0_118 = arith.constant 0 : index
    %c18_119 = arith.constant 18 : index
    %c0_120 = arith.constant 0 : index
    %103 = vector.load %arg3[%c0_117, %c0_118, %c18_119, %c0_120] : memref<1x1x66x128xbf16, #tpu.memory_space<vmem>>, vector<1x1x48x128xbf16>
    %104 = vector.shape_cast %103 : vector<1x1x48x128xbf16> to vector<48x128xbf16>
    %c17_121 = arith.constant 17 : index
    %c0_122 = arith.constant 0 : index
    %c0_123 = arith.constant 0 : index
    %105 = vector.load %arg5[%c17_121, %c0_122, %c0_123] : memref<27x128x128xbf16, #tpu.memory_space<vmem>>, vector<1x128x128xbf16>
    %106 = vector.shape_cast %105 : vector<1x128x128xbf16> to vector<128x128xbf16>
    %cst_124 = arith.constant dense<0.000000e+00> : vector<48x128xf32>
    %107 = tpu.matmul %104, %106, %cst_124 {dimension_numbers = #tpu.dot_dimension_numbers<[1], [0], [0], [1], [0, 0, 1, 1], [], []>} : vector<48x128xbf16>, vector<128x128xbf16>, vector<48x128xf32> -> vector<48x128xf32>
    %108 = arith.addf %102, %107 : vector<48x128xf32>
    %c0_125 = arith.constant 0 : index
    %c0_126 = arith.constant 0 : index
    %c0_127 = arith.constant 0 : index
    %c0_128 = arith.constant 0 : index
    %109 = vector.load %arg4[%c0_125, %c0_126, %c0_127, %c0_128] : memref<1x1x66x128xbf16, #tpu.memory_space<vmem>>, vector<1x1x48x128xbf16>
    %110 = vector.shape_cast %109 : vector<1x1x48x128xbf16> to vector<48x128xbf16>
    %c18_129 = arith.constant 18 : index
    %c0_130 = arith.constant 0 : index
    %c0_131 = arith.constant 0 : index
    %111 = vector.load %arg5[%c18_129, %c0_130, %c0_131] : memref<27x128x128xbf16, #tpu.memory_space<vmem>>, vector<1x128x128xbf16>
    %112 = vector.shape_cast %111 : vector<1x128x128xbf16> to vector<128x128xbf16>
    %cst_132 = arith.constant dense<0.000000e+00> : vector<48x128xf32>
    %113 = tpu.matmul %110, %112, %cst_132 {dimension_numbers = #tpu.dot_dimension_numbers<[1], [0], [0], [1], [0, 0, 1, 1], [], []>} : vector<48x128xbf16>, vector<128x128xbf16>, vector<48x128xf32> -> vector<48x128xf32>
    %114 = arith.addf %108, %113 : vector<48x128xf32>
    %c0_133 = arith.constant 0 : index
    %c0_134 = arith.constant 0 : index
    %c1_135 = arith.constant 1 : index
    %c0_136 = arith.constant 0 : index
    %115 = vector.load %arg4[%c0_133, %c0_134, %c1_135, %c0_136] : memref<1x1x66x128xbf16, #tpu.memory_space<vmem>>, vector<1x1x48x128xbf16>
    %116 = vector.shape_cast %115 : vector<1x1x48x128xbf16> to vector<48x128xbf16>
    %c19 = arith.constant 19 : index
    %c0_137 = arith.constant 0 : index
    %c0_138 = arith.constant 0 : index
    %117 = vector.load %arg5[%c19, %c0_137, %c0_138] : memref<27x128x128xbf16, #tpu.memory_space<vmem>>, vector<1x128x128xbf16>
    %118 = vector.shape_cast %117 : vector<1x128x128xbf16> to vector<128x128xbf16>
    %cst_139 = arith.constant dense<0.000000e+00> : vector<48x128xf32>
    %119 = tpu.matmul %116, %118, %cst_139 {dimension_numbers = #tpu.dot_dimension_numbers<[1], [0], [0], [1], [0, 0, 1, 1], [], []>} : vector<48x128xbf16>, vector<128x128xbf16>, vector<48x128xf32> -> vector<48x128xf32>
    %120 = arith.addf %114, %119 : vector<48x128xf32>
    %c0_140 = arith.constant 0 : index
    %c0_141 = arith.constant 0 : index
    %c2_142 = arith.constant 2 : index
    %c0_143 = arith.constant 0 : index
    %121 = vector.load %arg4[%c0_140, %c0_141, %c2_142, %c0_143] : memref<1x1x66x128xbf16, #tpu.memory_space<vmem>>, vector<1x1x48x128xbf16>
    %122 = vector.shape_cast %121 : vector<1x1x48x128xbf16> to vector<48x128xbf16>
    %c20 = arith.constant 20 : index
    %c0_144 = arith.constant 0 : index
    %c0_145 = arith.constant 0 : index
    %123 = vector.load %arg5[%c20, %c0_144, %c0_145] : memref<27x128x128xbf16, #tpu.memory_space<vmem>>, vector<1x128x128xbf16>
    %124 = vector.shape_cast %123 : vector<1x128x128xbf16> to vector<128x128xbf16>
    %cst_146 = arith.constant dense<0.000000e+00> : vector<48x128xf32>
    %125 = tpu.matmul %122, %124, %cst_146 {dimension_numbers = #tpu.dot_dimension_numbers<[1], [0], [0], [1], [0, 0, 1, 1], [], []>} : vector<48x128xbf16>, vector<128x128xbf16>, vector<48x128xf32> -> vector<48x128xf32>
    %126 = arith.addf %120, %125 : vector<48x128xf32>
    %c0_147 = arith.constant 0 : index
    %c0_148 = arith.constant 0 : index
    %c8_149 = arith.constant 8 : index
    %c0_150 = arith.constant 0 : index
    %127 = vector.load %arg4[%c0_147, %c0_148, %c8_149, %c0_150] : memref<1x1x66x128xbf16, #tpu.memory_space<vmem>>, vector<1x1x48x128xbf16>
    %128 = vector.shape_cast %127 : vector<1x1x48x128xbf16> to vector<48x128xbf16>
    %c21 = arith.constant 21 : index
    %c0_151 = arith.constant 0 : index
    %c0_152 = arith.constant 0 : index
    %129 = vector.load %arg5[%c21, %c0_151, %c0_152] : memref<27x128x128xbf16, #tpu.memory_space<vmem>>, vector<1x128x128xbf16>
    %130 = vector.shape_cast %129 : vector<1x128x128xbf16> to vector<128x128xbf16>
    %cst_153 = arith.constant dense<0.000000e+00> : vector<48x128xf32>
    %131 = tpu.matmul %128, %130, %cst_153 {dimension_numbers = #tpu.dot_dimension_numbers<[1], [0], [0], [1], [0, 0, 1, 1], [], []>} : vector<48x128xbf16>, vector<128x128xbf16>, vector<48x128xf32> -> vector<48x128xf32>
    %132 = arith.addf %126, %131 : vector<48x128xf32>
    %c0_154 = arith.constant 0 : index
    %c0_155 = arith.constant 0 : index
    %c9_156 = arith.constant 9 : index
    %c0_157 = arith.constant 0 : index
    %133 = vector.load %arg4[%c0_154, %c0_155, %c9_156, %c0_157] : memref<1x1x66x128xbf16, #tpu.memory_space<vmem>>, vector<1x1x48x128xbf16>
    %134 = vector.shape_cast %133 : vector<1x1x48x128xbf16> to vector<48x128xbf16>
    %c22 = arith.constant 22 : index
    %c0_158 = arith.constant 0 : index
    %c0_159 = arith.constant 0 : index
    %135 = vector.load %arg5[%c22, %c0_158, %c0_159] : memref<27x128x128xbf16, #tpu.memory_space<vmem>>, vector<1x128x128xbf16>
    %136 = vector.shape_cast %135 : vector<1x128x128xbf16> to vector<128x128xbf16>
    %cst_160 = arith.constant dense<0.000000e+00> : vector<48x128xf32>
    %137 = tpu.matmul %134, %136, %cst_160 {dimension_numbers = #tpu.dot_dimension_numbers<[1], [0], [0], [1], [0, 0, 1, 1], [], []>} : vector<48x128xbf16>, vector<128x128xbf16>, vector<48x128xf32> -> vector<48x128xf32>
    %138 = arith.addf %132, %137 : vector<48x128xf32>
    %c0_161 = arith.constant 0 : index
    %c0_162 = arith.constant 0 : index
    %c10_163 = arith.constant 10 : index
    %c0_164 = arith.constant 0 : index
    %139 = vector.load %arg4[%c0_161, %c0_162, %c10_163, %c0_164] : memref<1x1x66x128xbf16, #tpu.memory_space<vmem>>, vector<1x1x48x128xbf16>
    %140 = vector.shape_cast %139 : vector<1x1x48x128xbf16> to vector<48x128xbf16>
    %c23 = arith.constant 23 : index
    %c0_165 = arith.constant 0 : index
    %c0_166 = arith.constant 0 : index
    %141 = vector.load %arg5[%c23, %c0_165, %c0_166] : memref<27x128x128xbf16, #tpu.memory_space<vmem>>, vector<1x128x128xbf16>
    %142 = vector.shape_cast %141 : vector<1x128x128xbf16> to vector<128x128xbf16>
    %cst_167 = arith.constant dense<0.000000e+00> : vector<48x128xf32>
    %143 = tpu.matmul %140, %142, %cst_167 {dimension_numbers = #tpu.dot_dimension_numbers<[1], [0], [0], [1], [0, 0, 1, 1], [], []>} : vector<48x128xbf16>, vector<128x128xbf16>, vector<48x128xf32> -> vector<48x128xf32>
    %144 = arith.addf %138, %143 : vector<48x128xf32>
    %c0_168 = arith.constant 0 : index
    %c0_169 = arith.constant 0 : index
    %c16_170 = arith.constant 16 : index
    %c0_171 = arith.constant 0 : index
    %145 = vector.load %arg4[%c0_168, %c0_169, %c16_170, %c0_171] : memref<1x1x66x128xbf16, #tpu.memory_space<vmem>>, vector<1x1x48x128xbf16>
    %146 = vector.shape_cast %145 : vector<1x1x48x128xbf16> to vector<48x128xbf16>
    %c24 = arith.constant 24 : index
    %c0_172 = arith.constant 0 : index
    %c0_173 = arith.constant 0 : index
    %147 = vector.load %arg5[%c24, %c0_172, %c0_173] : memref<27x128x128xbf16, #tpu.memory_space<vmem>>, vector<1x128x128xbf16>
    %148 = vector.shape_cast %147 : vector<1x128x128xbf16> to vector<128x128xbf16>
    %cst_174 = arith.constant dense<0.000000e+00> : vector<48x128xf32>
    %149 = tpu.matmul %146, %148, %cst_174 {dimension_numbers = #tpu.dot_dimension_numbers<[1], [0], [0], [1], [0, 0, 1, 1], [], []>} : vector<48x128xbf16>, vector<128x128xbf16>, vector<48x128xf32> -> vector<48x128xf32>
    %150 = arith.addf %144, %149 : vector<48x128xf32>
    %c0_175 = arith.constant 0 : index
    %c0_176 = arith.constant 0 : index
    %c17_177 = arith.constant 17 : index
    %c0_178 = arith.constant 0 : index
    %151 = vector.load %arg4[%c0_175, %c0_176, %c17_177, %c0_178] : memref<1x1x66x128xbf16, #tpu.memory_space<vmem>>, vector<1x1x48x128xbf16>
    %152 = vector.shape_cast %151 : vector<1x1x48x128xbf16> to vector<48x128xbf16>
    %c25 = arith.constant 25 : index
    %c0_179 = arith.constant 0 : index
    %c0_180 = arith.constant 0 : index
    %153 = vector.load %arg5[%c25, %c0_179, %c0_180] : memref<27x128x128xbf16, #tpu.memory_space<vmem>>, vector<1x128x128xbf16>
    %154 = vector.shape_cast %153 : vector<1x128x128xbf16> to vector<128x128xbf16>
    %cst_181 = arith.constant dense<0.000000e+00> : vector<48x128xf32>
    %155 = tpu.matmul %152, %154, %cst_181 {dimension_numbers = #tpu.dot_dimension_numbers<[1], [0], [0], [1], [0, 0, 1, 1], [], []>} : vector<48x128xbf16>, vector<128x128xbf16>, vector<48x128xf32> -> vector<48x128xf32>
    %156 = arith.addf %150, %155 : vector<48x128xf32>
    %c0_182 = arith.constant 0 : index
    %c0_183 = arith.constant 0 : index
    %c18_184 = arith.constant 18 : index
    %c0_185 = arith.constant 0 : index
    %157 = vector.load %arg4[%c0_182, %c0_183, %c18_184, %c0_185] : memref<1x1x66x128xbf16, #tpu.memory_space<vmem>>, vector<1x1x48x128xbf16>
    %158 = vector.shape_cast %157 : vector<1x1x48x128xbf16> to vector<48x128xbf16>
    %c26 = arith.constant 26 : index
    %c0_186 = arith.constant 0 : index
    %c0_187 = arith.constant 0 : index
    %159 = vector.load %arg5[%c26, %c0_186, %c0_187] : memref<27x128x128xbf16, #tpu.memory_space<vmem>>, vector<1x128x128xbf16>
    %160 = vector.shape_cast %159 : vector<1x128x128xbf16> to vector<128x128xbf16>
    %cst_188 = arith.constant dense<0.000000e+00> : vector<48x128xf32>
    %161 = tpu.matmul %158, %160, %cst_188 {dimension_numbers = #tpu.dot_dimension_numbers<[1], [0], [0], [1], [0, 0, 1, 1], [], []>} : vector<48x128xbf16>, vector<128x128xbf16>, vector<48x128xf32> -> vector<48x128xf32>
    %162 = arith.addf %156, %161 : vector<48x128xf32>
    %c0_189 = arith.constant 0 : index
    %c0_190 = arith.constant 0 : index
    %163 = vector.load %arg6[%c0_189, %c0_190] : memref<1x128xf32, #tpu.memory_space<vmem>>, vector<1x128xf32>
    %164 = vector.broadcast %163 : vector<1x128xf32> to vector<48x128xf32>
    %165 = arith.addf %162, %164 : vector<48x128xf32>
    %cst_191 = arith.constant 0.000000e+00 : f32
    %166 = vector.broadcast %cst_191 : f32 to vector<48x128xf32>
    %167 = arith.maximumf %165, %166 : vector<48x128xf32>
    %168 = arith.truncf %167 : vector<48x128xf32> to vector<48x128xbf16>
    %c0_192 = arith.constant 0 : index
    %c0_193 = arith.constant 0 : index
    %c0_194 = arith.constant 0 : index
    %c0_195 = arith.constant 0 : index
    %169 = vector.load %arg7[%c0_192, %c0_193, %c0_194, %c0_195] : memref<1x1x48x128xbf16, #tpu.memory_space<vmem>>, vector<1x1x48x128xbf16>
    %170 = vector.shape_cast %169 : vector<1x1x48x128xbf16> to vector<48x128xbf16>
    %171 = vector.shape_cast %168 : vector<48x128xbf16> to vector<1x1x48x128xbf16>
    tpu.vector_store %arg7[%c0_192, %c0_193, %c0_194, %c0_195], %171 {strides = array<i32>} : memref<1x1x48x128xbf16, #tpu.memory_space<vmem>>, vector<1x1x48x128xbf16>,
    return
  }
  func.func @transform_0(%arg0: i32, %arg1: i32) -> (i32, i32, i32, i32) {
    %c0_i32 = arith.constant 0 : i32
    %0 = arith.addi %arg1, %c0_i32 : i32
    %c0_i32_0 = arith.constant 0 : i32
    %c0_i32_1 = arith.constant 0 : i32
    %c0_i32_2 = arith.constant 0 : i32
    return %arg0, %0, %c0_i32_0, %c0_i32_1 : i32, i32, i32, i32
  }
  func.func @transform_1(%arg0: i32, %arg1: i32) -> (i32, i32, i32, i32) {
    %c1_i32 = arith.constant 1 : i32
    %0 = arith.addi %arg1, %c1_i32 : i32
    %c0_i32 = arith.constant 0 : i32
    %c0_i32_0 = arith.constant 0 : i32
    %c0_i32_1 = arith.constant 0 : i32
    return %arg0, %0, %c0_i32, %c0_i32_0 : i32, i32, i32, i32
  }
  func.func @transform_2(%arg0: i32, %arg1: i32) -> (i32, i32, i32, i32) {
    %c2_i32 = arith.constant 2 : i32
    %0 = arith.addi %arg1, %c2_i32 : i32
    %c0_i32 = arith.constant 0 : i32
    %c0_i32_0 = arith.constant 0 : i32
    %c0_i32_1 = arith.constant 0 : i32
    return %arg0, %0, %c0_i32, %c0_i32_0 : i32, i32, i32, i32
  }
  func.func @transform_3(%arg0: i32, %arg1: i32) -> (i32, i32, i32) {
    %c0_i32 = arith.constant 0 : i32
    %c0_i32_0 = arith.constant 0 : i32
    %c0_i32_1 = arith.constant 0 : i32
    %c0_i32_2 = arith.constant 0 : i32
    return %c0_i32, %c0_i32_0, %c0_i32_1 : i32, i32, i32
  }
  func.func @transform_4(%arg0: i32, %arg1: i32) -> (i32, i32) {
    %c0_i32 = arith.constant 0 : i32
    %c0_i32_0 = arith.constant 0 : i32
    %c0_i32_1 = arith.constant 0 : i32
    return %c0_i32, %c0_i32_0 : i32, i32
  }
  func.func @transform_5(%arg0: i32, %arg1: i32) -> (i32, i32, i32, i32) {
    %c0_i32 = arith.constant 0 : i32
    %c0_i32_0 = arith.constant 0 : i32
    %c0_i32_1 = arith.constant 0 : i32
    return %arg0, %arg1, %c0_i32, %c0_i32_0 : i32, i32, i32, i32
  }
}

</mosaic_0001>

<bundles_post_ra>
// kernel: tpu_custom_call.1
= control target key start
LH: loop header
LB: loop body
LE: loop exit
PB: predicated region body
PF: predicated region fallthrough
CT: control target
= control target key end

     0   :  { %10 = vsyncpa [#allocation3], 0  ;;  %s8713_s0 = inlined_call_operand.vmem [shape: bf16[4,8,66,128], index: 0, kind: input, shape index: {}]   ;;  %s8714_s1 = inlined_call_operand.vmem [shape: bf16[4,8,66,128], index: 1, kind: input, shape index: {}]   ;;  %s8715_s2 = inlined_call_operand.vmem [shape: bf16[4,8,66,128], index: 2, kind: input, shape index: {}]   ;;  %s8716_s3 = inlined_call_operand.vmem [shape: bf16[27,128,128], index: 3, kind: input, shape index: {}]   ;;  %s8717_s4 = inlined_call_operand.vmem [shape: f32[1,128], index: 4, kind: input, shape index: {}]   ;;  %s8718_s5 = inlined_call_operand.hbm [shape: bf16[4,6,48,128], index: 5, kind: output, shape index: {}]  }
   0x1   :  { %12 = vsyncpa [#allocation3 + $0x1], 0  ;;  %s7015_s18 = smov 0   ;;  %s7017_s19 = smov 0  }
   0x2   :  { %s7019_s20 = smov 0   ;;  %s7021_s21 = smov 0  }
   0x3   :  { %s7023_s22 = smov 0   ;;  %s7025_s23 = smov 0  }
   0x4   :  { %s7027_s24 = smov 0   ;;  %s7029_s25 = smov 0  }
   0x5 LB: > { %s4706_s26 = sadd.s32 4294967295, %s6978_s25   ;;  %s4707_s27 = sadd.s32 4294967294, %s6978_s25   ;;  %s6978_s25 = sphi %s7029_s25, %s18_s25   ;;  %s6974_s24 = sphi %s7027_s24, %s8728_s24   ;;  %s6970_s23 = sphi %s7025_s23, %s8727_s23   ;;  %s6966_s22 = sphi %s7023_s22, %s8726_s22   ;;  %s6962_s21 = sphi %s7021_s21, %s8725_s21   ;;  %s6958_s20 = sphi %s7019_s20, %s8724_s20   ;;  %s6954_s19 = sphi %s7017_s19, %s8723_s19   ;;  %s6950_s18 = sphi %s7015_s18, %s8722_s18  }
   0x6   : > { %s27_s28 = sadd.s32 1, %s6970_s23  ;;  %s30_s29 = sadd.s32 1, %s6974_s24 }
   0x7   : > { %p28_p0 = scmp.ge.s32.totalorder %s27_s28, 6  ;;  %p179_p1 = scmp.ne.s32.totalorder %s6958_s20, %s6954_s19 }
   0x8   : > { %p180_p2 = scmp.eq.s32.totalorder %s4706_s26, 23  ;;  %p185_p5 = scmp.ne.s32.totalorder %s6954_s19, %s6950_s18 }
   0x9   : > { %s8730_s28 = smov (%p28_p0, %s27_s28), 0  ;;  %s8732_s29 = smov (!%p28_p0, %s30_s29), %s6974_s24 }
   0xa   : > { %s165_s30 = ssub.s32 %s6970_s23, %s8730_s28  ;;  %p7066_p3 = por %p180_p2, %p179_p1 }
   0xb   : > { %p32_p4 = scmp.ge.s32.totalorder %s8732_s29, 4  ;;  %p186_p6 = scmp.eq.s32.totalorder %s4707_s27, 23 }
   0xc   : > { %p4710_p7 = scmp.ge.s32.totalorder %s6978_s25, 1  ;;  %p250_p9 = scmp.lt.s32.totalorder %s6978_s25, 25 }
   0xd   : > { %s8734_s29 = smov (%p32_p4, %s8732_s29), 0  ;;  %p7075_p8 = por %p186_p6, %p185_p5 }
   0xe   : > { %s164_s8 = ssub.s32 %s6974_s24, %s8734_s29  ;;  %s169_s9 = sadd.s32 1, %s6958_s20 }
   0xf   : > { %s166_s10 = sor.u32 %s165_s30, %s164_s8  ;;  %p251_p10 = pnand %p4710_p7, %p250_p9 }
  0x10   : > { %p167_p11 = scmp.eq.s32.totalorder %s166_s10, 0  ;;  %v6599_v0 = vld [vmem:[%s8716_s3 + $0x40] sm:$0xff] (!%p251_p10)   ;;  %v6980_v1 = vmov (!%p251_p10), 0.0   ;;  %v6601_v3 = vld [vmem:[%s8716_s3 + $0x48] sm:$0xff] (!%p251_p10)   ;;  %vm6981_vm0 = vmmov (!%p251_p10), 0   ;;  %p302_p12 = scmp.lt.s32.totalorder (!%p251_p10), %s6966_s22, 3 }
  0x11   : > { %254 = sbr.rel (%p251_p10) target bundleno = 712 (0x2c8), region = 40  ;;  %5745 = vmatprep.subr.bf16.mxu0 (!%p251_p10), %v6980_v1  ;;  %5773 = vmatprep.subr.bf16.mxu1 (!%p251_p10), %v6980_v1  ;;  %v6600_v2 = vld [vmem:[%s8716_s3] sm:$0xff] (!%p251_p10)   ;;  %v6602_v4 = vld [vmem:[%s8716_s3 + $0x8] sm:$0xff] (!%p251_p10)   ;;  %p304_p13 = scmp.lt.s32.totalorder (!%p251_p10), %s6962_s21, 7  ;;  %v6603_v5 = vld [vmem:[%s8716_s3 + $0x50] sm:$0xff] (!%p251_p10)   ;;  %vm658_vm2 = vcmask (!%p251_p10), 1046528  }
  0x12   : > { %s7084_s11 = scalar_select %p167_p11, %s6958_s20, %s169_s9  }
  0x13   : > { %5746 = vmatpush3.bf16.msra.mxu0 (!%p251_p10), %v6599_v0  ;;  %5761 = vmatprep.mubr.msk.bf16.mxu0 (!%p251_p10), %vm6981_vm0, %v6980_v1  ;;  %v6604_v6 = vld [vmem:[%s8716_s3 + $0x10] sm:$0xff] (!%p251_p10)   ;;  %v6605_v7 = vld [vmem:[%s8716_s3 + $0x58] sm:$0xff] (!%p251_p10)   ;;  %v6607_v9 = vld [vmem:[%s8716_s3 + $0x60] sm:$0xff] (!%p251_p10)   ;;  %vm392_vm1 = vsmask.f32 (!%p251_p10), 7424  ;;  %s6982_s26 = smov (!%p251_p10), [#allocation2]  }
  0x14   : > { %5774 = vmatpush3.bf16.msra.mxu1 (!%p251_p10), %v6600_v2  ;;  %5747 = vmatprep.subr.bf16.mxu0 (!%p251_p10), %v6980_v1  ;;  %v6606_v8 = vld [vmem:[%s8716_s3 + $0x18] sm:$0xff] (!%p251_p10)   ;;  %v6608_v10 = vld [vmem:[%s8716_s3 + $0x20] sm:$0xff] (!%p251_p10)   ;;  %v6609_v16 = vld [vmem:[%s8716_s3 + $0x68] sm:$0xff] (!%p251_p10)  }
  0x15   : > { %5775 = vmatprep.subr.bf16.mxu1 (!%p251_p10), %v6980_v1  ;;  %5789 = vmatprep.mubr.msk.bf16.mxu1 (!%p251_p10), %vm6981_vm0, %v6980_v1  ;;  %v6610_v18 = vld [vmem:[%s8716_s3 + $0x28] sm:$0xff] (!%p251_p10)   ;;  %v6611_v20 = vld [vmem:[%s8716_s3 + $0x70] sm:$0xff] (!%p251_p10)   ;;  %v6613_v25 = vld [vmem:[%s8716_s3 + $0x78] sm:$0xff] (!%p251_p10)  }
  0x16   : > { %v6612_v21 = vld [vmem:[%s8716_s3 + $0x30] sm:$0xff] (!%p251_p10)   ;;  %v6614_v26 = vld [vmem:[%s8716_s3 + $0x38] sm:$0xff] (!%p251_p10)   ;;  %v6617_v32 = vld [vmem:[%s8716_s3 + $0x80] sm:$0xff] (!%p251_p10)  }
  0x17   : > { %5748 = vmatpush3.bf16.msra.mxu0 (!%p251_p10), %v6601_v3  ;;  %v6618_v36 = vld [vmem:[%s8716_s3 + $0xc0] sm:$0xff] (!%p251_p10)   ;;  %v6619_v38 = vld [vmem:[%s8716_s3 + $0x88] sm:$0xff] (!%p251_p10)   ;;  %v6621_v42 = vld [vmem:[%s8716_s3 + $0x90] sm:$0xff] (!%p251_p10)  }
  0x18   : > { %s303_s30 = scalar_select %p302_p12, %s6966_s22, 3  ;;  %5776 = vmatpush3.bf16.msra.mxu1 %v6602_v4  ;;  %5749 = vmatprep.subr.bf16.mxu0 %v6980_v1  ;;  %v6620_v41 = vld [vmem:[%s8716_s3 + $0xc8] sm:$0xff]   ;;  %v6622_v46 = vld [vmem:[%s8716_s3 + $0xd0] sm:$0xff]   ;;  %v6623_v47 = vld [vmem:[%s8716_s3 + $0x98] sm:$0xff]  }
  0x19   : > { %s305_s8 = scalar_select %p304_p13, %s6962_s21, 7  ;;  %5777 = vmatprep.subr.bf16.mxu1 %v6980_v1  ;;  %v6624_v50 = vld [vmem:[%s8716_s3 + $0xd8] sm:$0xff]   ;;  %v6626_v51 = vld [vmem:[%s8716_s3 + $0xa0] sm:$0xff]   ;;  %v6628_v54 = vld [vmem:[%s8716_s3 + $0xa8] sm:$0xff]  }
  0x1a   : > { %s7113_s12 = smul.u32 72, %s303_s30  ;;  %v6627_v53 = vld [vmem:[%s8716_s3 + $0xe0] sm:$0xff]   ;;  %v6629_v55 = vld [vmem:[%s8716_s3 + $0xe8] sm:$0xff]   ;;  %v6631_v57 = vld [vmem:[%s8716_s3 + $0xb0] sm:$0xff]   ;;  %s311_s30 = sadd.s32 1, %s6962_s21 }
  0x1b   : > { %s6518_s15 = smul.u32 9, %s305_s8  ;;  %5750 = vmatpush3.bf16.msra.mxu0 %v6603_v5  ;;  %v6632_v59 = vld [vmem:[%s8716_s3 + $0xf0] sm:$0xff]   ;;  %v6633_v61 = vld [vmem:[%s8716_s3 + $0xb8] sm:$0xff]   ;;  %v6637_v3 = vld [vmem:[%s8716_s3 + $0x100] sm:$0xff]   ;;  %p7318_p0 = scmp.lt.s32.totalorder %s311_s30, 7 }
  0x1c   : > { %5778 = vmatpush3.bf16.msra.mxu1 %v6604_v6  ;;  %5751 = vmatprep.subr.bf16.mxu0 %v6980_v1  ;;  %v6634_v63 = vld [vmem:[%s8716_s3 + $0xf8] sm:$0xff]   ;;  %v6638_v4 = vld [vmem:[%s8716_s3 + $0x140] sm:$0xff]   ;;  %v6639_v5 = vld [vmem:[%s8716_s3 + $0x108] sm:$0xff]   ;;  %s6523_s8 = smul.u32 36, %s6966_s22 }
  0x1d   : > { %s308_s16 = sadd.s32 %s7113_s12, %s6518_s15  ;;  %5779 = vmatprep.subr.bf16.mxu1 %v6980_v1  ;;  %v6640_v6 = vld [vmem:[%s8716_s3 + $0x148] sm:$0xff]   ;;  %s8736_s30 = smov (!%p7318_p0, %s311_s30), 7 }
  0x1e   : > { %s4711_s27 = sshll.u32 %s308_s16, 2  ;;  %s6520_s15 = smul.u32 9, %s8736_s30 }
  0x1f   : > { %s7132_s13 = scalar_lea.vmem %s8713_s0, %s4711_s27  ;;  %5752 = vmatpush3.bf16.msra.mxu0 %v6605_v7  ;;  %s322_s30 = sadd.s32 2, %s6962_s21 }
  0x20   : > { %5780 = vmatpush3.bf16.msra.mxu1 %v6606_v8  ;;  %5753 = vmatprep.subr.bf16.mxu0 %v6980_v1  ;;  %v334_v11 = vld [vmem:[%s7132_s13] sm:$0xf]  ;;  %v7144_v12 = vld [vmem:[%s7132_s13 + $0x4] sm:$0xf]  ;;  %v7147_v13 = vld [vmem:[%s7132_s13 + $0x8] sm:$0xf]  ;;  %s318_s14 = sadd.s32 %s6520_s15, %s7113_s12 }
  0x21   : > { %5781 = vmatprep.subr.bf16.mxu1 %v6980_v1  ;;  %v7150_v14 = vld [vmem:[%s7132_s13 + $0xc] sm:$0xf]  ;;  %v4730_v15 = vcombine.low %v334_v11, %v7144_v12  ;;  %v7181_v29 = vld [vmem:[%s7132_s13 + $0x10] sm:$0xf]  ;;  %v7184_v30 = vld [vmem:[%s7132_s13 + $0x14] sm:$0xf]  ;;  %v4791_v2 = vcombine.low %v7144_v12, %v7147_v13 }
  0x22   : > { %v7158_v17 = vcombine.low %v7147_v13, %v7150_v14  ;;  %v7189_v31 = vcombine.low %v7181_v29, %v7184_v30  ;;  %v7204_v37 = vld [vmem:[%s7132_s13 + $0x18] ss:$0 sps:$4 sm:$0x11]   ;;  %v637_v56 = vld [vmem:[%s7132_s13] sm:$0xe]  ;;  %v6642_v11 = vld [vmem:[%s8716_s3 + $0x150] sm:$0xff]  }
  0x23   : > { %5754 = vmatpush3.bf16.msra.mxu0 %v6607_v9  ;;  %v396_v19 = vshll.u32 %v4730_v15, 16  ;;  %v394_v22 = vshrl.u32 %v4730_v15, 16  ;;  %v417_v45 = vshll.u32 %v7204_v37, 16  ;;  %v4766_v58 = vcombine.low %v637_v56, %v7144_v12  ;;  %v6641_v9 = vld [vmem:[%s8716_s3 + $0x110] sm:$0xff]   ;;  %v6644_v12 = vld [vmem:[%s8716_s3 + $0x118] sm:$0xff]   ;;  %s4712_s16 = sshll.u32 %s318_s14, 2 }
  0x24   : > { %5782 = vmatpush3.bf16.msra.mxu1 %v6608_v10  ;;  %5755 = vmatprep.subr.bf16.mxu0 %v6980_v1  ;;  %v401_v24 = vshll.u32 %v7158_v17, 16  ;;  %v405_v34 = vshrl.u32 %v7158_v17, 16  ;;  %v409_v35 = vshll.u32 %v7189_v31, 16  ;;  %v413_v44 = vshrl.u32 %v7189_v31, 16  ;;  %s7412_s10 = scalar_lea.vmem %s8714_s1, %s4712_s16  ;;  %p325_p1 = scmp.lt.s32.totalorder %s322_s30, 7 }
  0x25   : > { %5783 = vmatprep.subr.bf16.mxu1 %v6980_v1  ;;  %v398_v23 = vrot.slane %v396_v19, 1  ;;  %v419_v49 = vrot.slane %v417_v45, 1  ;;  %v660_v60 = vrot.slane %v7158_v17, 1  ;;  %v659_v62 = vrot.slane %v4766_v58, 1  ;;  %v6647_v19 = vld [vmem:[%s8716_s3 + $0x160] sm:$0xff]   ;;  %s299_s27 = sand.u32 1, %s6954_s19  }
  0x26   : > { %v403_v28 = vrot.slane %v401_v24, 1  ;;  %v411_v40 = vrot.slane %v409_v35, 1  ;;  %v662_v7 = vrot.slane %v7189_v31, 1  ;;  %v4792_v10 = vcombine.low %v7150_v14, %v7181_v29  ;;  %v6645_v14 = vld [vmem:[%s8716_s3 + $0x158] sm:$0xff]   ;;  %v7358_v24 = vld [vmem:[%s7132_s13 + $0x10] sm:$0xf] }
  0x27   : > { %5756 = vmatpush3.bf16.msra.mxu0 %v6609_v16  ;;  %v399_v27 = vor.u32 %v398_v23, %v394_v22  ;;  %v661_v0 = vsel %vm658_vm2, %v659_v62, %v660_v60  ;;  %v664_v13 = vrot.slane %v7204_v37, 1  ;;  %v7332_v16 = vld [vmem:[%s7132_s13 + $0x8] sm:$0xf]  ;;  %v7355_v23 = vld [vmem:[%s7132_s13 + $0xc] sm:$0xf]  ;;  %v6658_v45 = vld [vmem:[%s8716_s3 + $0x180] sm:$0xff]  }
  0x28   : > { %5784 = vmatpush3.bf16.msra.mxu1 %v6610_v18  ;;  %5757 = vmatprep.subr.bf16.mxu0 %v6980_v1  ;;  %v407_v39 = vor.u32 %v405_v34, %v403_v28  ;;  %v415_v48 = vor.u32 %v413_v44, %v411_v40  ;;  %v663_v8 = vsel %vm658_vm2, %v660_v60, %v662_v7  ;;  %v6646_v18 = vld [vmem:[%s8716_s3 + $0x120] sm:$0xff]   ;;  %v7389_v35 = vld [vmem:[%s7132_s13 + $0x14] sm:$0xf]  ;;  %s8738_s30 = smov (!%p325_p1, %s322_s30), 7 }
  0x29   : > { %5785 = vmatprep.subr.bf16.mxu1 %v6980_v1  ;;  %v404_v33 = vsel %vm392_vm1, %v399_v27, %v403_v28  ;;  %v6649_v27 = vld [vmem:[%s8716_s3 + $0x128] sm:$0xff]   ;;  %v1101_v29 = vld [vmem:[%s7132_s13 + $0x4] sm:$0xe]  ;;  %s6521_s16 = smul.u32 9, %s8738_s30 }
  0x2a   : > { %v412_v43 = vsel %vm392_vm1, %v407_v39, %v411_v40  ;;  %v420_v52 = vsel %vm392_vm1, %v415_v48, %v419_v49  ;;  %v6650_v28 = vld [vmem:[%s8716_s3 + $0x168] sm:$0xff]   ;;  %v4846_v37 = vcombine.low %v1101_v29, %v7332_v16  ;;  %v6654_v39 = vld [vmem:[%s8716_s3 + $0x178] sm:$0xff]   ;;  %v4871_v29 = vcombine.low %v7332_v16, %v7355_v23  ;;  %s6517_s30 = smul.u32 24, %s299_s27 }
  0x2b   : > { %5758 = vmatpush3.bf16.msra.mxu0 %v6611_v20  ;;  %s329_s9 = sadd.s32 %s6521_s16, %s7113_s12  ;;  %s8661_s16 = scalar_lea.sflag [#allocation3], %s299_s27 }
  0x2c   : > { %5786 = vmatpush3.bf16.msra.mxu1 %v6612_v21  ;;  %5759 = vmatprep.subr.bf16.mxu0 %v6980_v1  ;;  %v665_v21 = vsel %vm658_vm2, %v662_v7, %v664_v13  ;;  %v6671_v13 = vld [vmem:[%s8716_s3 + $0x1e8] sm:$0xff]   ;;  %s4713_s17 = sshll.u32 %s329_s9, 2  ;;  %s6522_s9 = smul.u32 6, %s6962_s21 }
  0x2d   : > { %5787 = vmatprep.subr.bf16.mxu1 %v6980_v1  ;;  %s7728_s15 = scalar_lea.vmem %s8715_s2, %s4713_s17  ;;  %s301_s14 = scalar_lea.vmem [#allocation2], %s6517_s30 }
  0x2e   : > { %s4576_s12 = sadd.s32 %s6523_s8, %s6522_s9  ;;  %s6888_s30 = sshll.u32 %s6982_s26, 4  ;;  %s6889_s30 = int_to_ptr.vmem [resolvable:$false] %s6888_s30 }
  0x2f   : > { %5760 = vmatpush3.bf16.msra.mxu0 %v6613_v25  ;;  %v7364_v25 = vcombine.low %v7355_v23, %v7358_v24  ;;  %v6681_v23 = vld [vmem:[%s8716_s3 + $0x208] sm:$0xff]   ;;  %s5422_s21 = sshll.u32 %s4576_s12, 6  ;;  %s6890_s9 = scalar_lea.vmem %s6889_s30, 768 }
  0x30   : > { %5788 = vmatpush3.bf16.msra.mxu1 %v6614_v26  ;;  %5801 = vmatprep.subr.bf16.mxu0 %v6980_v1 }
  0x31   : > { %5829 = vmatprep.subr.bf16.mxu1 %v6980_v1  ;;  %v967_v34 = vshll.u32 %v7364_v25, 16  ;;  %v1123_v44 = vrot.slane %v7364_v25, 1 }
  0x32   : > { %5762 = vmatmul.mubr.bf16.vlgmr.msra.gmra.mrb[0].mxu0 %v404_v33 }
  0x33   : > { %5790 = vmatmul.mubr.bf16.vlgmr.msra.gmra.mrb[0].mxu1 %v4730_v15  ;;  %5802 = vmatpush3.bf16.msra.mxu0 %v6617_v32  ;;  %v917_v15 = vld [vmem:[%s7132_s13 + $0x4] sm:$0xf]  ;;  %v6652_v32 = vld [vmem:[%s8716_s3 + $0x170] sm:$0xff]  }
  0x34   : > { %5830 = vmatpush3.bf16.msra.mxu1 %v6618_v36  ;;  %5803 = vmatprep.subr.bf16.mxu0 %v6980_v1  ;;  %v4818_v20 = vcombine.low %v917_v15, %v7332_v16  ;;  %v7392_v36 = vld [vmem:[%s7132_s13 + $0x18] sm:$0xf]  ;;  %v7528_v16 = vld [vmem:[%s7132_s13 + $0x20] ss:$0 sps:$4 sm:$0x11]  }
  0x35   : > { %5831 = vmatprep.subr.bf16.mxu1 %v6980_v1  ;;  %5793 = vmatprep.mubr.msk.bf16.mxu1 %vm6981_vm0, %v6980_v1 }
  0x36   : > { %5765 = vmatprep.mubr.msk.bf16.mxu0 %vm6981_vm0, %v6980_v1  ;;  %v962_v26 = vshll.u32 %v4818_v20, 16 }
  0x37   : > { %5804 = vmatpush3.bf16.msra.mxu0 %v6619_v38  ;;  %v6653_v38 = vld [vmem:[%s8716_s3 + $0x138] sm:$0xff]  }
  0x38   : > { %5832 = vmatpush3.bf16.msra.mxu1 %v6620_v41  ;;  %5805 = vmatprep.subr.bf16.mxu0 %v6980_v1  ;;  %v964_v33 = vrot.slane %v962_v26, 1  ;;  %v969_v41 = vrot.slane %v967_v34, 1 }
  0x39   : > { %5833 = vmatprep.subr.bf16.mxu1 %v6980_v1 }
  0x3a   : > { %5766 = vmatmul.mubr.bf16.gmra.mrb[4].mxu0 %v412_v43  ;;  %v1122_v43 = vrot.slane %v4846_v37, 1  ;;  %v6682_v37 = vld [vmem:[%s8716_s3 + $0x248] sm:$0xff]  }
  0x3b   : > { %5806 = vmatpush3.bf16.msra.mxu0 %v6621_v42  ;;  %5794 = vmatmul.mubr.bf16.gmra.mrb[4].mxu1 %v7158_v17  ;;  %v780_v17 = vld [vmem:[%s7132_s13 + $0x18] sm:$0xf]  ;;  %v7405_v42 = vcombine.low %v7389_v35, %v7392_v36 }
  0x3c   : > { %5834 = vmatpush3.bf16.msra.mxu1 %v6622_v46  ;;  %5807 = vmatprep.subr.bf16.mxu0 %v6980_v1  ;;  %v4793_v22 = vcombine.low %v7184_v30, %v780_v17  ;;  %v6651_v30 = vld [vmem:[%s8716_s3 + $0x130] sm:$0xff]   ;;  %v1124_v49 = vsel %vm658_vm2, %v1122_v43, %v1123_v44 }
  0x3d   : > { %5835 = vmatprep.subr.bf16.mxu1 %v6980_v1  ;;  %5797 = vmatprep.mubr.msk.bf16.mxu1 %vm6981_vm0, %v6980_v1  ;;  %v975_v48 = vshll.u32 %v7405_v42, 16  ;;  %v1125_v56 = vrot.slane %v7405_v42, 1  ;;  %v6672_v17 = vld [vmem:[%s8716_s3 + $0x1b0] sm:$0xff]  }
  0x3e   : > { %5769 = vmatprep.mubr.msk.bf16.mxu0 %vm6981_vm0, %v6980_v1 }
  0x3f   : > { %5808 = vmatpush3.bf16.msra.mxu0 %v6623_v47  ;;  %v971_v47 = vshrl.u32 %v7364_v25, 16  ;;  %v1126_v62 = vsel %vm658_vm2, %v1123_v44, %v1125_v56  ;;  %v6675_v25 = vld [vmem:[%s8716_s3 + $0x1f8] sm:$0xff]  }
  0x40   : > { %5836 = vmatpush3.bf16.msra.mxu1 %v6624_v50  ;;  %5809 = vmatprep.subr.bf16.mxu0 %v6980_v1  ;;  %v6659_v50 = vld [vmem:[%s8716_s3 + $0x1c0] sm:$0xff]  }
  0x41   : > { %5837 = vmatprep.subr.bf16.mxu1 %v6980_v1 }
  0x42   : > { %5770 = vmatmul.mubr.bf16.gmra.mrb[8].mxu0 %v420_v52  ;;  %v6660_v52 = vld [vmem:[%s8716_s3 + $0x188] sm:$0xff]  }
  0x43   : > { %5810 = vmatpush3.bf16.msra.mxu0 %v6626_v51  ;;  %5798 = vmatmul.mubr.bf16.gmra.mrb[8].mxu1 %v7189_v31  ;;  %v960_v31 = vshrl.u32 %v4818_v20, 16  ;;  %v6667_v51 = vld [vmem:[%s7132_s13 + $0x1c] ss:$0 sps:$4 sm:$0x11]  }
  0x44   : > { %5838 = vmatpush3.bf16.msra.mxu1 %v6627_v53  ;;  %5811 = vmatprep.subr.bf16.mxu0 %v6980_v1  ;;  %v973_v53 = vor.u32 %v971_v47, %v969_v41  ;;  %v983_v60 = vshll.u32 %v6667_v51, 16 }
  0x45   : > { %5839 = vmatprep.subr.bf16.mxu1 %v6980_v1  ;;  %5817 = vmatprep.mubr.msk.bf16.mxu0 %vm6981_vm0, %v6980_v1  ;;  %v965_v40 = vor.u32 %v964_v33, %v960_v31  ;;  %v6680_v31 = vld [vmem:[%s8716_s3 + $0x240] sm:$0xff]  }
  0x46   : > { %5845 = vmatprep.mubr.msk.bf16.mxu1 %vm6981_vm0, %v6980_v1 }
  0x47   : > { %5812 = vmatpush3.bf16.msra.mxu0 %v6628_v54  ;;  %v970_v46 = vsel %vm392_vm1, %v965_v40, %v969_v41  ;;  %v977_v54 = vrot.slane %v975_v48, 1  ;;  %v4872_v40 = vcombine.low %v7358_v24, %v7389_v35  ;;  %v6684_v41 = vld [vmem:[%s8716_s3 + $0x210] sm:$0xff]   ;;  %v1446_v24 = vshll.u32 %v7528_v16, 16  ;;  %v6687_v35 = vld [vmem:[%s8716_s3 + $0x218] sm:$0xff]  }
  0x48   : > { %5840 = vmatpush3.bf16.msra.mxu1 %v6629_v55  ;;  %5813 = vmatprep.subr.bf16.mxu0 %v6980_v1  ;;  %v6661_v55 = vld [vmem:[%s8716_s3 + $0x1c8] sm:$0xff]  }
  0x49   : > { %5841 = vmatprep.subr.bf16.mxu1 %v6980_v1  ;;  %v978_v58 = vsel %vm392_vm1, %v973_v53, %v977_v54  ;;  %v1448_v48 = vrot.slane %v1446_v24, 1  ;;  %v6694_v53 = vld [vmem:[%s8716_s3 + $0x268] sm:$0xff]  }
  0x4b   : > { %5814 = vmatpush3.bf16.msra.mxu0 %v6631_v57  ;;  %v6663_v57 = vld [vmem:[%s8716_s3 + $0x190] sm:$0xff]  }
  0x4c   : > { %5842 = vmatpush3.bf16.msra.mxu1 %v6632_v59  ;;  %5815 = vmatprep.subr.bf16.mxu0 %v6980_v1  ;;  %v979_v59 = vshrl.u32 %v7405_v42, 16  ;;  %v6685_v42 = vld [vmem:[%s8716_s3 + $0x250] sm:$0xff]  }
  0x4d   : > { %5843 = vmatprep.subr.bf16.mxu1 %v6980_v1 }
  0x4f   : > { %5816 = vmatpush3.bf16.msra.mxu0 %v6633_v61  ;;  %v6664_v61 = vld [vmem:[%s8716_s3 + $0x1d0] sm:$0xff]  }
  0x50   : > { %5844 = vmatpush3.bf16.msra.mxu1 %v6634_v63  ;;  %5857 = vmatprep.subr.bf16.mxu0 %v6980_v1  ;;  %v6665_v63 = vld [vmem:[%s8716_s3 + $0x198] sm:$0xff]  }
  0x51   : > { %5885 = vmatprep.subr.bf16.mxu1 %v6980_v1 }
  0x52   : > { %5818 = vmatmul.mubr.bf16.vlgmr.msra.gmra.mrb[12].mxu0 %v661_v0  ;;  %v6666_v0 = vld [vmem:[%s8716_s3 + $0x1d8] sm:$0xff]  }
  0x53   : > { %5846 = vmatmul.mubr.bf16.vlgmr.msra.gmra.mrb[12].mxu1 %v4791_v2  ;;  %5858 = vmatpush3.bf16.msra.mxu0 %v6637_v3  ;;  %v981_v2 = vor.u32 %v979_v59, %v977_v54  ;;  %v985_v3 = vrot.slane %v983_v60, 1  ;;  %v1564_v54 = vld [vmem:[%s7132_s13 + $0x8] sm:$0xe]  ;;  %v6697_v59 = vld [vmem:[%s8716_s3 + $0x238] sm:$0xff]  }
  0x54   : > { %5886 = vmatpush3.bf16.msra.mxu1 %v6638_v4  ;;  %5859 = vmatprep.subr.bf16.mxu0 %v6980_v1  ;;  %v1127_v4 = vrot.slane %v6667_v51, 1  ;;  %v6691_v51 = vld [vmem:[%s8716_s3 + $0x260] sm:$0xff]  }
  0x55   : > { %5887 = vmatprep.subr.bf16.mxu1 %v6980_v1  ;;  %5821 = vmatprep.mubr.msk.bf16.mxu0 %vm6981_vm0, %v6980_v1  ;;  %v986_v7 = vsel %vm392_vm1, %v981_v2, %v985_v3  ;;  %v6702_v2 = vld [vmem:[%s8716_s3 + $0x2c0] sm:$0xff]   ;;  %v6703_v3 = vld [vmem:[%s8716_s3 + $0x288] sm:$0xff]  }
  0x56   : > { %5849 = vmatprep.mubr.msk.bf16.mxu1 %vm6981_vm0, %v6980_v1 }
  0x57   : > { %5860 = vmatpush3.bf16.msra.mxu0 %v6639_v5  ;;  %v1380_v5 = vld [vmem:[%s7132_s13 + $0x8] sm:$0xf] }
  0x58   : > { %5888 = vmatpush3.bf16.msra.mxu1 %v6640_v6  ;;  %5861 = vmatprep.subr.bf16.mxu0 %v6980_v1  ;;  %v7464_v6 = vld [vmem:[%s7132_s13 + $0xc] sm:$0xf] }
  0x59   : > { %5889 = vmatprep.subr.bf16.mxu1 %v6980_v1 }
  0x5a   : > { %5822 = vmatmul.mubr.bf16.gmra.mrb[16].mxu0 %v663_v8  ;;  %v6668_v8 = vld [vmem:[%s8716_s3 + $0x1a0] sm:$0xff]  }
  0x5b   : > { %5862 = vmatpush3.bf16.msra.mxu0 %v6641_v9  ;;  %5850 = vmatmul.mubr.bf16.gmra.mrb[16].mxu1 %v4792_v10  ;;  %v6669_v9 = vld [vmem:[%s8716_s3 + $0x1e0] sm:$0xff]   ;;  %v1128_v10 = vsel %vm658_vm2, %v1125_v56, %v1127_v4  ;;  %v4926_v56 = vcombine.low %v1564_v54, %v7464_v6 }
  0x5c   : > { %5890 = vmatpush3.bf16.msra.mxu1 %v6642_v11  ;;  %5863 = vmatprep.subr.bf16.mxu0 %v6980_v1  ;;  %v4898_v11 = vcombine.low %v1380_v5, %v7464_v6  ;;  %v6704_v5 = vld [vmem:[%s8716_s3 + $0x2c8] sm:$0xff]   ;;  %v6705_v6 = vld [vmem:[%s8716_s3 + $0x290] sm:$0xff]  }
  0x5d   : > { %5891 = vmatprep.subr.bf16.mxu1 %v6980_v1  ;;  %5825 = vmatprep.mubr.msk.bf16.mxu0 %vm6981_vm0, %v6980_v1  ;;  %v1585_v60 = vrot.slane %v4926_v56, 1 }
  0x5e   : > { %5853 = vmatprep.mubr.msk.bf16.mxu1 %vm6981_vm0, %v6980_v1  ;;  %v1425_v15 = vshll.u32 %v4898_v11, 16 }
  0x5f   : > { %5864 = vmatpush3.bf16.msra.mxu0 %v6644_v12  ;;  %v6670_v12 = vld [vmem:[%s8716_s3 + $0x1a8] sm:$0xff]  }
  0x60   : > { %5892 = vmatpush3.bf16.msra.mxu1 %v6645_v14  ;;  %5865 = vmatprep.subr.bf16.mxu0 %v6980_v1  ;;  %v7487_v14 = vld [vmem:[%s7132_s13 + $0x10] sm:$0xff]   ;;  %v1427_v20 = vrot.slane %v1425_v15, 1  ;;  %v6710_v15 = vld [vmem:[%s8716_s3 + $0x2a0] sm:$0xff]  }
  0x61   : > { %5893 = vmatprep.subr.bf16.mxu1 %v6980_v1  ;;  %v1434_v33 = vshrl.u32 %v7487_v14, 16 }
  0x62   : > { %5826 = vmatmul.mubr.bf16.gmra.mrb[20].mxu0 %v665_v21  ;;  %v1430_v21 = vshll.u32 %v7487_v14, 16 }
  0x63   : > { %5866 = vmatpush3.bf16.msra.mxu0 %v6646_v18  ;;  %5854 = vmatmul.mubr.bf16.gmra.mrb[20].mxu1 %v4793_v22  ;;  %v6673_v18 = vld [vmem:[%s8716_s3 + $0x1f0] sm:$0xff]   ;;  %v6674_v22 = vld [vmem:[%s8716_s3 + $0x1b8] sm:$0xff]  }
  0x64   : > { %5894 = vmatpush3.bf16.msra.mxu1 %v6647_v19  ;;  %5867 = vmatprep.subr.bf16.mxu0 %v6980_v1  ;;  %v1423_v19 = vshrl.u32 %v4898_v11, 16  ;;  %v7645_v11 = vld [vmem:[%s7412_s10 + $0x4] sm:$0xf] }
  0x65   : > { %5895 = vmatprep.subr.bf16.mxu1 %v6980_v1  ;;  %5873 = vmatprep.mubr.msk.bf16.mxu0 %vm6981_vm0, %v6980_v1 }
  0x66   : > { %5901 = vmatprep.mubr.msk.bf16.mxu1 %vm6981_vm0, %v6980_v1  ;;  %v1428_v26 = vor.u32 %v1427_v20, %v1423_v19  ;;  %v7670_v19 = vld [vmem:[%s7412_s10 + $0xc] sm:$0xf] }
  0x67   : > { %5868 = vmatpush3.bf16.msra.mxu0 %v6649_v27  ;;  %v1432_v27 = vrot.slane %v1430_v21, 1  ;;  %v6712_v21 = vld [vmem:[%s7412_s10 + $0x10] sm:$0xff]  }
  0x68   : > { %5896 = vmatpush3.bf16.msra.mxu1 %v6650_v28  ;;  %5869 = vmatprep.subr.bf16.mxu0 %v6980_v1  ;;  %v7511_v28 = vld [vmem:[%s7132_s13 + $0x18] sm:$0xff]  }
  0x69   : > { %5897 = vmatprep.subr.bf16.mxu1 %v6980_v1  ;;  %v1438_v34 = vshll.u32 %v7511_v28, 16  ;;  %v1442_v44 = vshrl.u32 %v7511_v28, 16  ;;  %v1588_v4 = vrot.slane %v7511_v28, 1  ;;  %v2042_v28 = vld [vmem:[%s7412_s10] sm:$0xe] }
  0x6b   : > { %5870 = vmatpush3.bf16.msra.mxu0 %v6651_v30  ;;  %v6679_v30 = vld [vmem:[%s8716_s3 + $0x200] sm:$0xff]  }
  0x6c   : > { %5898 = vmatpush3.bf16.msra.mxu1 %v6652_v32  ;;  %5871 = vmatprep.subr.bf16.mxu0 %v6980_v1  ;;  %v1433_v32 = vsel %vm392_vm1, %v1428_v26, %v1432_v27 }
  0x6d   : > { %5899 = vmatprep.subr.bf16.mxu1 %v6980_v1 }
  0x6f   : > { %5872 = vmatpush3.bf16.msra.mxu0 %v6653_v38  ;;  %v1436_v38 = vor.u32 %v1434_v33, %v1432_v27  ;;  %v6713_v27 = vld [vmem:[%s8716_s3 + $0x2a8] sm:$0xff]  }
  0x70   : > { %5900 = vmatpush3.bf16.msra.mxu1 %v6654_v39  ;;  %5913 = vmatprep.subr.bf16.mxu0 %v6980_v1  ;;  %v1440_v39 = vrot.slane %v1438_v34, 1  ;;  %v5006_v34 = vcombine.low %v2042_v28, %v7645_v11  ;;  %v6738_v28 = vld [vmem:[%s8716_s3 + $0x338] sm:$0xff]  }
  0x71   : > { %5941 = vmatprep.subr.bf16.mxu1 %v6980_v1 }
  0x72   : > { %5874 = vmatmul.mubr.bf16.vlgmr.msra.gmra.mrb[24].mxu0 %v970_v46  ;;  %v1441_v43 = vsel %vm392_vm1, %v1436_v38, %v1440_v39  ;;  %v6688_v46 = vld [vmem:[%s8716_s3 + $0x258] sm:$0xff]   ;;  %v1444_v47 = vor.u32 %v1442_v44, %v1440_v39 }
  0x73   : > { %5902 = vmatmul.mubr.bf16.vlgmr.msra.gmra.mrb[24].mxu1 %v1124_v49  ;;  %5914 = vmatpush3.bf16.msra.mxu0 %v6658_v45  ;;  %v1243_v45 = vld [vmem:[%s7132_s13 + $0x1c] sm:$0xf] }
  0x74   : > { %5942 = vmatpush3.bf16.msra.mxu1 %v6659_v50  ;;  %5915 = vmatprep.subr.bf16.mxu0 %v6980_v1  ;;  %v4873_v49 = vcombine.low %v7392_v36, %v1243_v45  ;;  %v6690_v50 = vld [vmem:[%s8716_s3 + $0x220] sm:$0xff]   ;;  %v6693_v36 = vld [vmem:[%s8716_s3 + $0x228] sm:$0xff]   ;;  %v6717_v38 = vld [vmem:[%s8716_s3 + $0x2b8] sm:$0xff]  }
  0x75   : > { %5943 = vmatprep.subr.bf16.mxu1 %v6980_v1  ;;  %5877 = vmatprep.mubr.msk.bf16.mxu0 %vm6981_vm0, %v6980_v1  ;;  %v6718_v39 = vld [vmem:[%s8716_s3 + $0x2f8] sm:$0xff]   ;;  %v6722_v45 = vld [vmem:[%s8716_s3 + $0x300] sm:$0xff]  }
  0x76   : > { %5905 = vmatprep.mubr.msk.bf16.mxu1 %vm6981_vm0, %v6980_v1 }
  0x77   : > { %5916 = vmatpush3.bf16.msra.mxu0 %v6660_v52  ;;  %v1449_v52 = vsel %vm392_vm1, %v1444_v47, %v1448_v48  ;;  %v6731_v48 = vld [vmem:[%s7412_s10 + $0x18] ss:$0 sps:$4 sm:$0x11]  }
  0x78   : > { %5944 = vmatpush3.bf16.msra.mxu1 %v6661_v55  ;;  %5917 = vmatprep.subr.bf16.mxu0 %v6980_v1  ;;  %v6695_v55 = vld [vmem:[%s8716_s3 + $0x230] sm:$0xff]   ;;  %v1924_v54 = vshll.u32 %v6731_v48, 16 }
  0x79   : > { %5945 = vmatprep.subr.bf16.mxu1 %v6980_v1 }
  0x7a   : > { %5878 = vmatmul.mubr.bf16.gmra.mrb[28].mxu0 %v978_v58  ;;  %v1586_v58 = vrot.slane %v7487_v14, 1  ;;  %v6709_v14 = vld [vmem:[%s8716_s3 + $0x2d8] sm:$0xff]  }
  0x7b   : > { %5918 = vmatpush3.bf16.msra.mxu0 %v6663_v57  ;;  %5906 = vmatmul.mubr.bf16.gmra.mrb[28].mxu1 %v1126_v62  ;;  %v6696_v57 = vld [vmem:[%s8716_s3 + $0x270] sm:$0xff]   ;;  %v6700_v62 = vld [vmem:[%s7412_s10] sm:$0xff]  }
  0x7c   : > { %5946 = vmatpush3.bf16.msra.mxu1 %v6664_v61  ;;  %5919 = vmatprep.subr.bf16.mxu0 %v6980_v1  ;;  %v6698_v61 = vld [vmem:[%s8716_s3 + $0x278] sm:$0xff]  }
  0x7d   : > { %5947 = vmatprep.subr.bf16.mxu1 %v6980_v1  ;;  %5881 = vmatprep.mubr.msk.bf16.mxu0 %vm6981_vm0, %v6980_v1 }
  0x7e   : > { %5909 = vmatprep.mubr.msk.bf16.mxu1 %vm6981_vm0, %v6980_v1 }
  0x7f   : > { %5920 = vmatpush3.bf16.msra.mxu0 %v6665_v63  ;;  %v1587_v63 = vsel %vm658_vm2, %v1585_v60, %v1586_v58  ;;  %v6728_v60 = vld [vmem:[%s8716_s3 + $0x350] sm:$0xff]  }
  0x80   : > { %5948 = vmatpush3.bf16.msra.mxu1 %v6666_v0  ;;  %5921 = vmatprep.subr.bf16.mxu0 %v6980_v1  ;;  %v6701_v0 = vld [vmem:[%s8716_s3 + $0x280] sm:$0xff]  }
  0x81   : > { %5949 = vmatprep.subr.bf16.mxu1 %v6980_v1 }
  0x82   : > { %5882 = vmatmul.mubr.bf16.gmra.mrb[32].mxu0 %v986_v7  ;;  %v1589_v7 = vsel %vm658_vm2, %v1586_v58, %v1588_v4  ;;  %v2321_v58 = vld [vmem:[%s7412_s10 + $0x4] sm:$0xf] }
  0x83   : > { %5922 = vmatpush3.bf16.msra.mxu0 %v6668_v8  ;;  %5910 = vmatmul.mubr.bf16.gmra.mrb[32].mxu1 %v1128_v10  ;;  %v6707_v8 = vld [vmem:[%s7412_s10 + $0x8] sm:$0xff]   ;;  %v1858_v10 = vld [vmem:[%s7412_s10] sm:$0xf] }
  0x84   : > { %5950 = vmatpush3.bf16.msra.mxu1 %v6669_v9  ;;  %5923 = vmatprep.subr.bf16.mxu0 %v6980_v1  ;;  %v6706_v9 = vld [vmem:[%s8716_s3 + $0x2d0] sm:$0xff]  }
  0x85   : > { %5951 = vmatprep.subr.bf16.mxu1 %v6980_v1  ;;  %5929 = vmatprep.mubr.msk.bf16.mxu0 %vm6981_vm0, %v6980_v1 }
  0x86   : > { %5957 = vmatprep.mubr.msk.bf16.mxu1 %vm6981_vm0, %v6980_v1 }
  0x87   : > { %5924 = vmatpush3.bf16.msra.mxu0 %v6670_v12  ;;  %v6708_v12 = vld [vmem:[%s8716_s3 + $0x298] sm:$0xff]  }
  0x88   : > { %5952 = vmatpush3.bf16.msra.mxu1 %v6671_v13  ;;  %5925 = vmatprep.subr.bf16.mxu0 %v6980_v1  ;;  %v1590_v13 = vrot.slane %v7528_v16, 1  ;;  %v7704_v16 = vld [vmem:[%s7412_s10 + $0x10] sm:$0xf] }
  0x89   : > { %5953 = vmatprep.subr.bf16.mxu1 %v6980_v1 }
  0x8a   : > { %v1591_v20 = vsel %vm658_vm2, %v1588_v4, %v1590_v13 }
  0x8b   : > { %5926 = vmatpush3.bf16.msra.mxu0 %v6672_v17  ;;  %v4978_v17 = vcombine.low %v1858_v10, %v7645_v11 }
  0x8c   : > { %5954 = vmatpush3.bf16.msra.mxu1 %v6673_v18  ;;  %5927 = vmatprep.subr.bf16.mxu0 %v6980_v1  ;;  %v7667_v18 = vld [vmem:[%s7412_s10 + $0x8] sm:$0xf] }
  0x8d   : > { %5955 = vmatprep.subr.bf16.mxu1 %v6980_v1  ;;  %v1903_v26 = vshll.u32 %v4978_v17, 16 }
  0x8f   : > { %5928 = vmatpush3.bf16.msra.mxu0 %v6674_v22  ;;  %v6711_v22 = vld [vmem:[%s8716_s3 + $0x2e0] sm:$0xff]  }
  0x90   : > { %5956 = vmatpush3.bf16.msra.mxu1 %v6675_v25  ;;  %5969 = vmatprep.subr.bf16.mxu0 %v6980_v1  ;;  %v7681_v25 = vcombine.low %v7667_v18, %v7670_v19 }
  0x91   : > { %5997 = vmatprep.subr.bf16.mxu1 %v6980_v1 }
  0x92   : > { %5930 = vmatmul.mubr.bf16.vlgmr.msra.gmra.mrb[36].mxu0 %v4871_v29  ;;  %v6714_v29 = vld [vmem:[%s8716_s3 + $0x2e8] sm:$0xff]   ;;  %v1908_v33 = vshll.u32 %v7681_v25, 16  ;;  %v2064_v44 = vrot.slane %v7681_v25, 1  ;;  %v1912_v47 = vshrl.u32 %v7681_v25, 16  ;;  %v6737_v25 = vld [vmem:[%s8716_s3 + $0x370] sm:$0xff]  }
  0x93   : > { %5958 = vmatmul.mubr.bf16.vlgmr.msra.gmra.mrb[36].mxu1 %v1433_v32  ;;  %5970 = vmatpush3.bf16.msra.mxu0 %v6679_v30  ;;  %v6715_v30 = vld [vmem:[%s8716_s3 + $0x2b0] sm:$0xff]   ;;  %v1905_v32 = vrot.slane %v1903_v26, 1 }
  0x94   : > { %5998 = vmatpush3.bf16.msra.mxu1 %v6680_v31  ;;  %5971 = vmatprep.subr.bf16.mxu0 %v6980_v1  ;;  %v1901_v31 = vshrl.u32 %v4978_v17, 16  ;;  %v7826_v26 = vld [vmem:[%s7412_s10 + $0x14] sm:$0xf] }
  0x95   : > { %5999 = vmatprep.subr.bf16.mxu1 %v6980_v1  ;;  %5933 = vmatprep.mubr.msk.bf16.mxu0 %vm6981_vm0, %v6980_v1 }
  0x96   : > { %5961 = vmatprep.mubr.msk.bf16.mxu1 %vm6981_vm0, %v6980_v1 }
  0x97   : > { %5972 = vmatpush3.bf16.msra.mxu0 %v6681_v23  ;;  %v7707_v23 = vld [vmem:[%s7412_s10 + $0x14] sm:$0xf] }
  0x98   : > { %6000 = vmatpush3.bf16.msra.mxu1 %v6682_v37  ;;  %5973 = vmatprep.subr.bf16.mxu0 %v6980_v1  ;;  %v6716_v37 = vld [vmem:[%s8716_s3 + $0x2f0] sm:$0xff]  }
  0x99   : > { %6001 = vmatprep.subr.bf16.mxu1 %v6980_v1 }
  0x9a   : > { %5934 = vmatmul.mubr.bf16.gmra.mrb[40].mxu0 %v4872_v40  ;;  %v2063_v40 = vrot.slane %v5006_v34, 1  ;;  %v6743_v34 = vld [vmem:[%s8716_s3 + $0x380] sm:$0xff]  }
  0x9b   : > { %5974 = vmatpush3.bf16.msra.mxu0 %v6684_v41  ;;  %5962 = vmatmul.mubr.bf16.gmra.mrb[40].mxu1 %v1441_v43  ;;  %v7722_v41 = vcombine.low %v7704_v16, %v7707_v23  ;;  %v1910_v43 = vrot.slane %v1908_v33, 1  ;;  %v5031_v33 = vcombine.low %v7645_v11, %v7667_v18  ;;  %v6745_v11 = vld [vmem:[%s8716_s3 + $0x388] sm:$0xff]  }
  0x9c   : > { %6002 = vmatpush3.bf16.msra.mxu1 %v6685_v42  ;;  %5975 = vmatprep.subr.bf16.mxu0 %v6980_v1  ;;  %v1906_v42 = vor.u32 %v1905_v32, %v1901_v31  ;;  %v6746_v18 = vld [vmem:[%s8716_s3 + $0x3c8] sm:$0xff]  }
  0x9d   : > { %6003 = vmatprep.subr.bf16.mxu1 %v6980_v1  ;;  %5937 = vmatprep.mubr.msk.bf16.mxu0 %vm6981_vm0, %v6980_v1  ;;  %v1916_v24 = vshll.u32 %v7722_v41, 16  ;;  %v1920_v56 = vshrl.u32 %v7722_v41, 16 }
  0x9e   : > { %5965 = vmatprep.mubr.msk.bf16.mxu1 %vm6981_vm0, %v6980_v1 }
  0x9f   : > { %5976 = vmatpush3.bf16.msra.mxu0 %v6687_v35  ;;  %v1911_v35 = vsel %vm392_vm1, %v1906_v42, %v1910_v43  ;;  %v7865_v42 = vld [vmem:[%s7412_s10 + $0x1c] ss:$0 sps:$4 sm:$0x11]  }
  0xa0   : > { %6004 = vmatpush3.bf16.msra.mxu1 %v6688_v46  ;;  %5977 = vmatprep.subr.bf16.mxu0 %v6980_v1  ;;  %v6723_v46 = vld [vmem:[%s8716_s3 + $0x340] sm:$0xff]  }
  0xa1   : > { %6005 = vmatprep.subr.bf16.mxu1 %v6980_v1 }
  0xa2   : > { %5938 = vmatmul.mubr.bf16.gmra.mrb[44].mxu0 %v4873_v49  ;;  %v2065_v49 = vsel %vm658_vm2, %v2063_v40, %v2064_v44 }
  0xa3   : > { %5978 = vmatpush3.bf16.msra.mxu0 %v6690_v50  ;;  %5966 = vmatmul.mubr.bf16.gmra.mrb[44].mxu1 %v1449_v52  ;;  %v6724_v50 = vld [vmem:[%s8716_s3 + $0x308] sm:$0xff]   ;;  %v1918_v52 = vrot.slane %v1916_v24, 1  ;;  %v6748_v24 = vld [vmem:[%s8716_s3 + $0x390] sm:$0xff]  }
  0xa4   : > { %6006 = vmatpush3.bf16.msra.mxu1 %v6691_v51  ;;  %5979 = vmatprep.subr.bf16.mxu0 %v6980_v1  ;;  %v6725_v51 = vld [vmem:[%s8716_s3 + $0x348] sm:$0xff]  }
  0xa5   : > { %6007 = vmatprep.subr.bf16.mxu1 %v6980_v1  ;;  %5985 = vmatprep.mubr.msk.bf16.mxu0 %vm6981_vm0, %v6980_v1  ;;  %v1922_v4 = vor.u32 %v1920_v56, %v1918_v52 }
  0xa6   : > { %6013 = vmatprep.mubr.msk.bf16.mxu1 %vm6981_vm0, %v6980_v1 }
  0xa7   : > { %5980 = vmatpush3.bf16.msra.mxu0 %v6693_v36  ;;  %v1914_v36 = vor.u32 %v1912_v47, %v1910_v43  ;;  %v6752_v47 = vld [vmem:[%s8716_s3 + $0x3d8] sm:$0xff]  }
  0xa8   : > { %6008 = vmatpush3.bf16.msra.mxu1 %v6694_v53  ;;  %5981 = vmatprep.subr.bf16.mxu0 %v6980_v1  ;;  %v2066_v53 = vrot.slane %v7722_v41, 1 }
  0xa9   : > { %6009 = vmatprep.subr.bf16.mxu1 %v6980_v1 }
  0xab   : > { %5982 = vmatpush3.bf16.msra.mxu0 %v6695_v55  ;;  %v6727_v55 = vld [vmem:[%s8716_s3 + $0x310] sm:$0xff]  }
  0xac   : > { %6010 = vmatpush3.bf16.msra.mxu1 %v6696_v57  ;;  %5983 = vmatprep.subr.bf16.mxu0 %v6980_v1  ;;  %v1919_v57 = vsel %vm392_vm1, %v1914_v36, %v1918_v52  ;;  %v6754_v52 = vld [vmem:[%s8716_s3 + $0x3a0] sm:$0xff]  }
  0xad   : > { %6011 = vmatprep.subr.bf16.mxu1 %v6980_v1  ;;  %v6755_v36 = vld [vmem:[%s8716_s3 + $0x3e0] sm:$0xff]  }
  0xaf   : > { %5984 = vmatpush3.bf16.msra.mxu0 %v6697_v59  ;;  %v7765_v59 = vld [vmem:[%s7412_s10 + $0x8] sm:$0xf] }
  0xb0   : > { %6012 = vmatpush3.bf16.msra.mxu1 %v6698_v61  ;;  %6025 = vmatprep.subr.bf16.mxu0 %v6980_v1  ;;  %v2067_v61 = vsel %vm658_vm2, %v2064_v44, %v2066_v53  ;;  %v5032_v44 = vcombine.low %v7670_v19, %v7704_v16  ;;  %v6751_v16 = vld [vmem:[%s8716_s3 + $0x398] sm:$0xff]  }
  0xb1   : > { %6053 = vmatprep.subr.bf16.mxu1 %v6980_v1 }
  0xb2   : > { %5986 = vmatmul.mubr.bf16.vlgmr.msra.gmra.mrb[48].mxu0 %v1587_v63  ;;  %v1926_v63 = vrot.slane %v1924_v54, 1  ;;  %v6758_v54 = vld [vmem:[%s8716_s3 + $0x3e8] sm:$0xff]  }
  0xb3   : > { %6014 = vmatmul.mubr.bf16.vlgmr.msra.gmra.mrb[48].mxu1 %v6700_v62  ;;  %6026 = vmatpush3.bf16.msra.mxu0 %v6701_v0  ;;  %v6729_v62 = vld [vmem:[%s8716_s3 + $0x318] sm:$0xff]   ;;  %v7777_v0 = vld [vmem:[%s7412_s10 + $0xc] sm:$0xf] }
  0xb4   : > { %6054 = vmatpush3.bf16.msra.mxu1 %v6702_v2  ;;  %6027 = vmatprep.subr.bf16.mxu0 %v6980_v1  ;;  %v7780_v2 = vld [vmem:[%s7412_s10 + $0x10] sm:$0xf]  ;;  %v1927_v10 = vsel %vm392_vm1, %v1922_v4, %v1926_v63 }
  0xb5   : > { %6055 = vmatprep.subr.bf16.mxu1 %v6980_v1  ;;  %5989 = vmatprep.mubr.msk.bf16.mxu0 %vm6981_vm0, %v6980_v1 }
  0xb6   : > { %6017 = vmatprep.mubr.msk.bf16.mxu1 %vm6981_vm0, %v6980_v1 }
  0xb7   : > { %6028 = vmatpush3.bf16.msra.mxu0 %v6703_v3  ;;  %v5058_v3 = vcombine.low %v2321_v58, %v7765_v59 }
  0xb8   : > { %6056 = vmatpush3.bf16.msra.mxu1 %v6704_v5  ;;  %6029 = vmatprep.subr.bf16.mxu0 %v6980_v1  ;;  %v6730_v5 = vld [vmem:[%s8716_s3 + $0x358] sm:$0xff]  }
  0xb9   : > { %6057 = vmatprep.subr.bf16.mxu1 %v6980_v1  ;;  %v2364_v17 = vshrl.u32 %v5058_v3, 16 }
  0xba   : > { %5990 = vmatmul.mubr.bf16.gmra.mrb[52].mxu0 %v1589_v7  ;;  %v6732_v7 = vld [vmem:[%s8716_s3 + $0x320] sm:$0xff]  }
  0xbb   : > { %6030 = vmatpush3.bf16.msra.mxu0 %v6705_v6  ;;  %6018 = vmatmul.mubr.bf16.gmra.mrb[52].mxu1 %v6707_v8  ;;  %v2068_v6 = vrot.slane %v6731_v48, 1  ;;  %v7797_v8 = vcombine.low %v7777_v0, %v7780_v2  ;;  %v2184_v48 = vld [vmem:[%s7412_s10 + $0x18] sm:$0xf] }
  0xbc   : > { %6058 = vmatpush3.bf16.msra.mxu1 %v6706_v9  ;;  %6031 = vmatprep.subr.bf16.mxu0 %v6980_v1  ;;  %v2366_v9 = vshll.u32 %v5058_v3, 16 }
  0xbd   : > { %6059 = vmatprep.subr.bf16.mxu1 %v6980_v1  ;;  %5993 = vmatprep.mubr.msk.bf16.mxu0 %vm6981_vm0, %v6980_v1  ;;  %v2069_v13 = vsel %vm658_vm2, %v2066_v53, %v2068_v6  ;;  %v2375_v40 = vshrl.u32 %v7797_v8, 16 }
  0xbe   : > { %6021 = vmatprep.mubr.msk.bf16.mxu1 %vm6981_vm0, %v6980_v1 }
  0xbf   : > { %6032 = vmatpush3.bf16.msra.mxu0 %v6708_v12  ;;  %v6733_v12 = vld [vmem:[%s8716_s3 + $0x360] sm:$0xff]  }
  0xc0   : > { %6060 = vmatpush3.bf16.msra.mxu1 %v6709_v14  ;;  %6033 = vmatprep.subr.bf16.mxu0 %v6980_v1  ;;  %v6734_v14 = vld [vmem:[%s8716_s3 + $0x328] sm:$0xff]  }
  0xc1   : > { %6061 = vmatprep.subr.bf16.mxu1 %v6980_v1 }
  0xc2   : > { %5994 = vmatmul.mubr.bf16.gmra.mrb[56].mxu0 %v1591_v20  ;;  %v2368_v20 = vrot.slane %v2366_v9, 1 }
  0xc3   : > { %6034 = vmatpush3.bf16.msra.mxu0 %v6710_v15  ;;  %6022 = vmatmul.mubr.bf16.gmra.mrb[56].mxu1 %v6712_v21  ;;  %v6735_v15 = vld [vmem:[%s8716_s3 + $0x368] sm:$0xff]   ;;  %v2371_v21 = vshll.u32 %v7797_v8, 16 }
  0xc4   : > { %6062 = vmatpush3.bf16.msra.mxu1 %v6711_v22  ;;  %6035 = vmatprep.subr.bf16.mxu0 %v6980_v1  ;;  %v6736_v22 = vld [vmem:[%s8716_s3 + $0x330] sm:$0xff]   ;;  %v2369_v32 = vor.u32 %v2368_v20, %v2364_v17 }
  0xc5   : > { %6063 = vmatprep.subr.bf16.mxu1 %v6980_v1  ;;  %6041 = vmatprep.mubr.msk.bf16.mxu0 %vm6981_vm0, %v6980_v1 }
  0xc6   : > { %6069 = vmatprep.mubr.msk.bf16.mxu1 %vm6981_vm0, %v6980_v1 }
  0xc7   : > { %6036 = vmatpush3.bf16.msra.mxu0 %v6713_v27  ;;  %v7829_v27 = vld [vmem:[%s7412_s10 + $0x18] sm:$0xf] }
  0xc8   : > { %6064 = vmatpush3.bf16.msra.mxu1 %v6714_v29  ;;  %6037 = vmatprep.subr.bf16.mxu0 %v6980_v1  ;;  %v6739_v29 = vld [vmem:[%s8716_s3 + $0x378] sm:$0xff]   ;;  %v7841_v31 = vcombine.low %v7826_v26, %v7829_v27 }
  0xc9   : > { %6065 = vmatprep.subr.bf16.mxu1 %v6980_v1 }
  0xca   : > { %v2383_v19 = vshrl.u32 %v7841_v31, 16 }
  0xcb   : > { %6038 = vmatpush3.bf16.msra.mxu0 %v6715_v30  ;;  %v2373_v30 = vrot.slane %v2371_v21, 1 }
  0xcc   : > { %6066 = vmatpush3.bf16.msra.mxu1 %v6716_v37  ;;  %6039 = vmatprep.subr.bf16.mxu0 %v6980_v1  ;;  %v2379_v37 = vshll.u32 %v7841_v31, 16 }
  0xcd   : > { %6067 = vmatprep.subr.bf16.mxu1 %v6980_v1  ;;  %v2377_v43 = vor.u32 %v2375_v40, %v2373_v30 }
  0xce   : > { %v2381_v41 = vrot.slane %v2379_v37, 1  ;;  %v2529_v37 = vrot.slane %v7841_v31, 1 }
  0xcf   : > { %6040 = vmatpush3.bf16.msra.mxu0 %v6717_v38  ;;  %v2374_v38 = vsel %vm392_vm1, %v2369_v32, %v2373_v30  ;;  %v6766_v30 = vld [vmem:[%s8716_s3 + $0x440] sm:$0xff]  }
  0xd0   : > { %6068 = vmatpush3.bf16.msra.mxu1 %v6718_v39  ;;  %6081 = vmatprep.subr.bf16.mxu0 %v6980_v1  ;;  %v6744_v39 = vld [vmem:[%s8716_s3 + $0x3c0] sm:$0xff]  }
  0xd1   : > { %6109 = vmatprep.subr.bf16.mxu1 %v6980_v1 }
  0xd2   : > { %6042 = vmatmul.mubr.bf16.vlgmr.msra.gmra.mrb[60].mxu0 %v1911_v35  ;;  %v2387_v35 = vshll.u32 %v7865_v42, 16 }
  0xd3   : > { %6070 = vmatmul.mubr.bf16.vlgmr.msra.gmra.mrb[60].mxu1 %v2065_v49  ;;  %6082 = vmatpush3.bf16.msra.mxu0 %v6722_v45  ;;  %v6749_v45 = vld [vmem:[%s8716_s3 + $0x3d0] sm:$0xff]  }
  0xd4   : > { %6110 = vmatpush3.bf16.msra.mxu1 %v6723_v46  ;;  %6083 = vmatprep.subr.bf16.mxu0 %v6980_v1  ;;  %v2382_v46 = vsel %vm392_vm1, %v2377_v43, %v2381_v41  ;;  %v2389_v49 = vrot.slane %v2387_v35, 1  ;;  %v6770_v35 = vld [vmem:[%s8716_s3 + $0x450] sm:$0xff]  }
  0xd5   : > { %6111 = vmatprep.subr.bf16.mxu1 %v6980_v1  ;;  %6045 = vmatprep.mubr.msk.bf16.mxu0 %vm6981_vm0, %v6980_v1 }
  0xd6   : > { %6073 = vmatprep.mubr.msk.bf16.mxu1 %vm6981_vm0, %v6980_v1 }
  0xd7   : > { %6084 = vmatpush3.bf16.msra.mxu0 %v6724_v50  ;;  %v2385_v50 = vor.u32 %v2383_v19, %v2381_v41 }
  0xd8   : > { %6112 = vmatpush3.bf16.msra.mxu1 %v6725_v51  ;;  %6085 = vmatprep.subr.bf16.mxu0 %v6980_v1  ;;  %v5033_v51 = vcombine.low %v7707_v23, %v2184_v48  ;;  %v6757_v23 = vld [vmem:[%s8716_s3 + $0x3a8] sm:$0xff]   ;;  %v2647_v48 = vld [vmem:[%s7412_s10 + $0x1c] sm:$0xf] }
  0xd9   : > { %6113 = vmatprep.subr.bf16.mxu1 %v6980_v1  ;;  %v2390_v53 = vsel %vm392_vm1, %v2385_v50, %v2389_v49  ;;  %v2784_v49 = vld [vmem:[%s7412_s10 + $0x8] sm:$0xf]  ;;  %v2785_v50 = vld [vmem:[%s7412_s10 + $0xc] sm:$0xf] }
  0xda   : > { %6046 = vmatmul.mubr.bf16.gmra.mrb[64].mxu0 %v1919_v57 }
  0xdb   : > { %6086 = vmatpush3.bf16.msra.mxu0 %v6727_v55  ;;  %6074 = vmatmul.mubr.bf16.gmra.mrb[64].mxu1 %v2067_v61  ;;  %v2505_v55 = vld [vmem:[%s7412_s10 + $0x4] sm:$0xe] }
  0xdc   : > { %6114 = vmatpush3.bf16.msra.mxu1 %v6728_v60  ;;  %6087 = vmatprep.subr.bf16.mxu0 %v6980_v1  ;;  %v6759_v60 = vld [vmem:[%s8716_s3 + $0x3b0] sm:$0xff]   ;;  %v5086_v3 = vcombine.low %v2505_v55, %v7765_v59  ;;  %v6778_v55 = vld [vmem:[%s8716_s3 + $0x468] sm:$0xff]  }
  0xdd   : > { %6115 = vmatprep.subr.bf16.mxu1 %v6980_v1  ;;  %6049 = vmatprep.mubr.msk.bf16.mxu0 %vm6981_vm0, %v6980_v1 }
  0xde   : > { %6077 = vmatprep.mubr.msk.bf16.mxu1 %vm6981_vm0, %v6980_v1 }
  0xdf   : > { %6088 = vmatpush3.bf16.msra.mxu0 %v6729_v62 }
  0xe0   : > { %6116 = vmatpush3.bf16.msra.mxu1 %v6730_v5  ;;  %6089 = vmatprep.subr.bf16.mxu0 %v6980_v1  ;;  %v6760_v5 = vld [vmem:[%s8716_s3 + $0x3f0] sm:$0xff]  }
  0xe1   : > { %6117 = vmatprep.subr.bf16.mxu1 %v6980_v1 }
  0xe2   : > { %6050 = vmatmul.mubr.bf16.gmra.mrb[68].mxu0 %v1927_v10  ;;  %v6761_v10 = vld [vmem:[%s8716_s3 + $0x3b8] sm:$0xff]  }
  0xe3   : > { %6090 = vmatpush3.bf16.msra.mxu0 %v6732_v7  ;;  %6078 = vmatmul.mubr.bf16.gmra.mrb[68].mxu1 %v2069_v13  ;;  %v2527_v13 = vrot.slane %v7797_v8, 1  ;;  %v6765_v8 = vld [vmem:[%s8716_s3 + $0x400] sm:$0xff]  }
  0xe4   : > { %6118 = vmatpush3.bf16.msra.mxu1 %v6733_v12  ;;  %6091 = vmatprep.subr.bf16.mxu0 %v6980_v1  ;;  %v2526_v12 = vrot.slane %v5086_v3, 1 }
  0xe5   : > { %6119 = vmatprep.subr.bf16.mxu1 %v6980_v1  ;;  %6097 = vmatprep.mubr.msk.bf16.mxu0 %vm6981_vm0, %v6980_v1  ;;  %v2530_v31 = vsel %vm658_vm2, %v2527_v13, %v2529_v37 }
  0xe6   : > { %6125 = vmatprep.mubr.msk.bf16.mxu1 %vm6981_vm0, %v6980_v1  ;;  %v2528_v21 = vsel %vm658_vm2, %v2526_v12, %v2527_v13  ;;  %v6780_v13 = vld [vmem:[%s8716_s3 + $0x470] sm:$0xff]  }
  0xe7   : > { %6092 = vmatpush3.bf16.msra.mxu0 %v6734_v14  ;;  %v6762_v14 = vld [vmem:[%s8716_s3 + $0x3f8] sm:$0xff]  }
  0xe8   : > { %6120 = vmatpush3.bf16.msra.mxu1 %v6735_v15  ;;  %6093 = vmatprep.subr.bf16.mxu0 %v6980_v1 }
  0xe9   : > { %6121 = vmatprep.subr.bf16.mxu1 %v6980_v1 }
  0xeb   : > { %6094 = vmatpush3.bf16.msra.mxu0 %v6736_v22  ;;  %v5111_v22 = vcombine.low %v7765_v59, %v7777_v0 }
  0xec   : > { %6122 = vmatpush3.bf16.msra.mxu1 %v6737_v25  ;;  %6095 = vmatprep.subr.bf16.mxu0 %v6980_v1 }
  0xed   : > { %6123 = vmatprep.subr.bf16.mxu1 %v6980_v1 }
  0xef   : > { %6096 = vmatpush3.bf16.msra.mxu0 %v6738_v28 }
  0xf0   : > { %6124 = vmatpush3.bf16.msra.mxu1 %v6739_v29  ;;  %6137 = vmatprep.subr.bf16.mxu0 %v6980_v1 }
  0xf1   : > { %6165 = vmatprep.subr.bf16.mxu1 %v6980_v1 }
  0xf2   : > { %6098 = vmatmul.mubr.bf16.vlgmr.msra.gmra.mrb[72].mxu0 %v5031_v33 }
  0xf3   : > { %6126 = vmatmul.mubr.bf16.vlgmr.msra.gmra.mrb[72].mxu1 %v2374_v38  ;;  %6138 = vmatpush3.bf16.msra.mxu0 %v6743_v34  ;;  %v6767_v34 = vld [vmem:[%s8716_s3 + $0x408] sm:$0xff]  }
  0xf4   : > { %6166 = vmatpush3.bf16.msra.mxu1 %v6744_v39  ;;  %6139 = vmatprep.subr.bf16.mxu0 %v6980_v1  ;;  %v6768_v38 = vld [vmem:[%s8716_s3 + $0x448] sm:$0xff]  }
  0xf5   : > { %6167 = vmatprep.subr.bf16.mxu1 %v6980_v1  ;;  %6101 = vmatprep.mubr.msk.bf16.mxu0 %vm6981_vm0, %v6980_v1 }
  0xf6   : > { %6129 = vmatprep.mubr.msk.bf16.mxu1 %vm6981_vm0, %v6980_v1 }
  0xf7   : > { %6140 = vmatpush3.bf16.msra.mxu0 %v6745_v11 }
  0xf8   : > { %6168 = vmatpush3.bf16.msra.mxu1 %v6746_v18  ;;  %6141 = vmatprep.subr.bf16.mxu0 %v6980_v1  ;;  %v6769_v18 = vld [vmem:[%s8716_s3 + $0x410] sm:$0xff]  }
  0xf9   : > { %6169 = vmatprep.subr.bf16.mxu1 %v6980_v1 }
  0xfa   : > { %6102 = vmatmul.mubr.bf16.gmra.mrb[76].mxu0 %v5032_v44  ;;  %v5112_v44 = vcombine.low %v7780_v2, %v7826_v26  ;;  %v6772_v2 = vld [vmem:[%s8716_s3 + $0x418] sm:$0xff]  }
  0xfb   : > { %6142 = vmatpush3.bf16.msra.mxu0 %v6748_v24  ;;  %6130 = vmatmul.mubr.bf16.gmra.mrb[76].mxu1 %v2382_v46  ;;  %v6773_v26 = vld [vmem:[%s8716_s3 + $0x458] sm:$0xff]  }
  0xfc   : > { %6170 = vmatpush3.bf16.msra.mxu1 %v6749_v45  ;;  %6143 = vmatprep.subr.bf16.mxu0 %v6980_v1 }
  0xfd   : > { %6171 = vmatprep.subr.bf16.mxu1 %v6980_v1  ;;  %6105 = vmatprep.mubr.msk.bf16.mxu0 %vm6981_vm0, %v6980_v1 }
  0xfe   : > { %6133 = vmatprep.mubr.msk.bf16.mxu1 %vm6981_vm0, %v6980_v1 }
  0xff   : > { %6144 = vmatpush3.bf16.msra.mxu0 %v6751_v16 }
 0x100   : > { %6172 = vmatpush3.bf16.msra.mxu1 %v6752_v47  ;;  %6145 = vmatprep.subr.bf16.mxu0 %v6980_v1  ;;  %v2531_v47 = vrot.slane %v7865_v42, 1  ;;  %v6774_v42 = vld [vmem:[%s8716_s3 + $0x420] sm:$0xff]  }
 0x101   : > { %6173 = vmatprep.subr.bf16.mxu1 %v6980_v1 }
 0x102   : > { %6106 = vmatmul.mubr.bf16.gmra.mrb[80].mxu0 %v5033_v51  ;;  %v2532_v51 = vsel %vm658_vm2, %v2529_v37, %v2531_v47  ;;  %v6789_v47 = vld [vmem:[%s8716_s3 + $0x4c8] sm:$0xff]  }
 0x103   : > { %6146 = vmatpush3.bf16.msra.mxu0 %v6754_v52  ;;  %6134 = vmatmul.mubr.bf16.gmra.mrb[80].mxu1 %v2390_v53  ;;  %v5113_v52 = vcombine.low %v7829_v27, %v2647_v48  ;;  %v6775_v53 = vld [vmem:[%s8716_s3 + $0x460] sm:$0xff]  }
 0x104   : > { %6174 = vmatpush3.bf16.msra.mxu1 %v6755_v36  ;;  %6147 = vmatprep.subr.bf16.mxu0 %v6980_v1  ;;  %v5138_v36 = vcombine.low %v2784_v49, %v2785_v50 }
 0x105   : > { %v506_v56 = vpop.f32.mrb[0].mxu0  ;;  %6175 = vmatprep.subr.bf16.mxu1 %v6980_v1  ;;  %6153 = vmatprep.mubr.msk.bf16.mxu0 %vm6981_vm0, %v6980_v1 }
 0x106   : > { %v614_v57 = vpop.f32.mrb[0].mxu1  ;;  %v5763_v58 = vpop.f32.mrb[1].mxu0  ;;  %6181 = vmatprep.mubr.msk.bf16.mxu1 %vm6981_vm0, %v6980_v1  ;;  %v2829_v27 = vshll.u32 %v5138_v36, 16 }
 0x107   : > { %v7925_v61 = vadd.f32 %v614_v57, %v506_v56  ;;  %v5791_v62 = vpop.f32.mrb[1].mxu1  ;;  %v509_v63 = vpop.f32.mrb[2].mxu0  ;;  %6148 = vmatpush3.bf16.msra.mxu0 %v6757_v23  ;;  %v6777_v23 = vld [vmem:[%s8716_s3 + $0x428] sm:$0xff]  }
 0x108   : > { %v617_v4 = vpop.f32.mrb[2].mxu1  ;;  %6176 = vmatpush3.bf16.msra.mxu1 %v6758_v54  ;;  %6149 = vmatprep.subr.bf16.mxu0 %v6980_v1  ;;  %v5764_v6 = vpop.f32.mrb[3].mxu0  ;;  %v8017_v54 = vld [vmem:[%s7412_s10 + $0x10] sm:$0xff]   ;;  %v2968_v57 = vld [vmem:[%s7412_s10 + $0x8] sm:$0xe] }
 0x109   : > { %v7932_v7 = vadd.f32 %v617_v4, %v509_v63  ;;  %v5792_v9 = vpop.f32.mrb[3].mxu1  ;;  %6177 = vmatprep.subr.bf16.mxu1 %v6980_v1  ;;  %v6779_v4 = vld [vmem:[%s8716_s3 + $0x430] sm:$0xff]   ;;  %v2831_v6 = vrot.slane %v2829_v27, 1 }
 0x10a   : > { %v2834_v9 = vshll.u32 %v8017_v54, 16 }
 0x10b   : > { %6150 = vmatpush3.bf16.msra.mxu0 %v6759_v60 }
 0x10c   : > { %6178 = vmatpush3.bf16.msra.mxu1 %v6760_v5  ;;  %6151 = vmatprep.subr.bf16.mxu0 %v6980_v1  ;;  %v2827_v5 = vshrl.u32 %v5138_v36, 16 }
 0x10d   : > { %6179 = vmatprep.subr.bf16.mxu1 %v6980_v1  ;;  %v514_v15 = vpop.f32.mrb[4].mxu0 }
 0x10e   : > { %v622_v17 = vpop.f32.mrb[4].mxu1  ;;  %v5767_v20 = vpop.f32.mrb[5].mxu0 }
 0x10f   : > { %6152 = vmatpush3.bf16.msra.mxu0 %v6761_v10  ;;  %v7950_v25 = vadd.f32 %v622_v17, %v514_v15  ;;  %v5795_v28 = vpop.f32.mrb[5].mxu1  ;;  %v517_v29 = vpop.f32.mrb[6].mxu0  ;;  %v5166_v15 = vcombine.low %v2968_v57, %v2785_v50  ;;  %v6792_v57 = vld [vmem:[%s8716_s3 + $0x4d0] sm:$0xff]  }
 0x110   : > { %6180 = vmatpush3.bf16.msra.mxu1 %v6762_v14  ;;  %6193 = vmatprep.subr.bf16.mxu0 %v6980_v1  ;;  %v625_v32 = vpop.f32.mrb[6].mxu1  ;;  %v5768_v33 = vpop.f32.mrb[7].mxu0  ;;  %v6782_v28 = vld [vmem:[%s8716_s3 + $0x478] sm:$0xff]  }
 0x111   : > { %6221 = vmatprep.subr.bf16.mxu1 %v6980_v1  ;;  %v7957_v59 = vadd.f32 %v625_v32, %v517_v29  ;;  %v5796_v0 = vpop.f32.mrb[7].mxu1  ;;  %v2989_v29 = vrot.slane %v5166_v15, 1  ;;  %v6797_v15 = vld [vmem:[%s8716_s3 + $0x4e0] sm:$0xff]  }
 0x112   : > { %6154 = vmatmul.mubr.bf16.vlgmr.msra.gmra.mrb[84].mxu0 %v2528_v21  ;;  %v2832_v21 = vor.u32 %v2831_v6, %v2827_v5  ;;  %v6794_v5 = vld [vmem:[%s8716_s3 + $0x4d8] sm:$0xff]  }
 0x113   : > { %6182 = vmatmul.mubr.bf16.vlgmr.msra.gmra.mrb[84].mxu1 %v5111_v22  ;;  %6194 = vmatpush3.bf16.msra.mxu0 %v6765_v8  ;;  %v2836_v22 = vrot.slane %v2834_v9, 1  ;;  %v8048_v8 = vld [vmem:[%s7412_s10 + $0x18] sm:$0xff]   ;;  %v3262_v9 = vld [vmem:[%s7728_s15] sm:$0xf] }
 0x114   : > { %6222 = vmatpush3.bf16.msra.mxu1 %v6766_v30  ;;  %6195 = vmatprep.subr.bf16.mxu0 %v6980_v1  ;;  %v2990_v30 = vrot.slane %v8017_v54, 1  ;;  %v2992_v48 = vrot.slane %v8048_v8, 1 }
 0x115   : > { %6223 = vmatprep.subr.bf16.mxu1 %v6980_v1  ;;  %6157 = vmatprep.mubr.msk.bf16.mxu0 %vm6981_vm0, %v6980_v1  ;;  %v522_v39 = vpop.f32.mrb[8].mxu0 }
 0x116   : > { %v630_v40 = vpop.f32.mrb[8].mxu1  ;;  %6185 = vmatprep.mubr.msk.bf16.mxu1 %vm6981_vm0, %v6980_v1  ;;  %v5771_v11 = vpop.f32.mrb[9].mxu0 }
 0x117   : > { %6196 = vmatpush3.bf16.msra.mxu0 %v6767_v34  ;;  %v7976_v41 = vadd.f32 %v630_v40, %v522_v39  ;;  %v5799_v43 = vpop.f32.mrb[9].mxu1  ;;  %v525_v24 = vpop.f32.mrb[10].mxu0  ;;  %v2837_v39 = vsel %vm392_vm1, %v2832_v21, %v2836_v22  ;;  %v6786_v40 = vld [vmem:[%s8716_s3 + $0x480] sm:$0xff]   ;;  %v2838_v11 = vshrl.u32 %v8017_v54, 16  ;;  %v2846_v54 = vshrl.u32 %v8048_v8, 16 }
 0x118   : > { %6224 = vmatpush3.bf16.msra.mxu1 %v6768_v38  ;;  %6197 = vmatprep.subr.bf16.mxu0 %v6980_v1  ;;  %v633_v45 = vpop.f32.mrb[10].mxu1  ;;  %v5772_v46 = vpop.f32.mrb[11].mxu0  ;;  %v8135_v21 = vld [vmem:[%s7728_s15 + $0xc] sm:$0xf] }
 0x119   : > { %6225 = vmatprep.subr.bf16.mxu1 %v6980_v1  ;;  %v7985_v19 = vadd.f32 %v633_v45, %v525_v24  ;;  %v5800_v16 = vpop.f32.mrb[11].mxu1  ;;  %v6787_v24 = vld [vmem:[%s8716_s3 + $0x4c0] sm:$0xff]  }
 0x11a   : > { %6158 = vmatmul.mubr.bf16.gmra.mrb[88].mxu0 %v2530_v31  ;;  %v2842_v31 = vshll.u32 %v8048_v8, 16  ;;  %v2840_v16 = vor.u32 %v2838_v11, %v2836_v22  ;;  %v6798_v22 = vld [vmem:[%s8716_s3 + $0x4a8] sm:$0xff]  }
 0x11b   : > { %6198 = vmatpush3.bf16.msra.mxu0 %v6769_v18  ;;  %6186 = vmatmul.mubr.bf16.gmra.mrb[88].mxu1 %v5112_v44  ;;  %v2991_v44 = vsel %vm658_vm2, %v2989_v29, %v2990_v30  ;;  %v6799_v29 = vld [vmem:[%s8716_s3 + $0x4e8] sm:$0xff]  }
 0x11c   : > { %6226 = vmatpush3.bf16.msra.mxu1 %v6770_v35  ;;  %6199 = vmatprep.subr.bf16.mxu0 %v6980_v1 }
 0x11d   : > { %6227 = vmatprep.subr.bf16.mxu1 %v6980_v1  ;;  %6161 = vmatprep.mubr.msk.bf16.mxu0 %vm6981_vm0, %v6980_v1 }
 0x11e   : > { %6189 = vmatprep.mubr.msk.bf16.mxu1 %vm6981_vm0, %v6980_v1 }
 0x11f   : > { %6200 = vmatpush3.bf16.msra.mxu0 %v6772_v2  ;;  %v2844_v2 = vrot.slane %v2842_v31, 1 }
 0x120   : > { %6228 = vmatpush3.bf16.msra.mxu1 %v6773_v26  ;;  %6201 = vmatprep.subr.bf16.mxu0 %v6980_v1  ;;  %v6795_v26 = vld [vmem:[%s7412_s10 + $0x20] ss:$0 sps:$4 sm:$0x11]   ;;  %s4579_s10 = sshll.u32 %s301_s14, 4  ;;  %s8652_s10 = int_to_ptr.vmem [resolvable:$true] %s4579_s10 }
 0x121   : > { %6229 = vmatprep.subr.bf16.mxu1 %v6980_v1  ;;  %v2850_v27 = vshll.u32 %v6795_v26, 16  ;;  %v2994_v6 = vrot.slane %v6795_v26, 1  ;;  %s6884_s13 = scalar_lea.vmem %s8652_s10, 384  ;;  %p6891_p6 = scmp.lt.s32.totalorder %s8652_s10, %s6889_s30 }
 0x122   : > { %6162 = vmatmul.mubr.bf16.gmra.mrb[92].mxu0 %v2532_v51  ;;  %p6885_p2 = scmp.ne.s32.totalorder %s8652_s10, %s6884_s13  ;;  %p6892_p7 = scmp.lt.s32.totalorder %s6890_s9, %s6884_s13 }
 0x123   : > { %6202 = vmatpush3.bf16.msra.mxu0 %v6774_v42  ;;  %6190 = vmatmul.mubr.bf16.gmra.mrb[92].mxu1 %v5113_v52 }
 0x124   : > { %6230 = vmatpush3.bf16.msra.mxu1 %v6775_v53  ;;  %6203 = vmatprep.subr.bf16.mxu0 %v6980_v1  ;;  %v2845_v53 = vsel %vm392_vm1, %v2840_v16, %v2844_v2  ;;  %p6886_p4 = pnand %p6885_p2, %p7066_p3  ;;  %p6893_p9 = por %p6892_p7, %p6891_p6 }
 0x125   : > { %v751_v56 = vpop.f32.mrb[12].mxu0  ;;  %6231 = vmatprep.subr.bf16.mxu1 %v6980_v1  ;;  %6209 = vmatprep.mubr.msk.bf16.mxu0 %vm6981_vm0, %v6980_v1 }
 0x126   : > { %v774_v58 = vadd.f32 %v751_v56, %v7925_v61  ;;  %v888_v60 = vpop.f32.mrb[12].mxu1  ;;  %v5819_v62 = vpop.f32.mrb[13].mxu0  ;;  %6237 = vmatprep.mubr.msk.bf16.mxu1 %vm6981_vm0, %v6980_v1  ;;  %p6887_p5 = pneg %p6886_p4 }
 0x127   : > { %v5847_v63 = vpop.f32.mrb[13].mxu1  ;;  %v754_v3 = vpop.f32.mrb[14].mxu0  ;;  %6204 = vmatpush3.bf16.msra.mxu0 %v6777_v23  ;;  %v6791_v23 = vld [vmem:[%s8716_s3 + $0x490] sm:$0xff]  }
 0x128   : > { %v8034_v10 = vadd.f32 %v888_v60, %v774_v58  ;;  %v775_v61 = vadd.f32 %v754_v3, %v7932_v7  ;;  %v891_v12 = vpop.f32.mrb[14].mxu1  ;;  %6232 = vmatpush3.bf16.msra.mxu1 %v6778_v55  ;;  %6205 = vmatprep.subr.bf16.mxu0 %v6980_v1  ;;  %v5820_v14 = vpop.f32.mrb[15].mxu0  ;;  %v6781_v7 = vld [vmem:[%s8716_s3 + $0x438] sm:$0xff]   ;;  %v2993_v58 = vsel %vm658_vm2, %v2990_v30, %v2992_v48  ;;  %p6894_p10 = pnand %p6893_p9, %p6887_p5 }
 0x129   : > { %v5848_v17 = vpop.f32.mrb[15].mxu1  ;;  %6233 = vmatprep.subr.bf16.mxu1 %v6980_v1  ;;  %v2848_v3 = vor.u32 %v2846_v54, %v2844_v2  ;;  %v6803_v2 = vld [vmem:[%s8716_s3 + $0x4f8] sm:$0xff]  }
 0x12a   : > { %v8042_v20 = vadd.f32 %v891_v12, %v775_v61  ;;  %v8114_v61 = vld [vmem:[%s7728_s15 + $0x4] sm:$0xf]  ;;  %v2995_v17 = vsel %vm658_vm2, %v2992_v48, %v2994_v6 }
 0x12b   : > { %6206 = vmatpush3.bf16.msra.mxu0 %v6779_v4  ;;  %v2852_v4 = vrot.slane %v2850_v27, 1  ;;  %v5218_v14 = vcombine.low %v3262_v9, %v8114_v61 }
 0x12c   : > { %6234 = vmatpush3.bf16.msra.mxu1 %v6780_v13  ;;  %6207 = vmatprep.subr.bf16.mxu0 %v6980_v1  ;;  %v6796_v13 = vld [vmem:[%s8716_s3 + $0x4a0] sm:$0xff]  }
 0x12d   : > { %v759_v32 = vpop.f32.mrb[16].mxu0  ;;  %6235 = vmatprep.subr.bf16.mxu1 %v6980_v1  ;;  %v2853_v12 = vsel %vm392_vm1, %v2848_v3, %v2852_v4  ;;  %v6810_v4 = vld [vmem:[%s8716_s3 + $0x548] sm:$0xff]  }
 0x12e   : > { %v776_v33 = vadd.f32 %v759_v32, %v7950_v25  ;;  %v5823_v0 = vpop.f32.mrb[17].mxu0  ;;  %v896_v34 = vpop.f32.mrb[16].mxu1 }
 0x12f   : > { %v762_v37 = vpop.f32.mrb[18].mxu0  ;;  %6208 = vmatpush3.bf16.msra.mxu0 %v6781_v7  ;;  %v5851_v38 = vpop.f32.mrb[17].mxu1  ;;  %v8132_v7 = vld [vmem:[%s7728_s15 + $0x8] sm:$0xf] }
 0x130   : > { %v777_v18 = vadd.f32 %v762_v37, %v7957_v59  ;;  %v8064_v43 = vadd.f32 %v896_v34, %v776_v33  ;;  %6236 = vmatpush3.bf16.msra.mxu1 %v6782_v28  ;;  %v899_v25 = vpop.f32.mrb[18].mxu1  ;;  %6249 = vmatprep.subr.bf16.mxu0 %v6980_v1  ;;  %v5824_v35 = vpop.f32.mrb[19].mxu0  ;;  %v6788_v59 = vld [vmem:[%s8716_s3 + $0x488] sm:$0xff]   ;;  %v8143_v8 = vcombine.low %v8132_v7, %v8135_v21  ;;  %v3307_v28 = vshll.u32 %v5218_v14, 16  ;;  %v6800_v34 = vld [vmem:[%s8716_s3 + $0x4b0] sm:$0xff]  }
 0x131   : > { %6277 = vmatprep.subr.bf16.mxu1 %v6980_v1  ;;  %v5852_v45 = vpop.f32.mrb[19].mxu1  ;;  %v8170_v35 = vld [vmem:[%s7728_s15 + $0x14] sm:$0xf] }
 0x132   : > { %v8072_v46 = vadd.f32 %v899_v25, %v777_v18  ;;  %6210 = vmatmul.mubr.bf16.vlgmr.msra.gmra.mrb[96].mxu0 %v2837_v39  ;;  %v6801_v39 = vld [vmem:[%s8716_s3 + $0x4f0] sm:$0xff]   ;;  %v3312_v11 = vshll.u32 %v8143_v8, 16 }
 0x133   : > { %6238 = vmatmul.mubr.bf16.vlgmr.msra.gmra.mrb[96].mxu1 %v2991_v44  ;;  %6250 = vmatpush3.bf16.msra.mxu0 %v6786_v40  ;;  %v3305_v40 = vshrl.u32 %v5218_v14, 16  ;;  %v6811_v14 = vld [vmem:[%s7728_s15 + $0x8] sm:$0xff]  }
 0x134   : > { %6278 = vmatpush3.bf16.msra.mxu1 %v6787_v24  ;;  %6251 = vmatprep.subr.bf16.mxu0 %v6980_v1  ;;  %v8167_v24 = vld [vmem:[%s7728_s15 + $0x10] sm:$0xf] }
 0x135   : > { %v767_v49 = vpop.f32.mrb[20].mxu0  ;;  %6279 = vmatprep.subr.bf16.mxu1 %v6980_v1  ;;  %6213 = vmatprep.mubr.msk.bf16.mxu0 %vm6981_vm0, %v6980_v1  ;;  %v8180_v16 = vcombine.low %v8167_v24, %v8170_v35 }
 0x136   : > { %v778_v50 = vadd.f32 %v767_v49, %v7976_v41  ;;  %v5827_v51 = vpop.f32.mrb[21].mxu0  ;;  %v904_v42 = vpop.f32.mrb[20].mxu1  ;;  %6241 = vmatprep.mubr.msk.bf16.mxu1 %vm6981_vm0, %v6980_v1 }
 0x137   : > { %v770_v52 = vpop.f32.mrb[22].mxu0  ;;  %6252 = vmatpush3.bf16.msra.mxu0 %v6788_v59  ;;  %v5855_v36 = vpop.f32.mrb[21].mxu1  ;;  %v3320_v54 = vshll.u32 %v8180_v16, 16 }
 0x138   : > { %v779_v55 = vadd.f32 %v770_v52, %v7985_v19  ;;  %v8095_v41 = vadd.f32 %v904_v42, %v778_v50  ;;  %6280 = vmatpush3.bf16.msra.mxu1 %v6789_v47  ;;  %v907_v56 = vpop.f32.mrb[22].mxu1  ;;  %6253 = vmatprep.subr.bf16.mxu0 %v6980_v1  ;;  %v5828_v60 = vpop.f32.mrb[23].mxu0  ;;  %v6793_v19 = vld [vmem:[%s8716_s3 + $0x498] sm:$0xff]   ;;  %v3314_v47 = vrot.slane %v3312_v11, 1  ;;  %v6804_v42 = vld [vmem:[%s7728_s15] sm:$0xff]   ;;  %v6817_v11 = vld [vmem:[%s7728_s15 + $0x10] sm:$0xff]  }
 0x139   : > { %6281 = vmatprep.subr.bf16.mxu1 %v6980_v1  ;;  %v5856_v62 = vpop.f32.mrb[23].mxu1  ;;  %v3322_v3 = vrot.slane %v3320_v54, 1 }
 0x13a   : > { %v8103_v63 = vadd.f32 %v907_v56, %v779_v55  ;;  %6214 = vmatmul.mubr.bf16.gmra.mrb[100].mxu0 %v2845_v53  ;;  %v6807_v53 = vld [vmem:[%s8716_s3 + $0x500] sm:$0xff]  }
 0x13b   : > { %6254 = vmatpush3.bf16.msra.mxu0 %v6791_v23  ;;  %6242 = vmatmul.mubr.bf16.gmra.mrb[100].mxu1 %v2993_v58  ;;  %v3316_v23 = vshrl.u32 %v8143_v8, 16 }
 0x13c   : > { %6282 = vmatpush3.bf16.msra.mxu1 %v6792_v57  ;;  %6255 = vmatprep.subr.bf16.mxu0 %v6980_v1  ;;  %v6808_v57 = vld [vmem:[%s8716_s3 + $0x540] sm:$0xff]  }
 0x13d   : > { %6283 = vmatprep.subr.bf16.mxu1 %v6980_v1  ;;  %6217 = vmatprep.mubr.msk.bf16.mxu0 %vm6981_vm0, %v6980_v1 }
 0x13e   : > { %6245 = vmatprep.mubr.msk.bf16.mxu1 %vm6981_vm0, %v6980_v1 }
 0x13f   : > { %6256 = vmatpush3.bf16.msra.mxu0 %v6793_v19  ;;  %v3318_v19 = vor.u32 %v3316_v23, %v3314_v47 }
 0x140   : > { %6284 = vmatpush3.bf16.msra.mxu1 %v6794_v5  ;;  %6257 = vmatprep.subr.bf16.mxu0 %v6980_v1  ;;  %v8213_v5 = vld [vmem:[%s7728_s15 + $0x18] ss:$0 sps:$4 sm:$0x11]  }
 0x141   : > { %6285 = vmatprep.subr.bf16.mxu1 %v6980_v1 }
 0x142   : > { %6218 = vmatmul.mubr.bf16.gmra.mrb[104].mxu0 %v2853_v12 }
 0x143   : > { %6258 = vmatpush3.bf16.msra.mxu0 %v6796_v13  ;;  %6246 = vmatmul.mubr.bf16.gmra.mrb[104].mxu1 %v2995_v17 }
 0x144   : > { %6286 = vmatpush3.bf16.msra.mxu1 %v6797_v15  ;;  %6259 = vmatprep.subr.bf16.mxu0 %v6980_v1 }
 0x145   : > { %v1072_v30 = vpop.f32.mrb[24].mxu0  ;;  %6287 = vmatprep.subr.bf16.mxu1 %v6980_v1  ;;  %6265 = vmatprep.mubr.msk.bf16.mxu0 %vm6981_vm0, %v6980_v1 }
 0x146   : > { %v1095_v32 = vadd.f32 %v1072_v30, %v8034_v10  ;;  %v1214_v33 = vpop.f32.mrb[24].mxu1  ;;  %v5875_v0 = vpop.f32.mrb[25].mxu0  ;;  %6293 = vmatprep.mubr.msk.bf16.mxu1 %vm6981_vm0, %v6980_v1  ;;  %v3309_v10 = vrot.slane %v3307_v28, 1  ;;  %v3323_v28 = vsel %vm392_vm1, %v3318_v19, %v3322_v3 }
 0x147   : > { %v5903_v37 = vpop.f32.mrb[25].mxu1  ;;  %v1075_v38 = vpop.f32.mrb[26].mxu0  ;;  %6260 = vmatpush3.bf16.msra.mxu0 %v6798_v22  ;;  %v6812_v22 = vld [vmem:[%s8716_s3 + $0x510] sm:$0xff]   ;;  %v3324_v0 = vshrl.u32 %v8180_v16, 16 }
 0x148   : > { %v8162_v31 = vadd.f32 %v1214_v33, %v1095_v32  ;;  %v1096_v18 = vadd.f32 %v1075_v38, %v8042_v20  ;;  %v1217_v25 = vpop.f32.mrb[26].mxu1  ;;  %6288 = vmatpush3.bf16.msra.mxu1 %v6799_v29  ;;  %6261 = vmatprep.subr.bf16.mxu0 %v6980_v1  ;;  %v5876_v44 = vpop.f32.mrb[27].mxu0  ;;  %v6802_v20 = vld [vmem:[%s8716_s3 + $0x4b8] sm:$0xff]   ;;  %v3310_v26 = vor.u32 %v3309_v10, %v3305_v40  ;;  %v6813_v32 = vld [vmem:[%s8716_s3 + $0x550] sm:$0xff]  }
 0x149   : > { %v5904_v45 = vpop.f32.mrb[27].mxu1  ;;  %6289 = vmatprep.subr.bf16.mxu1 %v6980_v1  ;;  %v6815_v38 = vld [vmem:[%s8716_s3 + $0x518] sm:$0xff]   ;;  %v3326_v40 = vor.u32 %v3324_v0, %v3322_v3 }
 0x14a   : > { %v8173_v59 = vadd.f32 %v1217_v25, %v1096_v18  ;;  %v3315_v56 = vsel %vm392_vm1, %v3310_v26, %v3314_v47  ;;  %v6818_v18 = vld [vmem:[%s8716_s3 + $0x520] sm:$0xff]   ;;  %v6821_v45 = vld [vmem:[%s8716_s3 + $0x528] sm:$0xff]  }
 0x14b   : > { %6262 = vmatpush3.bf16.msra.mxu0 %v6800_v34  ;;  %v3328_v34 = vshll.u32 %v8213_v5, 16  ;;  %v6819_v25 = vld [vmem:[%s8716_s3 + $0x560] sm:$0xff]  }
 0x14c   : > { %6290 = vmatpush3.bf16.msra.mxu1 %v6801_v39  ;;  %6263 = vmatprep.subr.bf16.mxu0 %v6980_v1  ;;  %v6816_v39 = vld [vmem:[%s8716_s3 + $0x558] sm:$0xff]  }
 0x14d   : > { %v1080_v48 = vpop.f32.mrb[28].mxu0  ;;  %6291 = vmatprep.subr.bf16.mxu1 %v6980_v1  ;;  %v3330_v10 = vrot.slane %v3328_v34, 1 }
 0x14e   : > { %v1097_v49 = vadd.f32 %v1080_v48, %v8064_v43  ;;  %v5879_v50 = vpop.f32.mrb[29].mxu0  ;;  %v1222_v51 = vpop.f32.mrb[28].mxu1 }
 0x14f   : > { %v1083_v52 = vpop.f32.mrb[30].mxu0  ;;  %6264 = vmatpush3.bf16.msra.mxu0 %v6802_v20  ;;  %v5907_v36 = vpop.f32.mrb[29].mxu1  ;;  %v3331_v44 = vsel %vm392_vm1, %v3326_v40, %v3330_v10  ;;  %v6822_v20 = vld [vmem:[%s8716_s3 + $0x568] sm:$0xff]   ;;  %v6834_v10 = vld [vmem:[%s8716_s3 + $0x5d0] sm:$0xff]  }
 0x150   : > { %v1098_v27 = vadd.f32 %v1083_v52, %v8072_v46  ;;  %v8195_v55 = vadd.f32 %v1222_v51, %v1097_v49  ;;  %6292 = vmatpush3.bf16.msra.mxu1 %v6803_v2  ;;  %v1225_v43 = vpop.f32.mrb[30].mxu1  ;;  %6305 = vmatprep.subr.bf16.mxu0 %v6980_v1  ;;  %v5880_v58 = vpop.f32.mrb[31].mxu0  ;;  %v6809_v46 = vld [vmem:[%s8716_s3 + $0x508] sm:$0xff]   ;;  %v3446_v2 = vld [vmem:[%s7728_s15] sm:$0xe] }
 0x151   : > { %6333 = vmatprep.subr.bf16.mxu1 %v6980_v1  ;;  %v5908_v60 = vpop.f32.mrb[31].mxu1  ;;  %v5246_v52 = vcombine.low %v3446_v2, %v8114_v61  ;;  %v6826_v58 = vld [vmem:[%s8716_s3 + $0x578] sm:$0xff]   ;;  %v6838_v2 = vld [vmem:[%s8716_s3 + $0x5a0] sm:$0xff]  }
 0x152   : > { %v8203_v62 = vadd.f32 %v1225_v43, %v1098_v27  ;;  %6266 = vmatmul.mubr.bf16.vlgmr.msra.gmra.mrb[108].mxu0 %v6804_v42  ;;  %v6823_v42 = vld [vmem:[%s8716_s3 + $0x530] sm:$0xff]  }
 0x153   : > { %6294 = vmatmul.mubr.bf16.vlgmr.msra.gmra.mrb[108].mxu1 %v3315_v56  ;;  %6306 = vmatpush3.bf16.msra.mxu0 %v6807_v53  ;;  %v6825_v56 = vld [vmem:[%s8716_s3 + $0x538] sm:$0xff]  }
 0x154   : > { %6334 = vmatpush3.bf16.msra.mxu1 %v6808_v57  ;;  %6307 = vmatprep.subr.bf16.mxu0 %v6980_v1  ;;  %v3468_v57 = vrot.slane %v8143_v8, 1  ;;  %v5271_v8 = vcombine.low %v8114_v61, %v8132_v7 }
 0x155   : > { %v1088_v6 = vpop.f32.mrb[32].mxu0  ;;  %6335 = vmatprep.subr.bf16.mxu1 %v6980_v1  ;;  %6269 = vmatprep.mubr.msk.bf16.mxu0 %vm6981_vm0, %v6980_v1 }
 0x156   : > { %v1099_v9 = vadd.f32 %v1088_v6, %v8095_v41  ;;  %v5883_v12 = vpop.f32.mrb[33].mxu0  ;;  %v1230_v13 = vpop.f32.mrb[32].mxu1  ;;  %6297 = vmatprep.mubr.msk.bf16.mxu1 %vm6981_vm0, %v6980_v1 }
 0x157   : > { %v1091_v15 = vpop.f32.mrb[34].mxu0  ;;  %6308 = vmatpush3.bf16.msra.mxu0 %v6809_v46  ;;  %v5911_v17 = vpop.f32.mrb[33].mxu1  ;;  %v6829_v12 = vld [vmem:[%s8716_s3 + $0x580] sm:$0xff]  }
 0x158   : > { %v1100_v29 = vadd.f32 %v1091_v15, %v8103_v63  ;;  %v8227_v30 = vadd.f32 %v1230_v13, %v1099_v9  ;;  %6336 = vmatpush3.bf16.msra.mxu1 %v6810_v4  ;;  %v1233_v41 = vpop.f32.mrb[34].mxu1  ;;  %6309 = vmatprep.subr.bf16.mxu0 %v6980_v1  ;;  %v5884_v33 = vpop.f32.mrb[35].mxu0  ;;  %v6830_v15 = vld [vmem:[%s8716_s3 + $0x5c0] sm:$0xff]  }
 0x159   : > { %6337 = vmatprep.subr.bf16.mxu1 %v6980_v1  ;;  %v5912_v37 = vpop.f32.mrb[35].mxu1 }
 0x15a   : > { %v8236_v63 = vadd.f32 %v1233_v41, %v1100_v29  ;;  %6270 = vmatmul.mubr.bf16.gmra.mrb[112].mxu0 %v6811_v14  ;;  %v6833_v37 = vld [vmem:[%s8716_s3 + $0x590] sm:$0xff]  }
 0x15b   : > { %6310 = vmatpush3.bf16.msra.mxu0 %v6812_v22  ;;  %6298 = vmatmul.mubr.bf16.gmra.mrb[112].mxu1 %v3323_v28  ;;  %v3470_v22 = vrot.slane %v8180_v16, 1  ;;  %v6832_v28 = vld [vmem:[%s8716_s3 + $0x5c8] sm:$0xff]  }
 0x15c   : > { %6338 = vmatpush3.bf16.msra.mxu1 %v6813_v32  ;;  %6311 = vmatprep.subr.bf16.mxu0 %v6980_v1 }
 0x15d   : > { %6339 = vmatprep.subr.bf16.mxu1 %v6980_v1  ;;  %6273 = vmatprep.mubr.msk.bf16.mxu0 %vm6981_vm0, %v6980_v1  ;;  %v3471_v34 = vsel %vm658_vm2, %v3468_v57, %v3470_v22 }
 0x15e   : > { %6301 = vmatprep.mubr.msk.bf16.mxu1 %vm6981_vm0, %v6980_v1 }
 0x15f   : > { %6312 = vmatpush3.bf16.msra.mxu0 %v6815_v38  ;;  %v5272_v38 = vcombine.low %v8135_v21, %v8167_v24  ;;  %v6836_v24 = vld [vmem:[%s8716_s3 + $0x598] sm:$0xff]  }
 0x160   : > { %6340 = vmatpush3.bf16.msra.mxu1 %v6816_v39  ;;  %6313 = vmatprep.subr.bf16.mxu0 %v6980_v1 }
 0x161   : > { %6341 = vmatprep.subr.bf16.mxu1 %v6980_v1 }
 0x162   : > { %6274 = vmatmul.mubr.bf16.gmra.mrb[116].mxu0 %v6817_v11 }
 0x163   : > { %6314 = vmatpush3.bf16.msra.mxu0 %v6818_v18  ;;  %6302 = vmatmul.mubr.bf16.gmra.mrb[116].mxu1 %v3331_v44  ;;  %v3588_v44 = vld [vmem:[%s7728_s15 + $0x18] sm:$0xf] }
 0x164   : > { %6342 = vmatpush3.bf16.msra.mxu1 %v6819_v25  ;;  %6315 = vmatprep.subr.bf16.mxu0 %v6980_v1  ;;  %v3472_v25 = vrot.slane %v8213_v5, 1 }
 0x165   : > { %v1351_v26 = vpop.f32.mrb[36].mxu0  ;;  %6343 = vmatprep.subr.bf16.mxu1 %v6980_v1  ;;  %6321 = vmatprep.mubr.msk.bf16.mxu0 %vm6981_vm0, %v6980_v1 }
 0x166   : > { %v1374_v47 = vadd.f32 %v1351_v26, %v8162_v31  ;;  %v1535_v48 = vpop.f32.mrb[36].mxu1  ;;  %v5931_v49 = vpop.f32.mrb[37].mxu0  ;;  %6349 = vmatprep.mubr.msk.bf16.mxu1 %vm6981_vm0, %v6980_v1  ;;  %v6824_v31 = vld [vmem:[%s8716_s3 + $0x570] sm:$0xff]   ;;  %v3473_v5 = vsel %vm658_vm2, %v3470_v22, %v3472_v25  ;;  %v5273_v26 = vcombine.low %v8170_v35, %v3588_v44  ;;  %v6841_v35 = vld [vmem:[%s8716_s3 + $0x5a8] sm:$0xff]  }
 0x167   : > { %v5959_v50 = vpop.f32.mrb[37].mxu1  ;;  %v1354_v51 = vpop.f32.mrb[38].mxu0  ;;  %6316 = vmatpush3.bf16.msra.mxu0 %v6821_v45  ;;  %v3725_v45 = vld [vmem:[%s7728_s15 + $0x4] sm:$0xf]  ;;  %v8373_v49 = vld [vmem:[%s7728_s15 + $0xc] sm:$0xf] }
 0x168   : > { %v8278_v36 = vadd.f32 %v1535_v48, %v1374_v47  ;;  %v1375_v53 = vadd.f32 %v1354_v51, %v8173_v59  ;;  %v1538_v23 = vpop.f32.mrb[38].mxu1  ;;  %6344 = vmatpush3.bf16.msra.mxu1 %v6822_v20  ;;  %6317 = vmatprep.subr.bf16.mxu0 %v6980_v1  ;;  %v5932_v54 = vpop.f32.mrb[39].mxu0  ;;  %v3467_v59 = vrot.slane %v5246_v52, 1  ;;  %v8355_v20 = vld [vmem:[%s7728_s15 + $0x8] sm:$0xf]  ;;  %v6839_v48 = vld [vmem:[%s8716_s3 + $0x5e0] sm:$0xff]  }
 0x169   : > { %v5960_v27 = vpop.f32.mrb[39].mxu1  ;;  %6345 = vmatprep.subr.bf16.mxu1 %v6980_v1  ;;  %v5298_v47 = vcombine.low %v3725_v45, %v8355_v20  ;;  %v8376_v50 = vld [vmem:[%s7728_s15 + $0x10] sm:$0xf]  ;;  %v6842_v52 = vld [vmem:[%s8716_s3 + $0x5e8] sm:$0xff]  }
 0x16a   : > { %v8286_v43 = vadd.f32 %v1538_v23, %v1375_v53  ;;  %v3469_v9 = vsel %vm658_vm2, %v3467_v59, %v3468_v57  ;;  %v8384_v51 = vcombine.low %v8373_v49, %v8376_v50  ;;  %v3909_v23 = vld [vmem:[%s7728_s15 + $0x4] sm:$0xe] }
 0x16b   : > { %6318 = vmatpush3.bf16.msra.mxu0 %v6823_v42  ;;  %v3770_v42 = vshll.u32 %v5298_v47, 16 }
 0x16c   : > { %6346 = vmatpush3.bf16.msra.mxu1 %v6824_v31  ;;  %6319 = vmatprep.subr.bf16.mxu0 %v6980_v1 }
 0x16d   : > { %v1359_v60 = vpop.f32.mrb[40].mxu0  ;;  %6347 = vmatprep.subr.bf16.mxu1 %v6980_v1 }
 0x16e   : > { %v1376_v46 = vadd.f32 %v1359_v60, %v8195_v55  ;;  %v5935_v19 = vpop.f32.mrb[41].mxu0  ;;  %v1543_v3 = vpop.f32.mrb[40].mxu1  ;;  %v3768_v60 = vshrl.u32 %v5298_v47, 16 }
 0x16f   : > { %v1362_v4 = vpop.f32.mrb[42].mxu0  ;;  %6320 = vmatpush3.bf16.msra.mxu0 %v6825_v56  ;;  %v5963_v6 = vpop.f32.mrb[41].mxu1  ;;  %v6843_v56 = vld [vmem:[%s8716_s3 + $0x5b0] sm:$0xff]  }
 0x170   : > { %v1377_v13 = vadd.f32 %v1362_v4, %v8203_v62  ;;  %v8305_v14 = vadd.f32 %v1543_v3, %v1376_v46  ;;  %6348 = vmatpush3.bf16.msra.mxu1 %v6826_v58  ;;  %v1546_v55 = vpop.f32.mrb[42].mxu1  ;;  %6361 = vmatprep.subr.bf16.mxu0 %v6980_v1  ;;  %v5936_v17 = vpop.f32.mrb[43].mxu0  ;;  %v6831_v62 = vld [vmem:[%s8716_s3 + $0x588] sm:$0xff]   ;;  %v6844_v58 = vld [vmem:[%s8716_s3 + $0x5f0] sm:$0xff]   ;;  %v3775_v46 = vshll.u32 %v8384_v51, 16 }
 0x171   : > { %6389 = vmatprep.subr.bf16.mxu1 %v6980_v1  ;;  %v5964_v61 = vpop.f32.mrb[43].mxu1 }
 0x172   : > { %v8312_v7 = vadd.f32 %v1546_v55, %v1377_v13  ;;  %6322 = vmatmul.mubr.bf16.vlgmr.msra.gmra.mrb[120].mxu0 %v3469_v9  ;;  %v5326_v9 = vcombine.low %v3909_v23, %v8355_v20  ;;  %v3777_v17 = vrot.slane %v3775_v46, 1  ;;  %v6855_v23 = vld [vmem:[%s8716_s3 + $0x610] sm:$0xff]  }
 0x173   : > { %6350 = vmatmul.mubr.bf16.vlgmr.msra.gmra.mrb[120].mxu1 %v5271_v8  ;;  %6362 = vmatpush3.bf16.msra.mxu0 %v6829_v12  ;;  %v8410_v8 = vld [vmem:[%s7728_s15 + $0x14] sm:$0xf]  ;;  %v8413_v12 = vld [vmem:[%s7728_s15 + $0x18] sm:$0xf] }
 0x174   : > { %6390 = vmatpush3.bf16.msra.mxu1 %v6830_v15  ;;  %6363 = vmatprep.subr.bf16.mxu0 %v6980_v1  ;;  %v8423_v61 = vcombine.low %v8410_v8, %v8413_v12  ;;  %v3930_v22 = vrot.slane %v5326_v9, 1  ;;  %v4188_v9 = vld [vmem:[%s7728_s15 + $0x8] sm:$0xf] }
 0x175   : > { %v1367_v29 = vpop.f32.mrb[44].mxu0  ;;  %6391 = vmatprep.subr.bf16.mxu1 %v6980_v1  ;;  %6325 = vmatprep.mubr.msk.bf16.mxu0 %vm6981_vm0, %v6980_v1 }
 0x176   : > { %v1378_v41 = vadd.f32 %v1367_v29, %v8227_v30  ;;  %v5939_v32 = vpop.f32.mrb[45].mxu0  ;;  %v1551_v33 = vpop.f32.mrb[44].mxu1  ;;  %6353 = vmatprep.mubr.msk.bf16.mxu1 %vm6981_vm0, %v6980_v1 }
 0x177   : > { %v1370_v16 = vpop.f32.mrb[46].mxu0  ;;  %6364 = vmatpush3.bf16.msra.mxu0 %v6831_v62  ;;  %v5967_v0 = vpop.f32.mrb[45].mxu1  ;;  %v6846_v62 = vld [vmem:[%s8716_s3 + $0x5f8] sm:$0xff]  }
 0x178   : > { %v1379_v39 = vadd.f32 %v1370_v16, %v8236_v63  ;;  %v8335_v30 = vadd.f32 %v1551_v33, %v1378_v41  ;;  %6392 = vmatpush3.bf16.msra.mxu1 %v6832_v28  ;;  %v1554_v40 = vpop.f32.mrb[46].mxu1  ;;  %6365 = vmatprep.subr.bf16.mxu0 %v6980_v1  ;;  %v5940_v11 = vpop.f32.mrb[47].mxu0  ;;  %v6837_v63 = vld [vmem:[%s8716_s3 + $0x5d8] sm:$0xff]   ;;  %v3931_v28 = vrot.slane %v8384_v51, 1 }
 0x179   : > { %6393 = vmatprep.subr.bf16.mxu1 %v6980_v1  ;;  %v5968_v18 = vpop.f32.mrb[47].mxu1 }
 0x17a   : > { %v8342_v21 = vadd.f32 %v1554_v40, %v1379_v39  ;;  %6326 = vmatmul.mubr.bf16.gmra.mrb[124].mxu0 %v3471_v34  ;;  %v3783_v39 = vshll.u32 %v8423_v61, 16  ;;  %v3932_v11 = vsel %vm658_vm2, %v3930_v22, %v3931_v28  ;;  %v6851_v18 = vld [vmem:[%s8716_s3 + $0x640] sm:$0xff]   ;;  %v6862_v22 = vld [vmem:[%s8716_s3 + $0x628] sm:$0xff]  }
 0x17b   : > { %6366 = vmatpush3.bf16.msra.mxu0 %v6833_v37  ;;  %6354 = vmatmul.mubr.bf16.gmra.mrb[124].mxu1 %v5272_v38  ;;  %v6850_v37 = vld [vmem:[%s8716_s3 + $0x600] sm:$0xff]   ;;  %v3779_v38 = vshrl.u32 %v8384_v51, 16 }
 0x17c   : > { %6394 = vmatpush3.bf16.msra.mxu1 %v6834_v10  ;;  %6367 = vmatprep.subr.bf16.mxu0 %v6980_v1  ;;  %v3785_v45 = vrot.slane %v3783_v39, 1 }
 0x17d   : > { %6395 = vmatprep.subr.bf16.mxu1 %v6980_v1  ;;  %6329 = vmatprep.mubr.msk.bf16.mxu0 %vm6981_vm0, %v6980_v1  ;;  %v3781_v44 = vor.u32 %v3779_v38, %v3777_v17  ;;  %v6864_v38 = vld [vmem:[%s8716_s3 + $0x630] sm:$0xff]  }
 0x17e   : > { %6357 = vmatprep.mubr.msk.bf16.mxu1 %vm6981_vm0, %v6980_v1 }
 0x17f   : > { %6368 = vmatpush3.bf16.msra.mxu0 %v6836_v24 }
 0x180   : > { %6396 = vmatpush3.bf16.msra.mxu1 %v6837_v63  ;;  %6369 = vmatprep.subr.bf16.mxu0 %v6980_v1 }
 0x181   : > { %6397 = vmatprep.subr.bf16.mxu1 %v6980_v1 }
 0x182   : > { %6330 = vmatmul.mubr.bf16.gmra.mrb[128].mxu0 %v3473_v5  ;;  %v6859_v5 = vld [vmem:[%s7728_s15 + $0x1c] ss:$0 sps:$4 sm:$0x11]  }
 0x183   : > { %6370 = vmatpush3.bf16.msra.mxu0 %v6838_v2  ;;  %6358 = vmatmul.mubr.bf16.gmra.mrb[128].mxu1 %v5273_v26  ;;  %v6853_v2 = vld [vmem:[%s8716_s3 + $0x648] sm:$0xff]   ;;  %v3933_v26 = vrot.slane %v8423_v61, 1 }
 0x184   : > { %6398 = vmatpush3.bf16.msra.mxu1 %v6839_v48  ;;  %6371 = vmatprep.subr.bf16.mxu0 %v6980_v1 }
 0x185   : > { %v1677_v53 = vpop.f32.mrb[48].mxu0  ;;  %6399 = vmatprep.subr.bf16.mxu1 %v6980_v1  ;;  %6377 = vmatprep.mubr.msk.bf16.mxu0 %vm6981_vm0, %v6980_v1 }
 0x186   : > { %v1700_v31 = vadd.f32 %v1677_v53, %v8278_v36  ;;  %v1829_v54 = vpop.f32.mrb[48].mxu1  ;;  %v5987_v27 = vpop.f32.mrb[49].mxu0  ;;  %6405 = vmatprep.mubr.msk.bf16.mxu1 %vm6981_vm0, %v6980_v1  ;;  %v3772_v36 = vrot.slane %v3770_v42, 1  ;;  %v3786_v53 = vsel %vm392_vm1, %v3781_v44, %v3785_v45 }
 0x187   : > { %v6015_v59 = vpop.f32.mrb[49].mxu1  ;;  %v1680_v57 = vpop.f32.mrb[50].mxu0  ;;  %6372 = vmatpush3.bf16.msra.mxu0 %v6841_v35 }
 0x188   : > { %v8404_v19 = vadd.f32 %v1829_v54, %v1700_v31  ;;  %v1701_v3 = vadd.f32 %v1680_v57, %v8286_v43  ;;  %v1832_v4 = vpop.f32.mrb[50].mxu1  ;;  %6400 = vmatpush3.bf16.msra.mxu1 %v6842_v52  ;;  %6373 = vmatprep.subr.bf16.mxu0 %v6980_v1  ;;  %v5988_v6 = vpop.f32.mrb[51].mxu0  ;;  %v6845_v43 = vld [vmem:[%s8716_s3 + $0x5b8] sm:$0xff]   ;;  %v3773_v15 = vor.u32 %v3772_v36, %v3768_v60  ;;  %v3787_v31 = vshrl.u32 %v8423_v61, 16  ;;  %v6856_v59 = vld [vmem:[%s8716_s3 + $0x650] sm:$0xff]  }
 0x189   : > { %v6016_v13 = vpop.f32.mrb[51].mxu1  ;;  %6401 = vmatprep.subr.bf16.mxu1 %v6980_v1  ;;  %v3791_v54 = vshll.u32 %v6859_v5, 16  ;;  %v3934_v57 = vsel %vm658_vm2, %v3931_v28, %v3933_v26  ;;  %v3935_v6 = vrot.slane %v6859_v5, 1  ;;  %v6863_v28 = vld [vmem:[%s8716_s3 + $0x668] sm:$0xff]   ;;  %v6867_v5 = vld [vmem:[%s8716_s3 + $0x678] sm:$0xff]  }
 0x18a   : > { %v8416_v55 = vadd.f32 %v1832_v4, %v1701_v3  ;;  %v3778_v34 = vsel %vm392_vm1, %v3773_v15, %v3777_v17  ;;  %v3789_v46 = vor.u32 %v3787_v31, %v3785_v45  ;;  %v6858_v4 = vld [vmem:[%s8716_s3 + $0x658] sm:$0xff]   ;;  %v8492_v13 = vld [vmem:[%s7728_s15 + $0xc] sm:$0xf]  ;;  %v6860_v15 = vld [vmem:[%s8716_s3 + $0x620] sm:$0xff]  }
 0x18b   : > { %6374 = vmatpush3.bf16.msra.mxu0 %v6843_v56  ;;  %v3793_v3 = vrot.slane %v3791_v54, 1  ;;  %v6861_v17 = vld [vmem:[%s8716_s3 + $0x660] sm:$0xff]   ;;  %v3936_v61 = vsel %vm658_vm2, %v3933_v26, %v3935_v6  ;;  %v8541_v45 = vld [vmem:[%s7728_s15 + $0x18] sm:$0xff]  }
 0x18c   : > { %6402 = vmatpush3.bf16.msra.mxu1 %v6844_v58  ;;  %6375 = vmatprep.subr.bf16.mxu0 %v6980_v1  ;;  %v4246_v54 = vshll.u32 %v8541_v45, 16 }
 0x18d   : > { %v1685_v29 = vpop.f32.mrb[52].mxu0  ;;  %6403 = vmatprep.subr.bf16.mxu1 %v6980_v1 }
 0x18e   : > { %v1702_v41 = vadd.f32 %v1685_v29, %v8305_v14  ;;  %v5991_v32 = vpop.f32.mrb[53].mxu0  ;;  %v1837_v33 = vpop.f32.mrb[52].mxu1  ;;  %v8515_v29 = vld [vmem:[%s7728_s15 + $0x10] sm:$0xff]  }
 0x18f   : > { %v1688_v16 = vpop.f32.mrb[54].mxu0  ;;  %6376 = vmatpush3.bf16.msra.mxu0 %v6845_v43  ;;  %v6019_v0 = vpop.f32.mrb[53].mxu1  ;;  %v3794_v43 = vsel %vm392_vm1, %v3789_v46, %v3793_v3  ;;  %v4242_v31 = vshrl.u32 %v8515_v29, 16 }
 0x190   : > { %v1703_v40 = vadd.f32 %v1688_v16, %v8312_v7  ;;  %v8439_v10 = vadd.f32 %v1837_v33, %v1702_v41  ;;  %6404 = vmatpush3.bf16.msra.mxu1 %v6846_v62  ;;  %v1840_v14 = vpop.f32.mrb[54].mxu1  ;;  %6417 = vmatprep.subr.bf16.mxu0 %v6980_v1  ;;  %v5992_v24 = vpop.f32.mrb[55].mxu0  ;;  %v6852_v7 = vld [vmem:[%s8716_s3 + $0x608] sm:$0xff]   ;;  %v5378_v62 = vcombine.low %v4188_v9, %v8492_v13 }
 0x191   : > { %6445 = vmatprep.subr.bf16.mxu1 %v6980_v1  ;;  %v6020_v63 = vpop.f32.mrb[55].mxu1  ;;  %v5352_v9 = vcombine.low %v8376_v50, %v8410_v8  ;;  %v4250_v8 = vshrl.u32 %v8541_v45, 16 }
 0x192   : > { %v8447_v25 = vadd.f32 %v1840_v14, %v1703_v40  ;;  %6378 = vmatmul.mubr.bf16.vlgmr.msra.gmra.mrb[132].mxu0 %v3778_v34  ;;  %v4233_v41 = vshll.u32 %v5378_v62, 16  ;;  %v4231_v39 = vshrl.u32 %v5378_v62, 16  ;;  %v4238_v63 = vshll.u32 %v8515_v29, 16 }
 0x193   : > { %6406 = vmatmul.mubr.bf16.vlgmr.msra.gmra.mrb[132].mxu1 %v3932_v11  ;;  %6418 = vmatpush3.bf16.msra.mxu0 %v6850_v37 }
 0x194   : > { %6446 = vmatpush3.bf16.msra.mxu1 %v6851_v18  ;;  %6419 = vmatprep.subr.bf16.mxu0 %v6980_v1  ;;  %v4235_v24 = vrot.slane %v4233_v41, 1  ;;  %v4240_v26 = vrot.slane %v4238_v63, 1 }
 0x195   : > { %v1693_v47 = vpop.f32.mrb[56].mxu0  ;;  %6447 = vmatprep.subr.bf16.mxu1 %v6980_v1  ;;  %6381 = vmatprep.mubr.msk.bf16.mxu0 %vm6981_vm0, %v6980_v1 }
 0x196   : > { %v1704_v48 = vadd.f32 %v1693_v47, %v8335_v30  ;;  %v5995_v35 = vpop.f32.mrb[57].mxu0  ;;  %v1845_v51 = vpop.f32.mrb[56].mxu1  ;;  %6409 = vmatprep.mubr.msk.bf16.mxu1 %vm6981_vm0, %v6980_v1 }
 0x197   : > { %v1696_v42 = vpop.f32.mrb[58].mxu0  ;;  %6420 = vmatpush3.bf16.msra.mxu0 %v6852_v7  ;;  %v6023_v52 = vpop.f32.mrb[57].mxu1 }
 0x198   : > { %v1705_v27 = vadd.f32 %v1696_v42, %v8342_v21  ;;  %v8470_v30 = vadd.f32 %v1845_v51, %v1704_v48  ;;  %6448 = vmatpush3.bf16.msra.mxu1 %v6853_v2  ;;  %v1848_v56 = vpop.f32.mrb[58].mxu1  ;;  %6421 = vmatprep.subr.bf16.mxu0 %v6980_v1  ;;  %v5996_v58 = vpop.f32.mrb[59].mxu0  ;;  %v6857_v21 = vld [vmem:[%s8716_s3 + $0x618] sm:$0xff]   ;;  %v4236_v2 = vor.u32 %v4235_v24, %v4231_v39  ;;  %v4372_v39 = vld [vmem:[%s7728_s15 + $0x8] sm:$0xe] }
 0x199   : > { %6449 = vmatprep.subr.bf16.mxu1 %v6980_v1  ;;  %v6024_v60 = vpop.f32.mrb[59].mxu1  ;;  %v5351_v42 = vcombine.low %v8355_v20, %v8373_v49  ;;  %v4244_v58 = vor.u32 %v4242_v31, %v4240_v26 }
 0x19a   : > { %v8478_v36 = vadd.f32 %v1848_v56, %v1705_v27  ;;  %6382 = vmatmul.mubr.bf16.gmra.mrb[136].mxu0 %v3786_v53  ;;  %v4241_v20 = vsel %vm392_vm1, %v4236_v2, %v4240_v26  ;;  %v4248_v60 = vrot.slane %v4246_v54, 1 }
 0x19b   : > { %6422 = vmatpush3.bf16.msra.mxu0 %v6855_v23  ;;  %6410 = vmatmul.mubr.bf16.gmra.mrb[136].mxu1 %v3934_v57  ;;  %v6871_v23 = vld [vmem:[%s8716_s3 + $0x680] sm:$0xff]  }
 0x19c   : > { %6450 = vmatpush3.bf16.msra.mxu1 %v6856_v59  ;;  %6423 = vmatprep.subr.bf16.mxu0 %v6980_v1 }
 0x19d   : > { %6451 = vmatprep.subr.bf16.mxu1 %v6980_v1  ;;  %6385 = vmatprep.mubr.msk.bf16.mxu0 %vm6981_vm0, %v6980_v1 }
 0x19e   : > { %6413 = vmatprep.mubr.msk.bf16.mxu1 %vm6981_vm0, %v6980_v1 }
 0x19f   : > { %6424 = vmatpush3.bf16.msra.mxu0 %v6857_v21  ;;  %v8569_v21 = vld [vmem:[%s7728_s15 + $0x20] ss:$0 sps:$4 sm:$0x11]  }
 0x1a0   : > { %6452 = vmatpush3.bf16.msra.mxu1 %v6858_v4  ;;  %6425 = vmatprep.subr.bf16.mxu0 %v6980_v1 }
 0x1a1   : > { %6453 = vmatprep.subr.bf16.mxu1 %v6980_v1 }
 0x1a2   : > { %6386 = vmatmul.mubr.bf16.gmra.mrb[140].mxu0 %v3794_v43 }
 0x1a3   : > { %6426 = vmatpush3.bf16.msra.mxu0 %v6860_v15  ;;  %6414 = vmatmul.mubr.bf16.gmra.mrb[140].mxu1 %v3936_v61  ;;  %v4249_v61 = vsel %vm392_vm1, %v4244_v58, %v4248_v60 }
 0x1a4   : > { %6454 = vmatpush3.bf16.msra.mxu1 %v6861_v17  ;;  %6427 = vmatprep.subr.bf16.mxu0 %v6980_v1  ;;  %v6874_v17 = vld [vmem:[%s8716_s3 + $0x690] sm:$0xff]  }
 0x1a5   : > { %v2013_v32 = vpop.f32.mrb[60].mxu0  ;;  %6455 = vmatprep.subr.bf16.mxu1 %v6980_v1  ;;  %6433 = vmatprep.mubr.msk.bf16.mxu0 %vm6981_vm0, %v6980_v1 }
 0x1a6   : > { %v2036_v33 = vadd.f32 %v2013_v32, %v8404_v19  ;;  %v2155_v16 = vpop.f32.mrb[60].mxu1  ;;  %v6043_v0 = vpop.f32.mrb[61].mxu0  ;;  %6461 = vmatprep.mubr.msk.bf16.mxu1 %vm6981_vm0, %v6980_v1  ;;  %v6865_v19 = vld [vmem:[%s8716_s3 + $0x670] sm:$0xff]  }
 0x1a7   : > { %v6071_v34 = vpop.f32.mrb[61].mxu1  ;;  %v2016_v37 = vpop.f32.mrb[62].mxu0  ;;  %6428 = vmatpush3.bf16.msra.mxu0 %v6862_v22 }
 0x1a8   : > { %v8526_v40 = vadd.f32 %v2155_v16, %v2036_v33  ;;  %v2037_v14 = vadd.f32 %v2016_v37, %v8416_v55  ;;  %v2158_v11 = vpop.f32.mrb[62].mxu1  ;;  %6456 = vmatpush3.bf16.msra.mxu1 %v6863_v28  ;;  %6429 = vmatprep.subr.bf16.mxu0 %v6980_v1  ;;  %v6044_v18 = vpop.f32.mrb[63].mxu0  ;;  %v6866_v55 = vld [vmem:[%s8716_s3 + $0x638] sm:$0xff]   ;;  %v4254_v28 = vshll.u32 %v8569_v21, 16  ;;  %v4252_v16 = vor.u32 %v4250_v8, %v4248_v60  ;;  %v6878_v37 = vld [vmem:[%s8716_s3 + $0x6a0] sm:$0xff]  }
 0x1a9   : > { %v6072_v7 = vpop.f32.mrb[63].mxu1  ;;  %6457 = vmatprep.subr.bf16.mxu1 %v6980_v1  ;;  %v4051_v33 = vld [vmem:[%s7728_s15 + $0x1c] sm:$0xf]  ;;  %s8657_s15 = scalar_lea.hbm %s8718_s5, %s5422_s21 }
 0x1aa   : > { %v8535_v44 = vadd.f32 %v2158_v11, %v2037_v14  ;;  %v4256_v0 = vrot.slane %v4254_v28, 1  ;;  %v5353_v34 = vcombine.low %v8413_v12, %v4051_v33  ;;  %v6880_v12 = vld [vmem:[%s8716_s3 + $0x6a8] sm:$0xff]   ;;  %v6881_v7 = vld [vmem:[%s8716_s3 + $0x6b0] sm:$0xff]  }
 0x1ab   : > { %6430 = vmatpush3.bf16.msra.mxu0 %v6864_v38 }
 0x1ac   : > { %6458 = vmatpush3.bf16.msra.mxu1 %v6865_v19  ;;  %6431 = vmatprep.subr.bf16.mxu0 %v6980_v1  ;;  %v4257_v38 = vsel %vm392_vm1, %v4252_v16, %v4256_v0 }
 0x1ad   : > { %v2021_v47 = vpop.f32.mrb[64].mxu0  ;;  %6459 = vmatprep.subr.bf16.mxu1 %v6980_v1 }
 0x1ae   : > { %v2038_v48 = vadd.f32 %v2021_v47, %v8439_v10  ;;  %v6047_v35 = vpop.f32.mrb[65].mxu0  ;;  %v2163_v51 = vpop.f32.mrb[64].mxu1 }
 0x1af   : > { %v2024_v52 = vpop.f32.mrb[66].mxu0  ;;  %6432 = vmatpush3.bf16.msra.mxu0 %v6866_v55  ;;  %v6075_v53 = vpop.f32.mrb[65].mxu1  ;;  %v5406_v55 = vcombine.low %v4372_v39, %v8492_v13  ;;  %v6882_v35 = vld [vmem:[%s8716_s3 + $0x6b8] sm:$0xff]   ;;  %v4394_v13 = vrot.slane %v8515_v29, 1 }
 0x1b0   : > { %v2039_v27 = vadd.f32 %v2024_v52, %v8447_v25  ;;  %v8557_v56 = vadd.f32 %v2163_v51, %v2038_v48  ;;  %6460 = vmatpush3.bf16.msra.mxu1 %v6867_v5  ;;  %v2166_v10 = vpop.f32.mrb[66].mxu1  ;;  %6473 = vmatprep.subr.bf16.mxu0 %v6980_v1  ;;  %v6048_v49 = vpop.f32.mrb[67].mxu0  ;;  %v6872_v25 = vld [vmem:[%s8716_s3 + $0x688] sm:$0xff]  }
 0x1b1   : > { %6501 = vmatprep.subr.bf16.mxu1 %v6980_v1  ;;  %v6076_v59 = vpop.f32.mrb[67].mxu1  ;;  %v4393_v51 = vrot.slane %v5406_v55, 1 }
 0x1b2   : > { %v8562_v57 = vadd.f32 %v2166_v10, %v2039_v27  ;;  %6434 = vmatmul.mubr.bf16.vlgmr.msra.gmra.mrb[144].mxu0 %v5351_v42 }
 0x1b3   : > { %6462 = vmatmul.mubr.bf16.vlgmr.msra.gmra.mrb[144].mxu1 %v4241_v20  ;;  %6474 = vmatpush3.bf16.msra.mxu0 %v6871_v23  ;;  %v4395_v27 = vsel %vm658_vm2, %v4393_v51, %v4394_v13 }
 0x1b4   : > { %6509 = vmatpush3.bf16.msra.mxu1 %v6871_v23  ;;  %6475 = vmatprep.subr.bf16.mxu0 %v6980_v1 }
 0x1b5   : > { %v2029_v46 = vpop.f32.mrb[68].mxu0  ;;  %6502 = vmatprep.subr.bf16.mxu1 %v6980_v1  ;;  %6437 = vmatprep.mubr.msk.bf16.mxu0 %vm6981_vm0, %v6980_v1 }
 0x1b6   : > { %v2040_v3 = vadd.f32 %v2029_v46, %v8470_v30  ;;  %v6051_v4 = vpop.f32.mrb[69].mxu0  ;;  %v2171_v6 = vpop.f32.mrb[68].mxu1  ;;  %6465 = vmatprep.mubr.msk.bf16.mxu1 %vm6981_vm0, %v6980_v1 }
 0x1b7   : > { %v2032_v43 = vpop.f32.mrb[70].mxu0  ;;  %6476 = vmatpush3.bf16.msra.mxu0 %v6872_v25  ;;  %v6079_v15 = vpop.f32.mrb[69].mxu1 }
 0x1b8   : > { %v2041_v30 = vadd.f32 %v2032_v43, %v8478_v36  ;;  %v8584_v62 = vadd.f32 %v2171_v6, %v2040_v3  ;;  %6510 = vmatpush3.bf16.msra.mxu1 %v6872_v25  ;;  %v2174_v22 = vpop.f32.mrb[70].mxu1  ;;  %6477 = vmatprep.subr.bf16.mxu0 %v6980_v1  ;;  %v6052_v50 = vpop.f32.mrb[71].mxu0  ;;  %v6876_v36 = vld [vmem:[%s8716_s3 + $0x698] sm:$0xff]  }
 0x1b9   : > { %6503 = vmatprep.subr.bf16.mxu1 %v6980_v1  ;;  %v6080_v41 = vpop.f32.mrb[71].mxu1 }
 0x1ba   : > { %v8590_v32 = vadd.f32 %v2174_v22, %v2041_v30  ;;  %6438 = vmatmul.mubr.bf16.gmra.mrb[148].mxu0 %v5352_v9 }
 0x1bb   : > { %6478 = vmatpush3.bf16.msra.mxu0 %v6874_v17  ;;  %6466 = vmatmul.mubr.bf16.gmra.mrb[148].mxu1 %v4249_v61 }
 0x1bc   : > { %6511 = vmatpush3.bf16.msra.mxu1 %v6874_v17  ;;  %6479 = vmatprep.subr.bf16.mxu0 %v6980_v1 }
 0x1bd   : > { %6504 = vmatprep.subr.bf16.mxu1 %v6980_v1  ;;  %6441 = vmatprep.mubr.msk.bf16.mxu0 %vm6981_vm0, %v6980_v1 }
 0x1be   : > { %6469 = vmatprep.mubr.msk.bf16.mxu1 %vm6981_vm0, %v6980_v1 }
 0x1bf   : > { %6480 = vmatpush3.bf16.msra.mxu0 %v6876_v36 }
 0x1c0   : > { %6512 = vmatpush3.bf16.msra.mxu1 %v6876_v36  ;;  %6481 = vmatprep.subr.bf16.mxu0 %v6980_v1 }
 0x1c1   : > { %6505 = vmatprep.subr.bf16.mxu1 %v6980_v1 }
 0x1c2   : > { %6442 = vmatmul.mubr.bf16.gmra.mrb[152].mxu0 %v5353_v34 }
 0x1c3   : > { %6482 = vmatpush3.bf16.msra.mxu0 %v6878_v37  ;;  %6470 = vmatmul.mubr.bf16.gmra.mrb[152].mxu1 %v4257_v38 }
 0x1c4   : > { %6513 = vmatpush3.bf16.msra.mxu1 %v6878_v37  ;;  %6483 = vmatprep.subr.bf16.mxu0 %v6980_v1 }
 0x1c5   : > { %v2292_v14 = vpop.f32.mrb[72].mxu0  ;;  %6506 = vmatprep.subr.bf16.mxu1 %v6980_v1  ;;  %6489 = vmatprep.mubr.msk.bf16.mxu0 %vm6981_vm0, %v6980_v1 }
 0x1c6   : > { %v2315_v11 = vadd.f32 %v2292_v14, %v8526_v40  ;;  %v2476_v19 = vpop.f32.mrb[72].mxu1  ;;  %v6099_v18 = vpop.f32.mrb[73].mxu0  ;;  %6493 = vmatprep.mubr.msk.bf16.mxu1 %vm6981_vm0, %v6980_v1 }
 0x1c7   : > { %v6127_v24 = vpop.f32.mrb[73].mxu1  ;;  %v2295_v63 = vpop.f32.mrb[74].mxu0  ;;  %6484 = vmatpush3.bf16.msra.mxu0 %v6880_v12 }
 0x1c8   : > { %v2499_v5 = vadd.f32 %v2476_v19, %v2315_v11  ;;  %v2316_v2 = vadd.f32 %v2295_v63, %v8535_v44  ;;  %v2479_v26 = vpop.f32.mrb[74].mxu1  ;;  %6514 = vmatpush3.bf16.msra.mxu1 %v6880_v12  ;;  %6485 = vmatprep.subr.bf16.mxu0 %v6980_v1  ;;  %v6100_v40 = vpop.f32.mrb[75].mxu0  ;;  %v4396_v44 = vrot.slane %v8541_v45, 1 }
 0x1c9   : > { %v6128_v47 = vpop.f32.mrb[75].mxu1  ;;  %6507 = vmatprep.subr.bf16.mxu1 %v6980_v1 }
 0x1ca   : > { %v2500_v48 = vadd.f32 %v2479_v26, %v2316_v2  ;;  %v4397_v49 = vsel %vm658_vm2, %v4394_v13, %v4396_v44 }
 0x1cb   : > { %6486 = vmatpush3.bf16.msra.mxu0 %v6881_v7 }
 0x1cc   : > { %6515 = vmatpush3.bf16.msra.mxu1 %v6881_v7  ;;  %6487 = vmatprep.subr.bf16.mxu0 %v6980_v1 }
 0x1cd   : > { %v2300_v42 = vpop.f32.mrb[76].mxu0  ;;  %6508 = vmatprep.subr.bf16.mxu1 %v6980_v1 }
 0x1ce   : > { %v2317_v52 = vadd.f32 %v2300_v42, %v8557_v56  ;;  %v6103_v53 = vpop.f32.mrb[77].mxu0  ;;  %v2484_v23 = vpop.f32.mrb[76].mxu1  ;;  %v4398_v56 = vrot.slane %v8569_v21, 1 }
 0x1cf   : > { %v2303_v31 = vpop.f32.mrb[78].mxu0  ;;  %6488 = vmatpush3.bf16.msra.mxu0 %v6882_v35  ;;  %v6131_v54 = vpop.f32.mrb[77].mxu1 }
 0x1d0   : > { %v2318_v10 = vadd.f32 %v2303_v31, %v8562_v57  ;;  %v2501_v29 = vadd.f32 %v2484_v23, %v2317_v52  ;;  %6516 = vmatpush3.bf16.msra.mxu1 %v6882_v35  ;;  %v2487_v20 = vpop.f32.mrb[78].mxu1  ;;  %v6104_v45 = vpop.f32.mrb[79].mxu0  ;;  %v4399_v15 = vsel %vm658_vm2, %v4396_v44, %v4398_v56 }
 0x1d1   : > { %v6132_v59 = vpop.f32.mrb[79].mxu1 }
 0x1d2   : > { %v2502_v25 = vadd.f32 %v2487_v20, %v2318_v10  ;;  %6490 = vmatmul.mubr.bf16.vlgmr.msra.gmra.mrb[156].mxu0 %v4395_v27 }
 0x1d3   : > { %6494 = vmatmul.mubr.bf16.vlgmr.msra.gmra.mrb[156].mxu1 %v4397_v49 }
 0x1d4   : > { %6497 = vmatprep.mubr.msk.bf16.mxu1 %vm6981_vm0, %v6980_v1 }
 0x1d5   : > { %v2308_v58 = vpop.f32.mrb[80].mxu0 }
 0x1d6   : > { %v2319_v60 = vadd.f32 %v2308_v58, %v8584_v62  ;;  %v6107_v46 = vpop.f32.mrb[81].mxu0  ;;  %v2492_v57 = vpop.f32.mrb[80].mxu1 }
 0x1d7   : > { %v2311_v3 = vpop.f32.mrb[82].mxu0  ;;  %v6135_v4 = vpop.f32.mrb[81].mxu1 }
 0x1d8   : > { %v2320_v6 = vadd.f32 %v2311_v3, %v8590_v32  ;;  %v2503_v9 = vadd.f32 %v2492_v57, %v2319_v60  ;;  %v2495_v43 = vpop.f32.mrb[82].mxu1  ;;  %v6108_v17 = vpop.f32.mrb[83].mxu0 }
 0x1d9   : > { %v6136_v61 = vpop.f32.mrb[83].mxu1 }
 0x1da   : > { %v2504_v30 = vadd.f32 %v2495_v43, %v2320_v6 }
 0x1db   : > { %6498 = vmatmul.mubr.bf16.gmra.mrb[160].mxu1 %v4399_v15 }
 0x1e5   : > { %v2618_v1 = vpop.f32.mrb[84].mxu0 }
 0x1e6   : > { %v2641_v22 = vadd.f32 %v2618_v1, %v2499_v5  ;;  %v2755_v21 = vpop.f32.mrb[84].mxu1  ;;  %v6155_v50 = vpop.f32.mrb[85].mxu0 }
 0x1e7   : > { %v6183_v8 = vpop.f32.mrb[85].mxu1  ;;  %v2621_v62 = vpop.f32.mrb[86].mxu0 }
 0x1e8   : > { %v2778_v28 = vadd.f32 %v2755_v21, %v2641_v22  ;;  %v2642_v41 = vadd.f32 %v2621_v62, %v2500_v48  ;;  %v2758_v36 = vpop.f32.mrb[86].mxu1  ;;  %v6156_v33 = vpop.f32.mrb[87].mxu0 }
 0x1e9   : > { %v6184_v16 = vpop.f32.mrb[87].mxu1 }
 0x1ea   : > { %v2779_v32 = vadd.f32 %v2758_v36, %v2642_v41 }
 0x1ed   : > { %v2626_v0 = vpop.f32.mrb[88].mxu0 }
 0x1ee   : > { %v2643_v34 = vadd.f32 %v2626_v0, %v2501_v29  ;;  %v6159_v37 = vpop.f32.mrb[89].mxu0  ;;  %v2763_v38 = vpop.f32.mrb[88].mxu1 }
 0x1ef   : > { %v2629_v12 = vpop.f32.mrb[90].mxu0  ;;  %v6187_v39 = vpop.f32.mrb[89].mxu1 }
 0x1f0   : > { %v2644_v14 = vadd.f32 %v2629_v12, %v2502_v25  ;;  %v2780_v11 = vadd.f32 %v2763_v38, %v2643_v34  ;;  %v2766_v19 = vpop.f32.mrb[90].mxu1  ;;  %v6160_v18 = vpop.f32.mrb[91].mxu0 }
 0x1f1   : > { %v6188_v24 = vpop.f32.mrb[91].mxu1 }
 0x1f2   : > { %v2781_v63 = vadd.f32 %v2766_v19, %v2644_v14 }
 0x1f5   : > { %v2634_v7 = vpop.f32.mrb[92].mxu0 }
 0x1f6   : > { %v2645_v55 = vadd.f32 %v2634_v7, %v2503_v9  ;;  %v6163_v5 = vpop.f32.mrb[93].mxu0  ;;  %v2771_v2 = vpop.f32.mrb[92].mxu1 }
 0x1f7   : > { %v2637_v26 = vpop.f32.mrb[94].mxu0  ;;  %v6191_v40 = vpop.f32.mrb[93].mxu1 }
 0x1f8   : > { %v2646_v47 = vadd.f32 %v2637_v26, %v2504_v30  ;;  %v2782_v48 = vadd.f32 %v2771_v2, %v2645_v55  ;;  %v2774_v35 = vpop.f32.mrb[94].mxu1  ;;  %v6164_v51 = vpop.f32.mrb[95].mxu0 }
 0x1f9   : > { %v6192_v13 = vpop.f32.mrb[95].mxu1 }
 0x1fa   : > { %v2783_v44 = vadd.f32 %v2774_v35, %v2646_v47 }
 0x205   : > { %v2939_v42 = vpop.f32.mrb[96].mxu0 }
 0x206   : > { %v2962_v52 = vadd.f32 %v2939_v42, %v2778_v28  ;;  %v3081_v53 = vpop.f32.mrb[96].mxu1  ;;  %v6211_v23 = vpop.f32.mrb[97].mxu0 }
 0x207   : > { %v6239_v31 = vpop.f32.mrb[97].mxu1  ;;  %v2942_v54 = vpop.f32.mrb[98].mxu0 }
 0x208   : > { %v3104_v27 = vadd.f32 %v3081_v53, %v2962_v52  ;;  %v2963_v10 = vadd.f32 %v2942_v54, %v2779_v32  ;;  %v3084_v29 = vpop.f32.mrb[98].mxu1  ;;  %v6212_v20 = vpop.f32.mrb[99].mxu0 }
 0x209   : > { %v6240_v49 = vpop.f32.mrb[99].mxu1 }
 0x20a   : > { %v3105_v45 = vadd.f32 %v3084_v29, %v2963_v10 }
 0x20d   : > { %v2947_v59 = vpop.f32.mrb[100].mxu0 }
 0x20e   : > { %v2964_v25 = vadd.f32 %v2947_v59, %v2780_v11  ;;  %v6215_v56 = vpop.f32.mrb[101].mxu0  ;;  %v3089_v58 = vpop.f32.mrb[100].mxu1 }
 0x20f   : > { %v2950_v60 = vpop.f32.mrb[102].mxu0  ;;  %v6243_v46 = vpop.f32.mrb[101].mxu1 }
 0x210   : > { %v2965_v57 = vadd.f32 %v2950_v60, %v2781_v63  ;;  %v3106_v3 = vadd.f32 %v3089_v58, %v2964_v25  ;;  %v3092_v4 = vpop.f32.mrb[102].mxu1  ;;  %v6216_v6 = vpop.f32.mrb[103].mxu0 }
 0x211   : > { %v6244_v9 = vpop.f32.mrb[103].mxu1 }
 0x212   : > { %v3107_v43 = vadd.f32 %v3092_v4, %v2965_v57 }
 0x215   : > { %v2955_v15 = vpop.f32.mrb[104].mxu0 }
 0x216   : > { %v2966_v17 = vadd.f32 %v2955_v15, %v2782_v48  ;;  %v6219_v61 = vpop.f32.mrb[105].mxu0  ;;  %v3097_v30 = vpop.f32.mrb[104].mxu1 }
 0x217   : > { %v2958_v1 = vpop.f32.mrb[106].mxu0  ;;  %v6247_v22 = vpop.f32.mrb[105].mxu1 }
 0x218   : > { %v2967_v21 = vadd.f32 %v2958_v1, %v2783_v44  ;;  %v3108_v50 = vadd.f32 %v3097_v30, %v2966_v17  ;;  %v3100_v8 = vpop.f32.mrb[106].mxu1  ;;  %v6220_v62 = vpop.f32.mrb[107].mxu0 }
 0x219   : > { %v6248_v28 = vpop.f32.mrb[107].mxu1 }
 0x21a   : > { %v3109_v41 = vadd.f32 %v3100_v8, %v2967_v21 }
 0x225   : > { %v3233_v36 = vpop.f32.mrb[108].mxu0 }
 0x226   : > { %v3256_v33 = vadd.f32 %v3233_v36, %v3104_v27  ;;  %v3417_v16 = vpop.f32.mrb[108].mxu1  ;;  %v6267_v32 = vpop.f32.mrb[109].mxu0 }
 0x227   : > { %v6295_v0 = vpop.f32.mrb[109].mxu1  ;;  %v3236_v34 = vpop.f32.mrb[110].mxu0 }
 0x228   : > { %v3440_v37 = vadd.f32 %v3417_v16, %v3256_v33  ;;  %v3257_v38 = vadd.f32 %v3236_v34, %v3105_v45  ;;  %v3420_v12 = vpop.f32.mrb[110].mxu1  ;;  %v6268_v39 = vpop.f32.mrb[111].mxu0 }
 0x229   : > { %v6296_v14 = vpop.f32.mrb[111].mxu1 }
 0x22a   : > { %v3441_v11 = vadd.f32 %v3420_v12, %v3257_v38 }
 0x22d   : > { %v3241_v19 = vpop.f32.mrb[112].mxu0 }
 0x22e   : > { %v3258_v18 = vadd.f32 %v3241_v19, %v3106_v3  ;;  %v6271_v24 = vpop.f32.mrb[113].mxu0  ;;  %v3425_v63 = vpop.f32.mrb[112].mxu1 }
 0x22f   : > { %v3244_v7 = vpop.f32.mrb[114].mxu0  ;;  %v6299_v55 = vpop.f32.mrb[113].mxu1 }
 0x230   : > { %v3259_v5 = vadd.f32 %v3244_v7, %v3107_v43  ;;  %v3442_v2 = vadd.f32 %v3425_v63, %v3258_v18  ;;  %v3428_v26 = vpop.f32.mrb[114].mxu1  ;;  %v6272_v40 = vpop.f32.mrb[115].mxu0 }
 0x231   : > { %v6300_v47 = vpop.f32.mrb[115].mxu1 }
 0x232   : > { %v3443_v48 = vadd.f32 %v3428_v26, %v3259_v5 }
 0x235   : > { %v3249_v35 = vpop.f32.mrb[116].mxu0 }
 0x236   : > { %v3260_v51 = vadd.f32 %v3249_v35, %v3108_v50  ;;  %v6275_v13 = vpop.f32.mrb[117].mxu0  ;;  %v3433_v44 = vpop.f32.mrb[116].mxu1 }
 0x237   : > { %v3252_v42 = vpop.f32.mrb[118].mxu0  ;;  %v6303_v52 = vpop.f32.mrb[117].mxu1 }
 0x238   : > { %v3261_v53 = vadd.f32 %v3252_v42, %v3109_v41  ;;  %v3444_v23 = vadd.f32 %v3433_v44, %v3260_v51  ;;  %v3436_v31 = vpop.f32.mrb[118].mxu1  ;;  %v6276_v54 = vpop.f32.mrb[119].mxu0 }
 0x239   : > { %v6304_v27 = vpop.f32.mrb[119].mxu1 }
 0x23a   : > { %v3445_v10 = vadd.f32 %v3436_v31, %v3261_v53 }
 0x245   : > { %v3559_v29 = vpop.f32.mrb[120].mxu0 }
 0x246   : > { %v3582_v20 = vadd.f32 %v3559_v29, %v3440_v37  ;;  %v3696_v49 = vpop.f32.mrb[120].mxu1  ;;  %v6323_v45 = vpop.f32.mrb[121].mxu0 }
 0x247   : > { %v6351_v59 = vpop.f32.mrb[121].mxu1  ;;  %v3562_v25 = vpop.f32.mrb[122].mxu0 }
 0x248   : > { %v3719_v56 = vadd.f32 %v3696_v49, %v3582_v20  ;;  %v3583_v58 = vadd.f32 %v3562_v25, %v3441_v11  ;;  %v3699_v60 = vpop.f32.mrb[122].mxu1  ;;  %v6324_v46 = vpop.f32.mrb[123].mxu0 }
 0x249   : > { %v6352_v57 = vpop.f32.mrb[123].mxu1 }
 0x24a   : > { %v3720_v3 = vadd.f32 %v3699_v60, %v3583_v58 }
 0x24d   : > { %v3567_v4 = vpop.f32.mrb[124].mxu0 }
 0x24e   : > { %v3584_v6 = vadd.f32 %v3567_v4, %v3442_v2  ;;  %v6327_v9 = vpop.f32.mrb[125].mxu0  ;;  %v3704_v43 = vpop.f32.mrb[124].mxu1 }
 0x24f   : > { %v3570_v15 = vpop.f32.mrb[126].mxu0  ;;  %v6355_v17 = vpop.f32.mrb[125].mxu1 }
 0x250   : > { %v3585_v61 = vadd.f32 %v3570_v15, %v3443_v48  ;;  %v3721_v30 = vadd.f32 %v3704_v43, %v3584_v6  ;;  %v3707_v1 = vpop.f32.mrb[126].mxu1  ;;  %v6328_v22 = vpop.f32.mrb[127].mxu0 }
 0x251   : > { %v6356_v21 = vpop.f32.mrb[127].mxu1 }
 0x252   : > { %v3722_v50 = vadd.f32 %v3707_v1, %v3585_v61 }
 0x255   : > { %v3575_v8 = vpop.f32.mrb[128].mxu0 }
 0x256   : > { %v3586_v62 = vadd.f32 %v3575_v8, %v3444_v23  ;;  %v6331_v28 = vpop.f32.mrb[129].mxu0  ;;  %v3712_v41 = vpop.f32.mrb[128].mxu1 }
 0x257   : > { %v3578_v36 = vpop.f32.mrb[130].mxu0  ;;  %v6359_v33 = vpop.f32.mrb[129].mxu1 }
 0x258   : > { %v3587_v16 = vadd.f32 %v3578_v36, %v3445_v10  ;;  %v3723_v32 = vadd.f32 %v3712_v41, %v3586_v62  ;;  %v3715_v0 = vpop.f32.mrb[130].mxu1  ;;  %v6332_v34 = vpop.f32.mrb[131].mxu0 }
 0x259   : > { %v6360_v37 = vpop.f32.mrb[131].mxu1 }
 0x25a   : > { %v3724_v38 = vadd.f32 %v3715_v0, %v3587_v16 }
 0x265   : > { %v3880_v12 = vpop.f32.mrb[132].mxu0 }
 0x266   : > { %v3903_v39 = vadd.f32 %v3880_v12, %v3719_v56  ;;  %v4022_v14 = vpop.f32.mrb[132].mxu1  ;;  %v6379_v11 = vpop.f32.mrb[133].mxu0 }
 0x267   : > { %v6407_v19 = vpop.f32.mrb[133].mxu1  ;;  %v3883_v18 = vpop.f32.mrb[134].mxu0 }
 0x268   : > { %v4045_v24 = vadd.f32 %v4022_v14, %v3903_v39  ;;  %v3904_v63 = vadd.f32 %v3883_v18, %v3720_v3  ;;  %v4025_v7 = vpop.f32.mrb[134].mxu1  ;;  %v6380_v55 = vpop.f32.mrb[135].mxu0 }
 0x269   : > { %v6408_v5 = vpop.f32.mrb[135].mxu1  ;;  %v5415_v55 = vld [vmem:[%s8717_s4] ss:$0 sm:$0xff] }
 0x26a   : > { %v4046_v2 = vadd.f32 %v4025_v7, %v3904_v63 }
 0x26d   : > { %v3888_v26 = vpop.f32.mrb[136].mxu0 }
 0x26e   : > { %v3905_v40 = vadd.f32 %v3888_v26, %v3721_v30  ;;  %v6383_v47 = vpop.f32.mrb[137].mxu0  ;;  %v4030_v48 = vpop.f32.mrb[136].mxu1 }
 0x26f   : > { %v3891_v35 = vpop.f32.mrb[138].mxu0  ;;  %v6411_v51 = vpop.f32.mrb[137].mxu1 }
 0x270   : > { %v3906_v13 = vadd.f32 %v3891_v35, %v3722_v50  ;;  %v4047_v44 = vadd.f32 %v4030_v48, %v3905_v40  ;;  %v4033_v42 = vpop.f32.mrb[138].mxu1  ;;  %v6384_v52 = vpop.f32.mrb[139].mxu0 }
 0x271   : > { %v6412_v53 = vpop.f32.mrb[139].mxu1 }
 0x272   : > { %v4048_v23 = vadd.f32 %v4033_v42, %v3906_v13 }
 0x275   : > { %v3896_v31 = vpop.f32.mrb[140].mxu0 }
 0x276   : > { %v3907_v54 = vadd.f32 %v3896_v31, %v3723_v32  ;;  %v6387_v27 = vpop.f32.mrb[141].mxu0  ;;  %v4038_v10 = vpop.f32.mrb[140].mxu1 }
 0x277   : > { %v3899_v29 = vpop.f32.mrb[142].mxu0  ;;  %v6415_v20 = vpop.f32.mrb[141].mxu1 }
 0x278   : > { %v3908_v49 = vadd.f32 %v3899_v29, %v3724_v38  ;;  %v4049_v45 = vadd.f32 %v4038_v10, %v3907_v54  ;;  %v4041_v59 = vpop.f32.mrb[142].mxu1  ;;  %v6388_v25 = vpop.f32.mrb[143].mxu0 }
 0x279   : > { %v6416_v56 = vpop.f32.mrb[143].mxu1 }
 0x27a   : > { %v4050_v58 = vadd.f32 %v4041_v59, %v3908_v49 }
 0x285   : > { %v4159_v60 = vpop.f32.mrb[144].mxu0 }
 0x286   : > { %v4182_v46 = vadd.f32 %v4159_v60, %v4045_v24  ;;  %v4343_v57 = vpop.f32.mrb[144].mxu1  ;;  %v6435_v3 = vpop.f32.mrb[145].mxu0 }
 0x287   : > { %v6463_v4 = vpop.f32.mrb[145].mxu1  ;;  %v4162_v6 = vpop.f32.mrb[146].mxu0 }
 0x288   : > { %v4366_v9 = vadd.f32 %v4343_v57, %v4182_v46  ;;  %v4183_v43 = vadd.f32 %v4162_v6, %v4046_v2  ;;  %v4346_v15 = vpop.f32.mrb[146].mxu1  ;;  %v6436_v17 = vpop.f32.mrb[147].mxu0 }
 0x289   : > { %v6464_v61 = vpop.f32.mrb[147].mxu1 }
 0x28a   : > { %v4367_v30 = vadd.f32 %v4346_v15, %v4183_v43 }
 0x28d   : > { %v4167_v1 = vpop.f32.mrb[148].mxu0 }
 0x28e   : > { %v4184_v22 = vadd.f32 %v4167_v1, %v4047_v44  ;;  %v6439_v21 = vpop.f32.mrb[149].mxu0  ;;  %v4351_v50 = vpop.f32.mrb[148].mxu1 }
 0x28f   : > { %v4170_v8 = vpop.f32.mrb[150].mxu0  ;;  %v6467_v62 = vpop.f32.mrb[149].mxu1 }
 0x290   : > { %v4185_v28 = vadd.f32 %v4170_v8, %v4048_v23  ;;  %v4368_v41 = vadd.f32 %v4351_v50, %v4184_v22  ;;  %v4354_v36 = vpop.f32.mrb[150].mxu1  ;;  %v6440_v33 = vpop.f32.mrb[151].mxu0 }
 0x291   : > { %v6468_v16 = vpop.f32.mrb[151].mxu1 }
 0x292   : > { %v4369_v32 = vadd.f32 %v4354_v36, %v4185_v28 }
 0x295   : > { %v4175_v0 = vpop.f32.mrb[152].mxu0 }
 0x296   : > { %v4186_v34 = vadd.f32 %v4175_v0, %v4049_v45  ;;  %v6443_v37 = vpop.f32.mrb[153].mxu0  ;;  %v4359_v38 = vpop.f32.mrb[152].mxu1 }
 0x297   : > { %v4178_v12 = vpop.f32.mrb[154].mxu0  ;;  %v6471_v39 = vpop.f32.mrb[153].mxu1 }
 0x298   : > { %v4187_v14 = vadd.f32 %v4178_v12, %v4050_v58  ;;  %v4370_v11 = vadd.f32 %v4359_v38, %v4186_v34  ;;  %v4362_v19 = vpop.f32.mrb[154].mxu1  ;;  %v6444_v18 = vpop.f32.mrb[155].mxu0 }
 0x299   : > { %v6472_v24 = vpop.f32.mrb[155].mxu1 }
 0x29a   : > { %v4371_v63 = vadd.f32 %v4362_v19, %v4187_v14 }
 0x2a5   : > { %v4485_v7 = vpop.f32.mrb[156].mxu0 }
 0x2a6   : > { %v4508_v5 = vadd.f32 %v4485_v7, %v4366_v9  ;;  %v4493_v2 = vpop.f32.mrb[156].mxu1  ;;  %v6491_v26 = vpop.f32.mrb[157].mxu0 }
 0x2a7   : > { %v4510_v40 = vadd.f32 %v4493_v2, %v4368_v41  ;;  %v6495_v47 = vpop.f32.mrb[157].mxu1  ;;  %v4488_v48 = vpop.f32.mrb[158].mxu0 }
 0x2a8   : > { %v4521_v35 = vadd.f32 %v5415_v55, %v4508_v5  ;;  %v4509_v51 = vadd.f32 %v4488_v48, %v4367_v30  ;;  %v4496_v13 = vpop.f32.mrb[158].mxu1  ;;  %v6492_v44 = vpop.f32.mrb[159].mxu0 }
 0x2a9   : > { %v4523_v42 = vadd.f32 %v5415_v55, %v4510_v40  ;;  %v4511_v52 = vadd.f32 %v4496_v13, %v4369_v32  ;;  %v6496_v53 = vpop.f32.mrb[159].mxu1 }
 0x2aa   : > { %v4522_v23 = vadd.f32 %v5415_v55, %v4509_v51  ;;  %v4527_v54 = vmax.f32 %v4521_v35, 0.0 }
 0x2ab   : > { %v4524_v31 = vadd.f32 %v5415_v55, %v4511_v52  ;;  %v4529_v10 = vmax.f32 %v4523_v42, 0.0 }
 0x2ac   : > { %v4528_v27 = vmax.f32 %v4522_v23, 0.0 }
 0x2ad   : > { %v4530_v29 = vmax.f32 %v4524_v31, 0.0 }
 0x2ae   : > { %v5434_v20 = vpack.c.bf16 %v4528_v27, %v4527_v54  ;;  %v4501_v49 = vpop.f32.mrb[160].mxu1 }
 0x2af   : > { %v5439_v45 = vpack.c.bf16 %v4530_v29, %v4529_v10  ;;  %v4512_v59 = vadd.f32 %v4501_v49, %v4370_v11  ;;  %v6499_v25 = vpop.f32.mrb[161].mxu1 }
 0x2b0   : > { %5435 = vst [vmem:[%s301_s14] sm:$0xff] %v5434_v20   ;;  %v4504_v56 = vpop.f32.mrb[162].mxu1 }
 0x2b1   : > { %5446 = vst [vmem:[%s301_s14 + $0x8] sm:$0xff] %v5439_v45   ;;  %v4525_v58 = vadd.f32 %v5415_v55, %v4512_v59  ;;  %v4513_v60 = vadd.f32 %v4504_v56, %v4371_v63  ;;  %v6500_v46 = vpop.f32.mrb[163].mxu1 }
 0x2b3   : > { %v4526_v57 = vadd.f32 %v5415_v55, %v4513_v60  ;;  %v4531_v3 = vmax.f32 %v4525_v58, 0.0 }
 0x2b5   : > { %v4532_v4 = vmax.f32 %v4526_v57, 0.0 }
 0x2b7   : > { %v5444_v6 = vpack.c.bf16 %v4532_v4, %v4531_v3 }
 0x2b9   : > { %5447 = vst [vmem:[%s301_s14 + $0x10] sm:$0xff] %v5444_v6  }
 0x2ba   : > { %6897 = shalt.err (!%p6894_p10)
}
 0x2bb   : > { %s6898_s27 = scalar_lea.hbm %s8657_s15, 384  ;;  %s6902_s12 = scalar_lea.hbm %s8718_s5, 9216 }
 0x2bc   : > { %p6899_p11 = scmp.ne.s32.totalorder %s8657_s15, %s6898_s27  ;;  %p6903_p0 = scmp.lt.u32.totalorder %s8657_s15, %s8718_s5 }
 0x2bd   : > { %p6904_p1 = scmp.lt.u32.totalorder %s6902_s12, %s6898_s27  ;;  %p6906_p4 = scmp.lt.u32.totalorder %s6898_s27, %s8657_s15 }
 0x2be   : > { %p6900_p12 = pnand %p6899_p11, %p7066_p3 }
 0x2bf   : > { %p6905_p2 = por %p6904_p1, %p6903_p0 }
 0x2c0   : > { %p6901_p13 = pneg %p6900_p12 }
 0x2c1   : > { %p6907_p5 = por %p6906_p4, %p6905_p2 }
 0x2c3   : > { %p6908_p6 = pnand %p6907_p5, %p6901_p13 }
 0x2c5   : > { %6911 = shalt.err (!%p6908_p6)
}
 0x2c6   : > { %s6983_s17 = smov 64   ;;  %s6984_s13 = smov 4  }
 0x2c7   : > { %6524 = dma.vmem_to_hbm [thread:$0]  (%p7066_p3), %s8652_s10, 384, %s8657_s15, %s8661_s16, %s6983_s17, %s6983_s17, %s6984_s13  }
 0x2c8 PF: > { %p6530_p7 = scmp.ge.s32.totalorder %s6978_s25, 2  ;;  %s4594_s26 = sand.u32 1, %s6950_s18  }
 0x2c9   : > { %s4595_s30 = scalar_lea.sflag [#allocation3], %s4594_s26 }
 0x2ca   : > { %p6527_p9 = pnand %p6530_p7, %p7075_p8 }
 0x2cc   : > { %6945 = dma.done.wait (!%p6527_p9), %s4595_s30, 384  }
 0x2cd   : > { %6947 = vsyncadd (!%p6527_p9), %s4595_s30, 4294966912  ;;  %s18_s25 = sadd.s32 1, %s6978_s25   ;;  %s8722_s18 = smov %s6954_s19 }
 0x2ce   : > { %p15_p10 = scmp.ge.s32.totalorder %s18_s25, 26   ;;  %s8723_s19 = smov %s6958_s20 }
 0x2cf   : > { %s8724_s20 = smov %s7084_s11  ;;  %s8725_s21 = smov %s6970_s23 }
 0x2d0   : > { %s8726_s22 = smov %s6974_s24  ;;  %s8727_s23 = smov %s8730_s28 }
 0x2d1   : > { %s8728_s24 = smov %s8734_s29  ;;  %17 = sbr.rel (!%p15_p10) target bundleno = 5 (0x5), region = 107 }
 0x2d8   :  { %4600 = vsyncpa [#allocation3], 1 }
 0x2d9   :  { %4602 = vsyncpa [#allocation3 + $0x1], 1 }

</bundles_post_ra>
